<compile_context>
chip_gen: v6e
topology: v6e:2x2x1
jax: 0.10.0
libtpu: 0.0.40
codegen_flags: <defaults>
</compile_context>

<pallas_src>
import jax
import jax.numpy as jnp
from jax import lax
from jax.experimental import pallas as pl
from jax.experimental.pallas import tpu as pltpu

IMPOSSIBLE = -10000.0


def _crf_fwd_kernel(em_ref, tgt_ref, len_ref, trans_t_ref, start_ref, end_ref,
                    loss_ref, alpha_ref):
    """One grid step = one (batch tile, token block) of the CRF forward pass.

    em_ref      : (TT, TB, C) emissions for TT tokens of this batch tile
    tgt_ref     : (TT, TB, C) 1-hot allowed-tag mask (float 0/1)
    len_ref     : (TB, 1)     int32 sequence lengths
    trans_t_ref : (C, C)      transitions, TRANSPOSED (trans_t[j, i] = trans[i, j])
    start_ref   : (1, C)      start transition scores (constraint-masked)
    end_ref     : (1, C)      end transition scores   (constraint-masked)
    loss_ref    : (TB, 1)     output loss per sample
    alpha_ref   : (2*TB, C)   scratch alpha -- rows [0:TB] supervised,
                              rows [TB:2TB] unsupervised; persists across the
                              sequential token-block grid axis.
    """
    g = pl.program_id(1)                       # token-block index (sequential)
    TT = em_ref.shape[0]
    TB = em_ref.shape[1]

    # --- hoist loop-invariant loads / broadcasts out of the token loop -------
    trans_t_b = trans_t_ref[...][None, :, :]               # (1, Cj, Ci)
    lens = len_ref[...]                                     # (TB, 1) int32
    lens2 = jnp.concatenate([lens, lens], axis=0)           # (2*TB, 1)
    start = start_ref[...]                                  # (1, C)

    def bi_emissions(tt):
        em = em_ref[tt]                                     # (TB, C)
        tgt = tgt_ref[tt]                                   # (TB, C)
        sup = jnp.where(tgt > 0.5, em, IMPOSSIBLE)          # masked_fill(~target)
        return jnp.concatenate([sup, em], axis=0)           # (2*TB, C)

    @pl.when(g == 0)
    def _init():
        # out[0] = bi_emissions[0] + start_transitions
        alpha_ref[...] = bi_emissions(0) + start

    def body(tt, carry):
        t = g * TT + tt
        bi_em = bi_emissions(tt)                            # (2*TB, C)
        alpha = alpha_ref[...]                              # (2*TB, C)
        # logsumexp_reduce: res[r, j] = logsumexp_i( alpha[r, i] + trans[i, j] )
        scores = alpha[:, None, :] + trans_t_b              # (2*TB, Cj, Ci)
        m = jnp.max(scores, axis=-1, keepdims=True)
        res = m[..., 0] + jnp.log(jnp.sum(jnp.exp(scores - m), axis=-1))
        new_alpha = res + bi_em
        # Freeze alpha once past a sample's last valid token (and at t == 0,
        # which was written by _init); padded tokens (t >= T) are frozen too.
        upd = jnp.logical_and(t > 0, t < lens2)             # (2*TB, 1)
        alpha_ref[...] = jnp.where(upd, new_alpha, alpha)
        return carry

    lax.fori_loop(0, TT, body, 0, unroll=True)

    @pl.when(g == pl.num_programs(1) - 1)
    def _finalize():
        last = alpha_ref[...] + end_ref[...]                # (2*TB, C)
        m = jnp.max(last, axis=-1, keepdims=True)
        z = m + jnp.log(jnp.sum(jnp.exp(last - m), axis=-1, keepdims=True))
        # loss = -(supervised_z - unsupervised_z)
        loss_ref[...] = -(z[:TB] - z[TB:])                  # (TB, 1)


def crf_forward_pallas(emissions, target, lengths, transitions,
                       start_transitions, end_transitions, *, token_block=8):
    """emissions: (B, T, C) f32; target: (B, T, C) bool; lengths: (B,) int32.

    token_block (TT) sizes the per-grid-step token slab; pick larger values for
    long sequences (budget 2 inputs x 2 pipeline buffers x TT*B*C*4 bytes of
    VMEM; halve it on v7x, which has 64 MiB VMEM vs 128 MiB on v5e/v6e).
    """
    B, T, C = emissions.shape
    TT = token_block
    T_pad = pl.cdiv(T, TT) * TT
    TB = B  # batch tile; must equal B or be a multiple of 8 that divides B.

    # Time-major layout: tokens on the grid axis, batch on sublanes, tags on lanes.
    em_tm = jnp.transpose(emissions, (1, 0, 2)).astype(jnp.float32)   # (T, B, C)
    tgt_tm = jnp.transpose(target.astype(jnp.float32), (1, 0, 2))     # (T, B, C)
    if T_pad != T:
        pad = ((0, T_pad - T), (0, 0), (0, 0))
        em_tm = jnp.pad(em_tm, pad)                    # padded tokens are frozen
        tgt_tm = jnp.pad(tgt_tm, pad, constant_values=1.0)
    lens = lengths.astype(jnp.int32).reshape(B, 1)
    trans_t = jnp.transpose(transitions).astype(jnp.float32)          # (C, C)
    start_2d = start_transitions.astype(jnp.float32).reshape(1, C)
    end_2d = end_transitions.astype(jnp.float32).reshape(1, C)

    grid = (B // TB, T_pad // TT)
    grid_spec = pltpu.PrefetchScalarGridSpec(
        num_scalar_prefetch=0,
        grid=grid,
        in_specs=[
            pl.BlockSpec((TT, TB, C), lambda b, g: (g, b, 0)),   # emissions slab
            pl.BlockSpec((TT, TB, C), lambda b, g: (g, b, 0)),   # target slab
            pl.BlockSpec((TB, 1), lambda b, g: (b, 0)),          # lengths
            pl.BlockSpec((C, C), lambda b, g: (0, 0)),           # transitions^T
            pl.BlockSpec((1, C), lambda b, g: (0, 0)),           # start transitions
            pl.BlockSpec((1, C), lambda b, g: (0, 0)),           # end transitions
        ],
        out_specs=pl.BlockSpec((TB, 1), lambda b, g: (b, 0)),
        scratch_shapes=[pltpu.VMEM((2 * TB, C), jnp.float32)],   # alpha
    )

    loss = pl.pallas_call(
        _crf_fwd_kernel,
        out_shape=jax.ShapeDtypeStruct((B, 1), jnp.float32),
        grid_spec=grid_spec,
        compiler_params=pltpu.CompilerParams(
            dimension_semantics=("parallel", "arbitrary")),
    )(em_tm, tgt_tm, lens, trans_t, start_2d, end_2d)

    return loss[:, 0]   # (B,)


def crf_forward_reference(emissions, target, lengths, transitions,
                          start_transitions, end_transitions):
    """Pure-JAX reference mirroring LinearChainCRF.forward."""
    B, T, C = emissions.shape
    sup = jnp.where(target, emissions, IMPOSSIBLE)
    bi = jnp.stack([sup, emissions], axis=0)                 # (2, B, T, C)
    alpha = bi[:, :, 0, :] + start_transitions               # (2, B, C)
    final = jnp.where((lengths - 1 == 0)[None, :, None], alpha, jnp.zeros_like(alpha))
    for t in range(1, T):
        scores = alpha[:, :, :, None] + transitions[None, None, :, :]   # (2,B,Ci,Cj)
        res = jax.scipy.special.logsumexp(scores, axis=2)
        alpha = res + bi[:, :, t, :]
        final = jnp.where((lengths - 1 == t)[None, :, None], alpha, final)
    last = final + end_transitions
    z = jax.scipy.special.logsumexp(last, axis=-1)           # (2, B)
    return -(z[0] - z[1])


if __name__ == "__main__":
    B, T, C = 4, 6, 8   # n_samples, n_tokens, n_tags
    key = jax.random.PRNGKey(0)
    k_em, k_fb, k_sfb, k_efb, k_tr, k_str, k_etr, k_tag = jax.random.split(key, 8)

    # --- deterministic "module parameters / buffers" (shapes from __init__) ---
    forbidden_transitions = jax.random.uniform(k_fb, (C, C)) < 0.3          # (C, C) bool
    start_forbidden = jax.random.uniform(k_sfb, (C,)) < 0.2                 # (C,) bool
    end_forbidden = jax.random.uniform(k_efb, (C,)) < 0.2                   # (C,) bool
    # __init__ zero-inits the learnable transitions; use small deterministic
    # values instead so the test exercises nontrivial math.
    transitions_param = 0.1 * jax.random.normal(k_tr, (C, C), jnp.float32)
    start_param = 0.1 * jax.random.normal(k_str, (C,), jnp.float32)
    end_param = 0.1 * jax.random.normal(k_etr, (C,), jnp.float32)

    # forward()'s constraint masking (with_start_end_transitions=True)
    transitions = jnp.where(forbidden_transitions, IMPOSSIBLE, transitions_param)
    start_transitions = jnp.where(start_forbidden, IMPOSSIBLE, start_param)
    end_transitions = jnp.where(end_forbidden, IMPOSSIBLE, end_param)

    # --- inputs ---
    emissions = jax.random.normal(k_em, (B, T, C), jnp.float32)
    lengths = jnp.array([6, 3, 1, 5], dtype=jnp.int32)       # all >= 1
    # 1-hot target tags (multi-hot allowed in general; one-hot here)
    tag_ids = jax.random.randint(k_tag, (B, T), 0, C)
    target = jax.nn.one_hot(tag_ids, C, dtype=jnp.float32) > 0.5            # bool (B,T,C)

    loss = crf_forward_pallas(emissions, target, lengths, transitions,
                              start_transitions, end_transitions)
    loss = jax.block_until_ready(loss)

    ref = crf_forward_reference(emissions, target, lengths, transitions,
                                start_transitions, end_transitions)
    assert loss.shape == (B,)
    assert jnp.allclose(loss, ref, rtol=1e-5, atol=5e-2), (loss, ref)

    print("KERNEL_OK")
</pallas_src>

<mosaic_0001>
module attributes {stable_mosaic.version = 11 : i64} {
  func.func @_crf_fwd_kernel(%arg0: i32, %arg1: i32, %arg2: memref<8x4x8xf32, #tpu.memory_space<vmem>>, %arg3: memref<8x4x8xf32, #tpu.memory_space<vmem>>, %arg4: memref<4x1xi32, #tpu.memory_space<vmem>>, %arg5: memref<8x8xf32, #tpu.memory_space<vmem>>, %arg6: memref<1x8xf32, #tpu.memory_space<vmem>>, %arg7: memref<1x8xf32, #tpu.memory_space<vmem>>, %arg8: memref<4x1xf32, #tpu.memory_space<vmem>>, %arg9: memref<8x8xf32, #tpu.memory_space<vmem>>) attributes {dimension_semantics = [#tpu.dimension_semantics<parallel>, #tpu.dimension_semantics<arbitrary>], iteration_bounds = array<i64: 1, 1>, scalar_prefetch = 0 : i64, scratch_operands = 1 : i64, tpu.core_type = #tpu.core_type<tc>, window_params = [{transform_indices = @transform_0, window_bounds = array<i64: 8, 4, 8>}, {transform_indices = @transform_1, window_bounds = array<i64: 8, 4, 8>}, {transform_indices = @transform_2, window_bounds = array<i64: 4, 1>}, {pipeline_mode = #tpu.pipeline_mode<synchronous>, transform_indices = @transform_3, window_bounds = array<i64: 8, 8>}, {pipeline_mode = #tpu.pipeline_mode<synchronous>, transform_indices = @transform_4, window_bounds = array<i64: 1, 8>}, {pipeline_mode = #tpu.pipeline_mode<synchronous>, transform_indices = @transform_5, window_bounds = array<i64: 1, 8>}, {transform_indices = @transform_6, window_bounds = array<i64: 4, 1>}]} {
    %c0 = arith.constant 0 : index
    %c0_0 = arith.constant 0 : index
    %0 = vector.load %arg5[%c0, %c0_0] : memref<8x8xf32, #tpu.memory_space<vmem>>, vector<8x8xf32>
    %1 = vector.shape_cast %0 : vector<8x8xf32> to vector<1x8x8xf32>
    %c0_1 = arith.constant 0 : index
    %c0_2 = arith.constant 0 : index
    %2 = vector.load %arg4[%c0_1, %c0_2] : memref<4x1xi32, #tpu.memory_space<vmem>>, vector<4x1xi32>
    %3 = tpu.concatenate %2, %2 in 0 : vector<4x1xi32>, vector<4x1xi32> -> vector<8x1xi32>
    %c0_3 = arith.constant 0 : index
    %c0_4 = arith.constant 0 : index
    %4 = vector.load %arg6[%c0_3, %c0_4] : memref<1x8xf32, #tpu.memory_space<vmem>>, vector<1x8xf32>
    %c0_i32 = arith.constant 0 : i32
    %5 = arith.cmpi eq, %arg1, %c0_i32 : i32
    %6 = arith.extui %5 : i1 to i32
    %c0_i32_5 = arith.constant 0 : i32
    %7 = arith.cmpi ne, %6, %c0_i32_5 : i32
    scf.if %7 {
      %c0_120 = arith.constant 0 : index
      %c0_121 = arith.constant 0 : index
      %c0_122 = arith.constant 0 : index
      %307 = vector.load %arg2[%c0_120, %c0_121, %c0_122] : memref<8x4x8xf32, #tpu.memory_space<vmem>>, vector<1x4x8xf32>
      %308 = vector.shape_cast %307 : vector<1x4x8xf32> to vector<4x8xf32>
      %c0_123 = arith.constant 0 : index
      %c0_124 = arith.constant 0 : index
      %c0_125 = arith.constant 0 : index
      %309 = vector.load %arg3[%c0_123, %c0_124, %c0_125] : memref<8x4x8xf32, #tpu.memory_space<vmem>>, vector<1x4x8xf32>
      %310 = vector.shape_cast %309 : vector<1x4x8xf32> to vector<4x8xf32>
      %cst_126 = arith.constant 5.000000e-01 : f32
      %311 = vector.broadcast %cst_126 : f32 to vector<4x8xf32>
      %312 = arith.cmpf ogt, %310, %311 : vector<4x8xf32>
      %cst_127 = arith.constant -1.000000e+04 : f32
      %313 = vector.broadcast %cst_127 : f32 to vector<4x8xf32>
      %314 = arith.select %312, %308, %313 : vector<4x8xi1>, vector<4x8xf32>
      %315 = tpu.concatenate %314, %308 in 0 : vector<4x8xf32>, vector<4x8xf32> -> vector<8x8xf32>
      %316 = vector.broadcast %4 : vector<1x8xf32> to vector<8x8xf32>
      %317 = arith.addf %315, %316 : vector<8x8xf32>
      %c0_128 = arith.constant 0 : index
      %c0_129 = arith.constant 0 : index
      %318 = vector.load %arg9[%c0_128, %c0_129] : memref<8x8xf32, #tpu.memory_space<vmem>>, vector<8x8xf32>
      tpu.vector_store %arg9[%c0_128, %c0_129], %317 {strides = array<i32>} : memref<8x8xf32, #tpu.memory_space<vmem>>, vector<8x8xf32>,
    } else {
    }
    %c0_i32_6 = arith.constant 0 : i32
    %c8_i32 = arith.constant 8 : i32
    %8 = arith.muli %arg1, %c8_i32 : i32
    %9 = arith.addi %8, %c0_i32_6 : i32
    %10 = arith.index_cast %c0_i32_6 : i32 to index
    %c0_7 = arith.constant 0 : index
    %c0_8 = arith.constant 0 : index
    %11 = vector.load %arg2[%10, %c0_7, %c0_8] : memref<8x4x8xf32, #tpu.memory_space<vmem>>, vector<1x4x8xf32>
    %12 = vector.shape_cast %11 : vector<1x4x8xf32> to vector<4x8xf32>
    %13 = arith.index_cast %c0_i32_6 : i32 to index
    %c0_9 = arith.constant 0 : index
    %c0_10 = arith.constant 0 : index
    %14 = vector.load %arg3[%13, %c0_9, %c0_10] : memref<8x4x8xf32, #tpu.memory_space<vmem>>, vector<1x4x8xf32>
    %15 = vector.shape_cast %14 : vector<1x4x8xf32> to vector<4x8xf32>
    %cst = arith.constant 5.000000e-01 : f32
    %16 = vector.broadcast %cst : f32 to vector<4x8xf32>
    %17 = arith.cmpf ogt, %15, %16 : vector<4x8xf32>
    %cst_11 = arith.constant -1.000000e+04 : f32
    %18 = vector.broadcast %cst_11 : f32 to vector<4x8xf32>
    %19 = arith.select %17, %12, %18 : vector<4x8xi1>, vector<4x8xf32>
    %20 = tpu.concatenate %19, %12 in 0 : vector<4x8xf32>, vector<4x8xf32> -> vector<8x8xf32>
    %c0_12 = arith.constant 0 : index
    %c0_13 = arith.constant 0 : index
    %21 = vector.load %arg9[%c0_12, %c0_13] : memref<8x8xf32, #tpu.memory_space<vmem>>, vector<8x8xf32>
    %22 = vector.shape_cast %21 : vector<8x8xf32> to vector<8x1x8xf32>
    %23 = vector.broadcast %22 : vector<8x1x8xf32> to vector<8x8x8xf32>
    %24 = vector.broadcast %1 : vector<1x8x8xf32> to vector<8x8x8xf32>
    %25 = arith.addf %23, %24 : vector<8x8x8xf32>
    %cst_14 = arith.constant dense<0xFF800000> : vector<8x8xf32>
    %26 = vector.multi_reduction <maximumf>, %25, %cst_14 [2] : vector<8x8x8xf32> to vector<8x8xf32>
    %27 = vector.shape_cast %26 : vector<8x8xf32> to vector<8x8x1xf32>
    %28 = vector.shape_cast %27 : vector<8x8x1xf32> to vector<8x8xf32>
    %29 = vector.broadcast %27 : vector<8x8x1xf32> to vector<8x8x8xf32>
    %30 = arith.subf %25, %29 : vector<8x8x8xf32>
    %31 = math.exp %30 : vector<8x8x8xf32>
    %cst_15 = arith.constant dense<0.000000e+00> : vector<8x8xf32>
    %32 = vector.multi_reduction <add>, %31, %cst_15 [2] : vector<8x8x8xf32> to vector<8x8xf32>
    %33 = math.log %32 : vector<8x8xf32>
    %34 = arith.addf %28, %33 : vector<8x8xf32>
    %35 = arith.addf %34, %20 : vector<8x8xf32>
    %c0_i32_16 = arith.constant 0 : i32
    %36 = arith.cmpi sgt, %9, %c0_i32_16 : i32
    %37 = vector.broadcast %9 : i32 to vector<8x1xi32>
    %38 = arith.cmpi slt, %37, %3 : vector<8x1xi32>
    %39 = vector.broadcast %36 : i1 to vector<8x1xi1>
    %40 = arith.andi %39, %38 : vector<8x1xi1>
    %41 = vector.shape_cast %40 : vector<8x1xi1> to vector<8x1xi1>
    %42 = vector.broadcast %41 : vector<8x1xi1> to vector<8x8xi1>
    %43 = arith.select %42, %35, %21 : vector<8x8xi1>, vector<8x8xf32>
    %c0_17 = arith.constant 0 : index
    %c0_18 = arith.constant 0 : index
    %44 = vector.load %arg9[%c0_17, %c0_18] : memref<8x8xf32, #tpu.memory_space<vmem>>, vector<8x8xf32>
    tpu.vector_store %arg9[%c0_17, %c0_18], %43 {strides = array<i32>} : memref<8x8xf32, #tpu.memory_space<vmem>>, vector<8x8xf32>,
    %c1_i32 = arith.constant 1 : i32
    %c8_i32_19 = arith.constant 8 : i32
    %45 = arith.muli %arg1, %c8_i32_19 : i32
    %46 = arith.addi %45, %c1_i32 : i32
    %47 = arith.index_cast %c1_i32 : i32 to index
    %c0_20 = arith.constant 0 : index
    %c0_21 = arith.constant 0 : index
    %48 = vector.load %arg2[%47, %c0_20, %c0_21] : memref<8x4x8xf32, #tpu.memory_space<vmem>>, vector<1x4x8xf32>
    %49 = vector.shape_cast %48 : vector<1x4x8xf32> to vector<4x8xf32>
    %50 = arith.index_cast %c1_i32 : i32 to index
    %c0_22 = arith.constant 0 : index
    %c0_23 = arith.constant 0 : index
    %51 = vector.load %arg3[%50, %c0_22, %c0_23] : memref<8x4x8xf32, #tpu.memory_space<vmem>>, vector<1x4x8xf32>
    %52 = vector.shape_cast %51 : vector<1x4x8xf32> to vector<4x8xf32>
    %cst_24 = arith.constant 5.000000e-01 : f32
    %53 = vector.broadcast %cst_24 : f32 to vector<4x8xf32>
    %54 = arith.cmpf ogt, %52, %53 : vector<4x8xf32>
    %cst_25 = arith.constant -1.000000e+04 : f32
    %55 = vector.broadcast %cst_25 : f32 to vector<4x8xf32>
    %56 = arith.select %54, %49, %55 : vector<4x8xi1>, vector<4x8xf32>
    %57 = tpu.concatenate %56, %49 in 0 : vector<4x8xf32>, vector<4x8xf32> -> vector<8x8xf32>
    %c0_26 = arith.constant 0 : index
    %c0_27 = arith.constant 0 : index
    %58 = vector.load %arg9[%c0_26, %c0_27] : memref<8x8xf32, #tpu.memory_space<vmem>>, vector<8x8xf32>
    %59 = vector.shape_cast %58 : vector<8x8xf32> to vector<8x1x8xf32>
    %60 = vector.broadcast %59 : vector<8x1x8xf32> to vector<8x8x8xf32>
    %61 = vector.broadcast %1 : vector<1x8x8xf32> to vector<8x8x8xf32>
    %62 = arith.addf %60, %61 : vector<8x8x8xf32>
    %cst_28 = arith.constant dense<0xFF800000> : vector<8x8xf32>
    %63 = vector.multi_reduction <maximumf>, %62, %cst_28 [2] : vector<8x8x8xf32> to vector<8x8xf32>
    %64 = vector.shape_cast %63 : vector<8x8xf32> to vector<8x8x1xf32>
    %65 = vector.shape_cast %64 : vector<8x8x1xf32> to vector<8x8xf32>
    %66 = vector.broadcast %64 : vector<8x8x1xf32> to vector<8x8x8xf32>
    %67 = arith.subf %62, %66 : vector<8x8x8xf32>
    %68 = math.exp %67 : vector<8x8x8xf32>
    %cst_29 = arith.constant dense<0.000000e+00> : vector<8x8xf32>
    %69 = vector.multi_reduction <add>, %68, %cst_29 [2] : vector<8x8x8xf32> to vector<8x8xf32>
    %70 = math.log %69 : vector<8x8xf32>
    %71 = arith.addf %65, %70 : vector<8x8xf32>
    %72 = arith.addf %71, %57 : vector<8x8xf32>
    %c0_i32_30 = arith.constant 0 : i32
    %73 = arith.cmpi sgt, %46, %c0_i32_30 : i32
    %74 = vector.broadcast %46 : i32 to vector<8x1xi32>
    %75 = arith.cmpi slt, %74, %3 : vector<8x1xi32>
    %76 = vector.broadcast %73 : i1 to vector<8x1xi1>
    %77 = arith.andi %76, %75 : vector<8x1xi1>
    %78 = vector.shape_cast %77 : vector<8x1xi1> to vector<8x1xi1>
    %79 = vector.broadcast %78 : vector<8x1xi1> to vector<8x8xi1>
    %80 = arith.select %79, %72, %58 : vector<8x8xi1>, vector<8x8xf32>
    %c0_31 = arith.constant 0 : index
    %c0_32 = arith.constant 0 : index
    %81 = vector.load %arg9[%c0_31, %c0_32] : memref<8x8xf32, #tpu.memory_space<vmem>>, vector<8x8xf32>
    tpu.vector_store %arg9[%c0_31, %c0_32], %80 {strides = array<i32>} : memref<8x8xf32, #tpu.memory_space<vmem>>, vector<8x8xf32>,
    %c2_i32 = arith.constant 2 : i32
    %c8_i32_33 = arith.constant 8 : i32
    %82 = arith.muli %arg1, %c8_i32_33 : i32
    %83 = arith.addi %82, %c2_i32 : i32
    %84 = arith.index_cast %c2_i32 : i32 to index
    %c0_34 = arith.constant 0 : index
    %c0_35 = arith.constant 0 : index
    %85 = vector.load %arg2[%84, %c0_34, %c0_35] : memref<8x4x8xf32, #tpu.memory_space<vmem>>, vector<1x4x8xf32>
    %86 = vector.shape_cast %85 : vector<1x4x8xf32> to vector<4x8xf32>
    %87 = arith.index_cast %c2_i32 : i32 to index
    %c0_36 = arith.constant 0 : index
    %c0_37 = arith.constant 0 : index
    %88 = vector.load %arg3[%87, %c0_36, %c0_37] : memref<8x4x8xf32, #tpu.memory_space<vmem>>, vector<1x4x8xf32>
    %89 = vector.shape_cast %88 : vector<1x4x8xf32> to vector<4x8xf32>
    %cst_38 = arith.constant 5.000000e-01 : f32
    %90 = vector.broadcast %cst_38 : f32 to vector<4x8xf32>
    %91 = arith.cmpf ogt, %89, %90 : vector<4x8xf32>
    %cst_39 = arith.constant -1.000000e+04 : f32
    %92 = vector.broadcast %cst_39 : f32 to vector<4x8xf32>
    %93 = arith.select %91, %86, %92 : vector<4x8xi1>, vector<4x8xf32>
    %94 = tpu.concatenate %93, %86 in 0 : vector<4x8xf32>, vector<4x8xf32> -> vector<8x8xf32>
    %c0_40 = arith.constant 0 : index
    %c0_41 = arith.constant 0 : index
    %95 = vector.load %arg9[%c0_40, %c0_41] : memref<8x8xf32, #tpu.memory_space<vmem>>, vector<8x8xf32>
    %96 = vector.shape_cast %95 : vector<8x8xf32> to vector<8x1x8xf32>
    %97 = vector.broadcast %96 : vector<8x1x8xf32> to vector<8x8x8xf32>
    %98 = vector.broadcast %1 : vector<1x8x8xf32> to vector<8x8x8xf32>
    %99 = arith.addf %97, %98 : vector<8x8x8xf32>
    %cst_42 = arith.constant dense<0xFF800000> : vector<8x8xf32>
    %100 = vector.multi_reduction <maximumf>, %99, %cst_42 [2] : vector<8x8x8xf32> to vector<8x8xf32>
    %101 = vector.shape_cast %100 : vector<8x8xf32> to vector<8x8x1xf32>
    %102 = vector.shape_cast %101 : vector<8x8x1xf32> to vector<8x8xf32>
    %103 = vector.broadcast %101 : vector<8x8x1xf32> to vector<8x8x8xf32>
    %104 = arith.subf %99, %103 : vector<8x8x8xf32>
    %105 = math.exp %104 : vector<8x8x8xf32>
    %cst_43 = arith.constant dense<0.000000e+00> : vector<8x8xf32>
    %106 = vector.multi_reduction <add>, %105, %cst_43 [2] : vector<8x8x8xf32> to vector<8x8xf32>
    %107 = math.log %106 : vector<8x8xf32>
    %108 = arith.addf %102, %107 : vector<8x8xf32>
    %109 = arith.addf %108, %94 : vector<8x8xf32>
    %c0_i32_44 = arith.constant 0 : i32
    %110 = arith.cmpi sgt, %83, %c0_i32_44 : i32
    %111 = vector.broadcast %83 : i32 to vector<8x1xi32>
    %112 = arith.cmpi slt, %111, %3 : vector<8x1xi32>
    %113 = vector.broadcast %110 : i1 to vector<8x1xi1>
    %114 = arith.andi %113, %112 : vector<8x1xi1>
    %115 = vector.shape_cast %114 : vector<8x1xi1> to vector<8x1xi1>
    %116 = vector.broadcast %115 : vector<8x1xi1> to vector<8x8xi1>
    %117 = arith.select %116, %109, %95 : vector<8x8xi1>, vector<8x8xf32>
    %c0_45 = arith.constant 0 : index
    %c0_46 = arith.constant 0 : index
    %118 = vector.load %arg9[%c0_45, %c0_46] : memref<8x8xf32, #tpu.memory_space<vmem>>, vector<8x8xf32>
    tpu.vector_store %arg9[%c0_45, %c0_46], %117 {strides = array<i32>} : memref<8x8xf32, #tpu.memory_space<vmem>>, vector<8x8xf32>,
    %c3_i32 = arith.constant 3 : i32
    %c8_i32_47 = arith.constant 8 : i32
    %119 = arith.muli %arg1, %c8_i32_47 : i32
    %120 = arith.addi %119, %c3_i32 : i32
    %121 = arith.index_cast %c3_i32 : i32 to index
    %c0_48 = arith.constant 0 : index
    %c0_49 = arith.constant 0 : index
    %122 = vector.load %arg2[%121, %c0_48, %c0_49] : memref<8x4x8xf32, #tpu.memory_space<vmem>>, vector<1x4x8xf32>
    %123 = vector.shape_cast %122 : vector<1x4x8xf32> to vector<4x8xf32>
    %124 = arith.index_cast %c3_i32 : i32 to index
    %c0_50 = arith.constant 0 : index
    %c0_51 = arith.constant 0 : index
    %125 = vector.load %arg3[%124, %c0_50, %c0_51] : memref<8x4x8xf32, #tpu.memory_space<vmem>>, vector<1x4x8xf32>
    %126 = vector.shape_cast %125 : vector<1x4x8xf32> to vector<4x8xf32>
    %cst_52 = arith.constant 5.000000e-01 : f32
    %127 = vector.broadcast %cst_52 : f32 to vector<4x8xf32>
    %128 = arith.cmpf ogt, %126, %127 : vector<4x8xf32>
    %cst_53 = arith.constant -1.000000e+04 : f32
    %129 = vector.broadcast %cst_53 : f32 to vector<4x8xf32>
    %130 = arith.select %128, %123, %129 : vector<4x8xi1>, vector<4x8xf32>
    %131 = tpu.concatenate %130, %123 in 0 : vector<4x8xf32>, vector<4x8xf32> -> vector<8x8xf32>
    %c0_54 = arith.constant 0 : index
    %c0_55 = arith.constant 0 : index
    %132 = vector.load %arg9[%c0_54, %c0_55] : memref<8x8xf32, #tpu.memory_space<vmem>>, vector<8x8xf32>
    %133 = vector.shape_cast %132 : vector<8x8xf32> to vector<8x1x8xf32>
    %134 = vector.broadcast %133 : vector<8x1x8xf32> to vector<8x8x8xf32>
    %135 = vector.broadcast %1 : vector<1x8x8xf32> to vector<8x8x8xf32>
    %136 = arith.addf %134, %135 : vector<8x8x8xf32>
    %cst_56 = arith.constant dense<0xFF800000> : vector<8x8xf32>
    %137 = vector.multi_reduction <maximumf>, %136, %cst_56 [2] : vector<8x8x8xf32> to vector<8x8xf32>
    %138 = vector.shape_cast %137 : vector<8x8xf32> to vector<8x8x1xf32>
    %139 = vector.shape_cast %138 : vector<8x8x1xf32> to vector<8x8xf32>
    %140 = vector.broadcast %138 : vector<8x8x1xf32> to vector<8x8x8xf32>
    %141 = arith.subf %136, %140 : vector<8x8x8xf32>
    %142 = math.exp %141 : vector<8x8x8xf32>
    %cst_57 = arith.constant dense<0.000000e+00> : vector<8x8xf32>
    %143 = vector.multi_reduction <add>, %142, %cst_57 [2] : vector<8x8x8xf32> to vector<8x8xf32>
    %144 = math.log %143 : vector<8x8xf32>
    %145 = arith.addf %139, %144 : vector<8x8xf32>
    %146 = arith.addf %145, %131 : vector<8x8xf32>
    %c0_i32_58 = arith.constant 0 : i32
    %147 = arith.cmpi sgt, %120, %c0_i32_58 : i32
    %148 = vector.broadcast %120 : i32 to vector<8x1xi32>
    %149 = arith.cmpi slt, %148, %3 : vector<8x1xi32>
    %150 = vector.broadcast %147 : i1 to vector<8x1xi1>
    %151 = arith.andi %150, %149 : vector<8x1xi1>
    %152 = vector.shape_cast %151 : vector<8x1xi1> to vector<8x1xi1>
    %153 = vector.broadcast %152 : vector<8x1xi1> to vector<8x8xi1>
    %154 = arith.select %153, %146, %132 : vector<8x8xi1>, vector<8x8xf32>
    %c0_59 = arith.constant 0 : index
    %c0_60 = arith.constant 0 : index
    %155 = vector.load %arg9[%c0_59, %c0_60] : memref<8x8xf32, #tpu.memory_space<vmem>>, vector<8x8xf32>
    tpu.vector_store %arg9[%c0_59, %c0_60], %154 {strides = array<i32>} : memref<8x8xf32, #tpu.memory_space<vmem>>, vector<8x8xf32>,
    %c4_i32 = arith.constant 4 : i32
    %c8_i32_61 = arith.constant 8 : i32
    %156 = arith.muli %arg1, %c8_i32_61 : i32
    %157 = arith.addi %156, %c4_i32 : i32
    %158 = arith.index_cast %c4_i32 : i32 to index
    %c0_62 = arith.constant 0 : index
    %c0_63 = arith.constant 0 : index
    %159 = vector.load %arg2[%158, %c0_62, %c0_63] : memref<8x4x8xf32, #tpu.memory_space<vmem>>, vector<1x4x8xf32>
    %160 = vector.shape_cast %159 : vector<1x4x8xf32> to vector<4x8xf32>
    %161 = arith.index_cast %c4_i32 : i32 to index
    %c0_64 = arith.constant 0 : index
    %c0_65 = arith.constant 0 : index
    %162 = vector.load %arg3[%161, %c0_64, %c0_65] : memref<8x4x8xf32, #tpu.memory_space<vmem>>, vector<1x4x8xf32>
    %163 = vector.shape_cast %162 : vector<1x4x8xf32> to vector<4x8xf32>
    %cst_66 = arith.constant 5.000000e-01 : f32
    %164 = vector.broadcast %cst_66 : f32 to vector<4x8xf32>
    %165 = arith.cmpf ogt, %163, %164 : vector<4x8xf32>
    %cst_67 = arith.constant -1.000000e+04 : f32
    %166 = vector.broadcast %cst_67 : f32 to vector<4x8xf32>
    %167 = arith.select %165, %160, %166 : vector<4x8xi1>, vector<4x8xf32>
    %168 = tpu.concatenate %167, %160 in 0 : vector<4x8xf32>, vector<4x8xf32> -> vector<8x8xf32>
    %c0_68 = arith.constant 0 : index
    %c0_69 = arith.constant 0 : index
    %169 = vector.load %arg9[%c0_68, %c0_69] : memref<8x8xf32, #tpu.memory_space<vmem>>, vector<8x8xf32>
    %170 = vector.shape_cast %169 : vector<8x8xf32> to vector<8x1x8xf32>
    %171 = vector.broadcast %170 : vector<8x1x8xf32> to vector<8x8x8xf32>
    %172 = vector.broadcast %1 : vector<1x8x8xf32> to vector<8x8x8xf32>
    %173 = arith.addf %171, %172 : vector<8x8x8xf32>
    %cst_70 = arith.constant dense<0xFF800000> : vector<8x8xf32>
    %174 = vector.multi_reduction <maximumf>, %173, %cst_70 [2] : vector<8x8x8xf32> to vector<8x8xf32>
    %175 = vector.shape_cast %174 : vector<8x8xf32> to vector<8x8x1xf32>
    %176 = vector.shape_cast %175 : vector<8x8x1xf32> to vector<8x8xf32>
    %177 = vector.broadcast %175 : vector<8x8x1xf32> to vector<8x8x8xf32>
    %178 = arith.subf %173, %177 : vector<8x8x8xf32>
    %179 = math.exp %178 : vector<8x8x8xf32>
    %cst_71 = arith.constant dense<0.000000e+00> : vector<8x8xf32>
    %180 = vector.multi_reduction <add>, %179, %cst_71 [2] : vector<8x8x8xf32> to vector<8x8xf32>
    %181 = math.log %180 : vector<8x8xf32>
    %182 = arith.addf %176, %181 : vector<8x8xf32>
    %183 = arith.addf %182, %168 : vector<8x8xf32>
    %c0_i32_72 = arith.constant 0 : i32
    %184 = arith.cmpi sgt, %157, %c0_i32_72 : i32
    %185 = vector.broadcast %157 : i32 to vector<8x1xi32>
    %186 = arith.cmpi slt, %185, %3 : vector<8x1xi32>
    %187 = vector.broadcast %184 : i1 to vector<8x1xi1>
    %188 = arith.andi %187, %186 : vector<8x1xi1>
    %189 = vector.shape_cast %188 : vector<8x1xi1> to vector<8x1xi1>
    %190 = vector.broadcast %189 : vector<8x1xi1> to vector<8x8xi1>
    %191 = arith.select %190, %183, %169 : vector<8x8xi1>, vector<8x8xf32>
    %c0_73 = arith.constant 0 : index
    %c0_74 = arith.constant 0 : index
    %192 = vector.load %arg9[%c0_73, %c0_74] : memref<8x8xf32, #tpu.memory_space<vmem>>, vector<8x8xf32>
    tpu.vector_store %arg9[%c0_73, %c0_74], %191 {strides = array<i32>} : memref<8x8xf32, #tpu.memory_space<vmem>>, vector<8x8xf32>,
    %c5_i32 = arith.constant 5 : i32
    %c8_i32_75 = arith.constant 8 : i32
    %193 = arith.muli %arg1, %c8_i32_75 : i32
    %194 = arith.addi %193, %c5_i32 : i32
    %195 = arith.index_cast %c5_i32 : i32 to index
    %c0_76 = arith.constant 0 : index
    %c0_77 = arith.constant 0 : index
    %196 = vector.load %arg2[%195, %c0_76, %c0_77] : memref<8x4x8xf32, #tpu.memory_space<vmem>>, vector<1x4x8xf32>
    %197 = vector.shape_cast %196 : vector<1x4x8xf32> to vector<4x8xf32>
    %198 = arith.index_cast %c5_i32 : i32 to index
    %c0_78 = arith.constant 0 : index
    %c0_79 = arith.constant 0 : index
    %199 = vector.load %arg3[%198, %c0_78, %c0_79] : memref<8x4x8xf32, #tpu.memory_space<vmem>>, vector<1x4x8xf32>
    %200 = vector.shape_cast %199 : vector<1x4x8xf32> to vector<4x8xf32>
    %cst_80 = arith.constant 5.000000e-01 : f32
    %201 = vector.broadcast %cst_80 : f32 to vector<4x8xf32>
    %202 = arith.cmpf ogt, %200, %201 : vector<4x8xf32>
    %cst_81 = arith.constant -1.000000e+04 : f32
    %203 = vector.broadcast %cst_81 : f32 to vector<4x8xf32>
    %204 = arith.select %202, %197, %203 : vector<4x8xi1>, vector<4x8xf32>
    %205 = tpu.concatenate %204, %197 in 0 : vector<4x8xf32>, vector<4x8xf32> -> vector<8x8xf32>
    %c0_82 = arith.constant 0 : index
    %c0_83 = arith.constant 0 : index
    %206 = vector.load %arg9[%c0_82, %c0_83] : memref<8x8xf32, #tpu.memory_space<vmem>>, vector<8x8xf32>
    %207 = vector.shape_cast %206 : vector<8x8xf32> to vector<8x1x8xf32>
    %208 = vector.broadcast %207 : vector<8x1x8xf32> to vector<8x8x8xf32>
    %209 = vector.broadcast %1 : vector<1x8x8xf32> to vector<8x8x8xf32>
    %210 = arith.addf %208, %209 : vector<8x8x8xf32>
    %cst_84 = arith.constant dense<0xFF800000> : vector<8x8xf32>
    %211 = vector.multi_reduction <maximumf>, %210, %cst_84 [2] : vector<8x8x8xf32> to vector<8x8xf32>
    %212 = vector.shape_cast %211 : vector<8x8xf32> to vector<8x8x1xf32>
    %213 = vector.shape_cast %212 : vector<8x8x1xf32> to vector<8x8xf32>
    %214 = vector.broadcast %212 : vector<8x8x1xf32> to vector<8x8x8xf32>
    %215 = arith.subf %210, %214 : vector<8x8x8xf32>
    %216 = math.exp %215 : vector<8x8x8xf32>
    %cst_85 = arith.constant dense<0.000000e+00> : vector<8x8xf32>
    %217 = vector.multi_reduction <add>, %216, %cst_85 [2] : vector<8x8x8xf32> to vector<8x8xf32>
    %218 = math.log %217 : vector<8x8xf32>
    %219 = arith.addf %213, %218 : vector<8x8xf32>
    %220 = arith.addf %219, %205 : vector<8x8xf32>
    %c0_i32_86 = arith.constant 0 : i32
    %221 = arith.cmpi sgt, %194, %c0_i32_86 : i32
    %222 = vector.broadcast %194 : i32 to vector<8x1xi32>
    %223 = arith.cmpi slt, %222, %3 : vector<8x1xi32>
    %224 = vector.broadcast %221 : i1 to vector<8x1xi1>
    %225 = arith.andi %224, %223 : vector<8x1xi1>
    %226 = vector.shape_cast %225 : vector<8x1xi1> to vector<8x1xi1>
    %227 = vector.broadcast %226 : vector<8x1xi1> to vector<8x8xi1>
    %228 = arith.select %227, %220, %206 : vector<8x8xi1>, vector<8x8xf32>
    %c0_87 = arith.constant 0 : index
    %c0_88 = arith.constant 0 : index
    %229 = vector.load %arg9[%c0_87, %c0_88] : memref<8x8xf32, #tpu.memory_space<vmem>>, vector<8x8xf32>
    tpu.vector_store %arg9[%c0_87, %c0_88], %228 {strides = array<i32>} : memref<8x8xf32, #tpu.memory_space<vmem>>, vector<8x8xf32>,
    %c6_i32 = arith.constant 6 : i32
    %c8_i32_89 = arith.constant 8 : i32
    %230 = arith.muli %arg1, %c8_i32_89 : i32
    %231 = arith.addi %230, %c6_i32 : i32
    %232 = arith.index_cast %c6_i32 : i32 to index
    %c0_90 = arith.constant 0 : index
    %c0_91 = arith.constant 0 : index
    %233 = vector.load %arg2[%232, %c0_90, %c0_91] : memref<8x4x8xf32, #tpu.memory_space<vmem>>, vector<1x4x8xf32>
    %234 = vector.shape_cast %233 : vector<1x4x8xf32> to vector<4x8xf32>
    %235 = arith.index_cast %c6_i32 : i32 to index
    %c0_92 = arith.constant 0 : index
    %c0_93 = arith.constant 0 : index
    %236 = vector.load %arg3[%235, %c0_92, %c0_93] : memref<8x4x8xf32, #tpu.memory_space<vmem>>, vector<1x4x8xf32>
    %237 = vector.shape_cast %236 : vector<1x4x8xf32> to vector<4x8xf32>
    %cst_94 = arith.constant 5.000000e-01 : f32
    %238 = vector.broadcast %cst_94 : f32 to vector<4x8xf32>
    %239 = arith.cmpf ogt, %237, %238 : vector<4x8xf32>
    %cst_95 = arith.constant -1.000000e+04 : f32
    %240 = vector.broadcast %cst_95 : f32 to vector<4x8xf32>
    %241 = arith.select %239, %234, %240 : vector<4x8xi1>, vector<4x8xf32>
    %242 = tpu.concatenate %241, %234 in 0 : vector<4x8xf32>, vector<4x8xf32> -> vector<8x8xf32>
    %c0_96 = arith.constant 0 : index
    %c0_97 = arith.constant 0 : index
    %243 = vector.load %arg9[%c0_96, %c0_97] : memref<8x8xf32, #tpu.memory_space<vmem>>, vector<8x8xf32>
    %244 = vector.shape_cast %243 : vector<8x8xf32> to vector<8x1x8xf32>
    %245 = vector.broadcast %244 : vector<8x1x8xf32> to vector<8x8x8xf32>
    %246 = vector.broadcast %1 : vector<1x8x8xf32> to vector<8x8x8xf32>
    %247 = arith.addf %245, %246 : vector<8x8x8xf32>
    %cst_98 = arith.constant dense<0xFF800000> : vector<8x8xf32>
    %248 = vector.multi_reduction <maximumf>, %247, %cst_98 [2] : vector<8x8x8xf32> to vector<8x8xf32>
    %249 = vector.shape_cast %248 : vector<8x8xf32> to vector<8x8x1xf32>
    %250 = vector.shape_cast %249 : vector<8x8x1xf32> to vector<8x8xf32>
    %251 = vector.broadcast %249 : vector<8x8x1xf32> to vector<8x8x8xf32>
    %252 = arith.subf %247, %251 : vector<8x8x8xf32>
    %253 = math.exp %252 : vector<8x8x8xf32>
    %cst_99 = arith.constant dense<0.000000e+00> : vector<8x8xf32>
    %254 = vector.multi_reduction <add>, %253, %cst_99 [2] : vector<8x8x8xf32> to vector<8x8xf32>
    %255 = math.log %254 : vector<8x8xf32>
    %256 = arith.addf %250, %255 : vector<8x8xf32>
    %257 = arith.addf %256, %242 : vector<8x8xf32>
    %c0_i32_100 = arith.constant 0 : i32
    %258 = arith.cmpi sgt, %231, %c0_i32_100 : i32
    %259 = vector.broadcast %231 : i32 to vector<8x1xi32>
    %260 = arith.cmpi slt, %259, %3 : vector<8x1xi32>
    %261 = vector.broadcast %258 : i1 to vector<8x1xi1>
    %262 = arith.andi %261, %260 : vector<8x1xi1>
    %263 = vector.shape_cast %262 : vector<8x1xi1> to vector<8x1xi1>
    %264 = vector.broadcast %263 : vector<8x1xi1> to vector<8x8xi1>
    %265 = arith.select %264, %257, %243 : vector<8x8xi1>, vector<8x8xf32>
    %c0_101 = arith.constant 0 : index
    %c0_102 = arith.constant 0 : index
    %266 = vector.load %arg9[%c0_101, %c0_102] : memref<8x8xf32, #tpu.memory_space<vmem>>, vector<8x8xf32>
    tpu.vector_store %arg9[%c0_101, %c0_102], %265 {strides = array<i32>} : memref<8x8xf32, #tpu.memory_space<vmem>>, vector<8x8xf32>,
    %c7_i32 = arith.constant 7 : i32
    %c8_i32_103 = arith.constant 8 : i32
    %267 = arith.muli %arg1, %c8_i32_103 : i32
    %268 = arith.addi %267, %c7_i32 : i32
    %269 = arith.index_cast %c7_i32 : i32 to index
    %c0_104 = arith.constant 0 : index
    %c0_105 = arith.constant 0 : index
    %270 = vector.load %arg2[%269, %c0_104, %c0_105] : memref<8x4x8xf32, #tpu.memory_space<vmem>>, vector<1x4x8xf32>
    %271 = vector.shape_cast %270 : vector<1x4x8xf32> to vector<4x8xf32>
    %272 = arith.index_cast %c7_i32 : i32 to index
    %c0_106 = arith.constant 0 : index
    %c0_107 = arith.constant 0 : index
    %273 = vector.load %arg3[%272, %c0_106, %c0_107] : memref<8x4x8xf32, #tpu.memory_space<vmem>>, vector<1x4x8xf32>
    %274 = vector.shape_cast %273 : vector<1x4x8xf32> to vector<4x8xf32>
    %cst_108 = arith.constant 5.000000e-01 : f32
    %275 = vector.broadcast %cst_108 : f32 to vector<4x8xf32>
    %276 = arith.cmpf ogt, %274, %275 : vector<4x8xf32>
    %cst_109 = arith.constant -1.000000e+04 : f32
    %277 = vector.broadcast %cst_109 : f32 to vector<4x8xf32>
    %278 = arith.select %276, %271, %277 : vector<4x8xi1>, vector<4x8xf32>
    %279 = tpu.concatenate %278, %271 in 0 : vector<4x8xf32>, vector<4x8xf32> -> vector<8x8xf32>
    %c0_110 = arith.constant 0 : index
    %c0_111 = arith.constant 0 : index
    %280 = vector.load %arg9[%c0_110, %c0_111] : memref<8x8xf32, #tpu.memory_space<vmem>>, vector<8x8xf32>
    %281 = vector.shape_cast %280 : vector<8x8xf32> to vector<8x1x8xf32>
    %282 = vector.broadcast %281 : vector<8x1x8xf32> to vector<8x8x8xf32>
    %283 = vector.broadcast %1 : vector<1x8x8xf32> to vector<8x8x8xf32>
    %284 = arith.addf %282, %283 : vector<8x8x8xf32>
    %cst_112 = arith.constant dense<0xFF800000> : vector<8x8xf32>
    %285 = vector.multi_reduction <maximumf>, %284, %cst_112 [2] : vector<8x8x8xf32> to vector<8x8xf32>
    %286 = vector.shape_cast %285 : vector<8x8xf32> to vector<8x8x1xf32>
    %287 = vector.shape_cast %286 : vector<8x8x1xf32> to vector<8x8xf32>
    %288 = vector.broadcast %286 : vector<8x8x1xf32> to vector<8x8x8xf32>
    %289 = arith.subf %284, %288 : vector<8x8x8xf32>
    %290 = math.exp %289 : vector<8x8x8xf32>
    %cst_113 = arith.constant dense<0.000000e+00> : vector<8x8xf32>
    %291 = vector.multi_reduction <add>, %290, %cst_113 [2] : vector<8x8x8xf32> to vector<8x8xf32>
    %292 = math.log %291 : vector<8x8xf32>
    %293 = arith.addf %287, %292 : vector<8x8xf32>
    %294 = arith.addf %293, %279 : vector<8x8xf32>
    %c0_i32_114 = arith.constant 0 : i32
    %295 = arith.cmpi sgt, %268, %c0_i32_114 : i32
    %296 = vector.broadcast %268 : i32 to vector<8x1xi32>
    %297 = arith.cmpi slt, %296, %3 : vector<8x1xi32>
    %298 = vector.broadcast %295 : i1 to vector<8x1xi1>
    %299 = arith.andi %298, %297 : vector<8x1xi1>
    %300 = vector.shape_cast %299 : vector<8x1xi1> to vector<8x1xi1>
    %301 = vector.broadcast %300 : vector<8x1xi1> to vector<8x8xi1>
    %302 = arith.select %301, %294, %280 : vector<8x8xi1>, vector<8x8xf32>
    %c0_115 = arith.constant 0 : index
    %c0_116 = arith.constant 0 : index
    %303 = vector.load %arg9[%c0_115, %c0_116] : memref<8x8xf32, #tpu.memory_space<vmem>>, vector<8x8xf32>
    tpu.vector_store %arg9[%c0_115, %c0_116], %302 {strides = array<i32>} : memref<8x8xf32, #tpu.memory_space<vmem>>, vector<8x8xf32>,
    %c8_i32_117 = arith.constant 8 : i32
    %c0_i32_118 = arith.constant 0 : i32
    %304 = arith.cmpi eq, %arg1, %c0_i32_118 : i32
    %305 = arith.extui %304 : i1 to i32
    %c0_i32_119 = arith.constant 0 : i32
    %306 = arith.cmpi ne, %305, %c0_i32_119 : i32
    scf.if %306 {
      %c0_120 = arith.constant 0 : index
      %c0_121 = arith.constant 0 : index
      %307 = vector.load %arg9[%c0_120, %c0_121] : memref<8x8xf32, #tpu.memory_space<vmem>>, vector<8x8xf32>
      %c0_122 = arith.constant 0 : index
      %c0_123 = arith.constant 0 : index
      %308 = vector.load %arg7[%c0_122, %c0_123] : memref<1x8xf32, #tpu.memory_space<vmem>>, vector<1x8xf32>
      %309 = vector.broadcast %308 : vector<1x8xf32> to vector<8x8xf32>
      %310 = arith.addf %307, %309 : vector<8x8xf32>
      %cst_124 = arith.constant dense<0xFF800000> : vector<8xf32>
      %311 = vector.multi_reduction <maximumf>, %310, %cst_124 [1] : vector<8x8xf32> to vector<8xf32>
      %312 = vector.shape_cast %311 : vector<8xf32> to vector<8x1xf32>
      %313 = vector.broadcast %312 : vector<8x1xf32> to vector<8x8xf32>
      %314 = arith.subf %310, %313 : vector<8x8xf32>
      %315 = math.exp %314 : vector<8x8xf32>
      %cst_125 = arith.constant dense<0.000000e+00> : vector<8xf32>
      %316 = vector.multi_reduction <add>, %315, %cst_125 [1] : vector<8x8xf32> to vector<8xf32>
      %317 = vector.shape_cast %316 : vector<8xf32> to vector<8x1xf32>
      %318 = math.log %317 : vector<8x1xf32>
      %319 = arith.addf %312, %318 : vector<8x1xf32>
      %320 = vector.extract_strided_slice %319 {offsets = [0, 0], sizes = [4, 1], strides = [1, 1]} : vector<8x1xf32> to vector<4x1xf32>
      %321 = vector.extract_strided_slice %319 {offsets = [4, 0], sizes = [4, 1], strides = [1, 1]} : vector<8x1xf32> to vector<4x1xf32>
      %322 = arith.subf %320, %321 : vector<4x1xf32>
      %cst_126 = arith.constant 0.000000e+00 : f32
      %323 = vector.broadcast %cst_126 : f32 to vector<4x1xf32>
      %324 = arith.subf %323, %322 : vector<4x1xf32>
      %c0_127 = arith.constant 0 : index
      %c0_128 = arith.constant 0 : index
      %325 = vector.load %arg8[%c0_127, %c0_128] : memref<4x1xf32, #tpu.memory_space<vmem>>, vector<4x1xf32>
      tpu.vector_store %arg8[%c0_127, %c0_128], %324 {strides = array<i32>} : memref<4x1xf32, #tpu.memory_space<vmem>>, vector<4x1xf32>,
    } else {
    }
    return
  }
  func.func @transform_0(%arg0: i32, %arg1: i32) -> (i32, i32, i32) {
    %c0_i32 = arith.constant 0 : i32
    %c0_i32_0 = arith.constant 0 : i32
    return %arg1, %arg0, %c0_i32 : i32, i32, i32
  }
  func.func @transform_1(%arg0: i32, %arg1: i32) -> (i32, i32, i32) {
    %c0_i32 = arith.constant 0 : i32
    %c0_i32_0 = arith.constant 0 : i32
    return %arg1, %arg0, %c0_i32 : i32, i32, i32
  }
  func.func @transform_2(%arg0: i32, %arg1: i32) -> (i32, i32) {
    %c0_i32 = arith.constant 0 : i32
    %c0_i32_0 = arith.constant 0 : i32
    return %arg0, %c0_i32 : i32, i32
  }
  func.func @transform_3(%arg0: i32, %arg1: i32) -> (i32, i32) {
    %c0_i32 = arith.constant 0 : i32
    %c0_i32_0 = arith.constant 0 : i32
    %c0_i32_1 = arith.constant 0 : i32
    return %c0_i32, %c0_i32_0 : i32, i32
  }
  func.func @transform_4(%arg0: i32, %arg1: i32) -> (i32, i32) {
    %c0_i32 = arith.constant 0 : i32
    %c0_i32_0 = arith.constant 0 : i32
    %c0_i32_1 = arith.constant 0 : i32
    return %c0_i32, %c0_i32_0 : i32, i32
  }
  func.func @transform_5(%arg0: i32, %arg1: i32) -> (i32, i32) {
    %c0_i32 = arith.constant 0 : i32
    %c0_i32_0 = arith.constant 0 : i32
    %c0_i32_1 = arith.constant 0 : i32
    return %c0_i32, %c0_i32_0 : i32, i32
  }
  func.func @transform_6(%arg0: i32, %arg1: i32) -> (i32, i32) {
    %c0_i32 = arith.constant 0 : i32
    %c0_i32_0 = arith.constant 0 : i32
    return %arg0, %c0_i32 : i32, i32
  }
}

</mosaic_0001>

<bundles_post_ra>
// kernel: tpu_custom_call.1
= control target key start
LH: loop header
LB: loop body
LE: loop exit
PB: predicated region body
PF: predicated region fallthrough
CT: control target
= control target key end

     0   :  { %11 = vsyncpa [#allocation4], 0  ;;  %s4399_s0 = inlined_call_operand.hbm [shape: f32[8,4,8], index: 0, kind: input, shape index: {}]   ;;  %s4400_s1 = inlined_call_operand.hbm [shape: f32[8,4,8], index: 1, kind: input, shape index: {}]   ;;  %s4401_s2 = inlined_call_operand.vmem [shape: s32[4,1], index: 2, kind: input, shape index: {}]   ;;  %s4402_s3 = inlined_call_operand.vmem [shape: f32[8,8], index: 3, kind: input, shape index: {}]   ;;  %s4403_s4 = inlined_call_operand.vmem [shape: f32[1,8], index: 4, kind: input, shape index: {}]   ;;  %s4404_s5 = inlined_call_operand.vmem [shape: f32[1,8], index: 5, kind: input, shape index: {}]   ;;  %s4405_s6 = inlined_call_operand.vmem [shape: f32[4,1], index: 6, kind: output, shape index: {}]  }
   0x1   :  { %12 = vsyncpa [#allocation6], 0  ;;  %s3375_s21 = smov [#allocation3]  }
   0x2   :  { %s18_s22 = sshll.u32 %s3375_s21, 4  ;;  %s19_s22 = int_to_ptr.vmem [resolvable:$true] %s18_s22 }
   0x3   :  { %s3339_s23 = scalar_lea.vmem %s19_s22, 512  ;;  %p3344_p1 = scmp.lt.s32.totalorder %s19_s22, %s19_s22 }
   0x4   :  { %p3340_p0 = scmp.ne.s32.totalorder %s19_s22, %s3339_s23  ;;  %p3345_p2 = scmp.lt.s32.totalorder %s3339_s23, %s3339_s23 }
   0x6   :  { %p3346_p3 = por %p3345_p2, %p3344_p1 }
   0x8   :  { %p3347_p4 = pnand %p3346_p3, %p3340_p0 }
   0xa   :  { %3350 = shalt.err (!%p3347_p4)
}
   0xb   :  { %s3376_s24 = smov 64   ;;  %s3377_s25 = smov 4  }
   0xc   :  { %24 = dma.hbm_to_vmem [thread:$0]  %s4399_s0, 512, %s19_s22, [#allocation4], %s3376_s24, %s3376_s24, %s3377_s25  }
   0xd   :  { %s3378_s28 = smov [#allocation5]  }
   0xe   :  { %s30_s29 = sshll.u32 %s3378_s28, 4  ;;  %s31_s29 = int_to_ptr.vmem [resolvable:$true] %s30_s29 }
   0xf   :  { %s3359_s30 = scalar_lea.vmem %s31_s29, 512  ;;  %p3364_p6 = scmp.lt.s32.totalorder %s31_s29, %s31_s29 }
  0x10   :  { %p3360_p5 = scmp.ne.s32.totalorder %s31_s29, %s3359_s30  ;;  %p3365_p7 = scmp.lt.s32.totalorder %s3359_s30, %s3359_s30 }
  0x12   :  { %p3366_p8 = por %p3365_p7, %p3364_p6 }
  0x14   :  { %p3367_p9 = pnand %p3366_p8, %p3360_p5 }
  0x16   :  { %3370 = shalt.err (!%p3367_p9)
}
  0x17   :  { %36 = dma.hbm_to_vmem [thread:$0]  %s4400_s1, 512, %s31_s29, [#allocation6], %s3376_s24, %s3376_s24, %s3377_s25  }
  0x18   :  { %3371 = dma.done.wait [#allocation4], 512  }
  0x19   :  { %3372 = vsyncadd [#allocation4], 4294966784 }
  0x1a   :  { %3373 = dma.done.wait [#allocation6], 512  }
  0x1b   :  { %3374 = vsyncadd [#allocation6], 4294966784  ;;  %v61_v0 = vld [vmem:[#allocation3] sm:$0xf]  ;;  %vm54_vm0 = vcmask 1043456   ;;  %v93_v7 = vlaneseq  ;;  %vm76_vm2 = vcmask 64512  }
  0x1c   :  { %v62_v1 = vld [vmem:[#allocation5] sm:$0xf]  ;;  %v66_v2 = vrot.slane %v61_v0, 4  ;;  %v3043_v3 = vld [vmem:[%s4403_s4] ss:$0 sm:$0xff]  ;;  %vm434_vm4 = vcmask 1041409  }
  0x1d   :  { %vm63_vm1 = vcmp.gt.f32.partialorder %v62_v1, 0.5  ;;  %v3379_v5 = vmov 1966171168   ;;  %v3428_v11 = vshrl.u32 %v93_v7, 7  ;;  %v3447_v20 = vld [vmem:[%s4402_s3] sm:$0xff]  ;;  %vm436_vm5 = vcmask 1042434  }
  0x1e   :  { %v64_v4 = vsel %vm63_vm1, %v61_v0, -10000.0  ;;  %v91_v6 = vunpack.c.l.s4 %v3379_v5  ;;  %v80_v53 = vld [vmem:[#allocation5] sm:$0xf]  ;;  %vm438_vm6 = vcmask 1043459   ;;  %vm440_vm7 = vcmask 1044484  }
  0x1f   :  { %v68_v8 = vsel %vm54_vm0, %v64_v4, %v66_v2  ;;  %v3438_v15 = vsub.s32 0, %v3428_v11  ;;  %v79_v54 = vld [vmem:[#allocation3] sm:$0xf]  ;;  %vm81_vm3 = vcmp.gt.f32.partialorder %v80_v53, 0.5  ;;  %v3480_v57 = vsub.s32 1, %v3428_v11 }
  0x20   :  { %v75_v9 = vadd.f32 %v3043_v3, %v68_v8  ;;  %v92_v10 = vunpack.c.0.s8 %v91_v6  ;;  %v84_v55 = vrot.slane %v79_v54, 4  ;;  %v82_v56 = vsel %vm81_vm3, %v79_v54, -10000.0 }
  0x21   :  { %v3488_v60 = vsub.s32 2, %v3428_v11  ;;  %v3493_v62 = vsub.s32 4, %v3428_v11  ;;  %v3498_v0 = vsub.s32 3, %v3428_v11  ;;  %v3505_v3 = vsub.s32 5, %v3428_v11 }
  0x22   :  { %77 = vst.msk [vmem:[#allocation2] sm:$0xff] %vm76_vm2, %v75_v9  ;;  %v3431_v12 = vsub.s32 %v92_v10, %v3428_v11  ;;  %v3483_v58 = vsel %vm54_vm0, %v82_v56, %v84_v55  ;;  %v3380_v55 = vmov 0   ;;  %vm442_vm8 = vcmask 1045509  }
  0x23   :  { %v294_v59 = vrot.slane %v3483_v58, %v3480_v57  ;;  %v287_v61 = vrot.slane %v3483_v58, %v3438_v15  ;;  %v301_v63 = vrot.slane %v3483_v58, %v3488_v60  ;;  %v315_v1 = vrot.slane %v3483_v58, %v3493_v62  ;;  %3059 = vset.pattern.permute.xlu0 %v3380_v55 }
  0x24   :  { %v308_v2 = vrot.slane %v3483_v58, %v3498_v0  ;;  %v322_v4 = vrot.slane %v3483_v58, %v3505_v3  ;;  %3060 = vset.pattern.permute.xlu1 %v3380_v55  ;;  %vm444_vm9 = vcmask 1046534   ;;  %vm446_vm10 = vcmask 1047559  }
  0x29   :  { %v3433_v13 = vld [vmem:[#allocation2] sm:$0xff] }
  0x2a   :  { %v96_v14 = vrot.slane %v3433_v13, %v3431_v12  ;;  %v89_v16 = vcombine.high %v3433_v13, %v3433_v13 }
  0x2c   :  { %v112_v17 = vrot.slane %v96_v14, %v3431_v12  ;;  %v104_v18 = vcombine.high %v96_v14, %v96_v14  ;;  %v103_v19 = vrot.slane %v89_v16, %v3431_v12 }
  0x2e   :  { %v141_v21 = vrot.slane %v112_v17, %v3438_v15  ;;  %v134_v22 = vcombine.high %v112_v17, %v112_v17  ;;  %v126_v23 = vrot.slane %v104_v18, %v3431_v12  ;;  %v119_v24 = vrot.slane %v103_v19, %v3431_v12 }
  0x2f   :  { %v105_v25 = vcombine.high %v103_v19, %v103_v19 }
  0x30   :  { %v178_v26 = vadd.f32 %v141_v21, %v3447_v20  ;;  %v149_v27 = vrot.slane %v134_v22, %v3438_v15  ;;  %v145_v28 = vrot.slane %v126_v23, %v3438_v15  ;;  %v136_v29 = vcombine.high %v126_v23, %v126_v23 }
  0x31   :  { %v157_v30 = vrot.slane %v119_v24, %v3438_v15  ;;  %v133_v31 = vrot.slane %v105_v25, %v3431_v12  ;;  %v135_v32 = vcombine.high %v119_v24, %v119_v24 }
  0x32   :  { %v187_v33 = vsel %vm76_vm2, %v178_v26, -inf  ;;  %v180_v34 = vadd.f32 %v149_v27, %v3447_v20  ;;  %v179_v35 = vadd.f32 %v145_v28, %v3447_v20  ;;  %v153_v36 = vrot.slane %v136_v29, %v3438_v15 }
  0x33   :  { %188 = vmax.xlane.f32.xlu0 %v187_v33  ;;  %v3462_v37 = vadd.f32 %v157_v30, %v3447_v20  ;;  %v161_v38 = vrot.slane %v133_v31, %v3438_v15  ;;  %v137_v39 = vcombine.high %v133_v31, %v133_v31  ;;  %v165_v43 = vrot.slane %v135_v32, %v3438_v15 }
  0x34   :  { %v193_v40 = vsel %vm76_vm2, %v180_v34, -inf  ;;  %v190_v41 = vsel %vm76_vm2, %v179_v35, -inf  ;;  %v181_v42 = vadd.f32 %v153_v36, %v3447_v20 }
  0x35   :  { %194 = vmax.xlane.f32.xlu1 %v193_v40  ;;  %v183_v45 = vadd.f32 %v161_v38, %v3447_v20  ;;  %v169_v46 = vrot.slane %v137_v39, %v3438_v15  ;;  %v199_v47 = vsel %vm76_vm2, %v3462_v37, -inf  ;;  %v184_v48 = vadd.f32 %v165_v43, %v3447_v20 }
  0x36   :  { %v196_v44 = vsel %vm76_vm2, %v181_v42, -inf }
  0x37   :  { %191 = vmax.xlane.f32.xlu0 %v190_v41  ;;  %v202_v49 = vsel %vm76_vm2, %v183_v45, -inf  ;;  %v185_v50 = vadd.f32 %v169_v46, %v3447_v20  ;;  %v205_v51 = vsel %vm76_vm2, %v184_v48, -inf }
  0x39   :  { %197 = vmax.xlane.f32.xlu1 %v196_v44  ;;  %v208_v52 = vsel %vm76_vm2, %v185_v50, -inf }
  0x3b   :  { %200 = vmax.xlane.f32.xlu0 %v199_v47 }
  0x3d   :  { %203 = vmax.xlane.f32.xlu1 %v202_v49 }
  0x3f   :  { %206 = vmax.xlane.f32.xlu0 %v205_v51  ;;  %v3543_v51 = vsub.s32 7, %v3428_v11 }
  0x41   :  { %209 = vmax.xlane.f32.xlu1 %v208_v52  ;;  %v3546_v52 = vsub.s32 6, %v3428_v11  ;;  %v336_v53 = vrot.slane %v3483_v58, %v3543_v51 }
  0x43   :  { %v329_v54 = vrot.slane %v3483_v58, %v3546_v52 }
  0x52   :  { %296 = vbcast.lane.b32.xlu1 %v294_v59, 256 }
  0x55   :  { %289 = vbcast.lane.b32.xlu0 %v287_v61, 256 }
  0x56   :  { %303 = vbcast.lane.b32.xlu1 %v301_v63, 256 }
  0x59   :  { %317 = vbcast.lane.b32.xlu0 %v315_v1, 256 }
  0x5a   :  { %310 = vbcast.lane.b32.xlu1 %v308_v2, 256 }
  0x5e   :  { %324 = vbcast.lane.b32.xlu1 %v322_v4, 256 }
  0xbc   :  { %v3509_v5 = vpop.xlane.xlu0 %188 }
  0xbd   :  { %v211_v6 = vsub.f32 %v178_v26, %v3509_v5 }
  0xbe   :  { %v3512_v8 = vpop.xlane.xlu1 %194 }
  0xbf   :  { %v219_v9 = vmul.f32 1.442695, %v211_v6  ;;  %v213_v10 = vsub.f32 %v180_v34, %v3512_v8 }
  0xc0   :  { %v3515_v14 = vpop.xlane.xlu0 %191 }
  0xc1   :  { %3069 = vpow2.f32 %v219_v9  ;;  %v223_v16 = vmul.f32 1.442695, %v213_v10  ;;  %v212_v17 = vsub.f32 %v179_v35, %v3515_v14 }
  0xc2   :  { %v3518_v18 = vpop.xlane.xlu1 %197 }
  0xc3   :  { %3071 = vpow2.f32 %v223_v16  ;;  %v221_v19 = vmul.f32 1.442695, %v212_v17  ;;  %v214_v21 = vsub.f32 %v181_v42, %v3518_v18 }
  0xc4   :  { %v3521_v22 = vpop.xlane.xlu0 %200 }
  0xc5   :  { %3073 = vpow2.f32 %v221_v19  ;;  %v225_v23 = vmul.f32 1.442695, %v214_v21  ;;  %v215_v24 = vsub.f32 %v3462_v37, %v3521_v22 }
  0xc6   :  { %v3525_v25 = vpop.xlane.xlu1 %203 }
  0xc7   :  { %3075 = vpow2.f32 %v225_v23  ;;  %v227_v26 = vmul.f32 1.442695, %v215_v24  ;;  %v216_v27 = vsub.f32 %v183_v45, %v3525_v25 }
  0xc8   :  { %v3528_v28 = vpop.xlane.xlu0 %206 }
  0xc9   :  { %3077 = vpow2.f32 %v227_v26  ;;  %v229_v29 = vmul.f32 1.442695, %v216_v27  ;;  %v217_v30 = vsub.f32 %v184_v48, %v3528_v28 }
  0xca   :  { %v3531_v31 = vpop.xlane.xlu1 %209 }
  0xcb   :  { %3079 = vpow2.f32 %v229_v29  ;;  %v231_v32 = vmul.f32 1.442695, %v217_v30  ;;  %v218_v33 = vsub.f32 %v185_v50, %v3531_v31 }
  0xcc   :  { %v290_v61 = vpop.permute.xlu0 %289 }
  0xcd   :  { %3081 = vpow2.f32 %v231_v32  ;;  %v233_v34 = vmul.f32 1.442695, %v218_v33 }
  0xce   :  { %v3070_v35 = vpop.eup %3069  ;;  %v297_v56 = vpop.permute.xlu1 %296 }
  0xcf   :  { %3083 = vpow2.f32 %v233_v34  ;;  %v235_v36 = vsel %vm76_vm2, %v3070_v35, 0.0 }
  0xd0   :  { %v3072_v37 = vpop.eup %3071  ;;  %236 = vadd.xlane.f32.xlu0 %v235_v36  ;;  %v318_v1 = vpop.permute.xlu0 %317 }
  0xd1   :  { %v241_v38 = vsel %vm76_vm2, %v3072_v37, 0.0 }
  0xd2   :  { %v3074_v39 = vpop.eup %3073  ;;  %v304_v59 = vpop.permute.xlu1 %303 }
  0xd3   :  { %v238_v40 = vsel %vm76_vm2, %v3074_v39, 0.0 }
  0xd4   :  { %v3076_v41 = vpop.eup %3075  ;;  %242 = vadd.xlane.f32.xlu0 %v241_v38  ;;  %239 = vadd.xlane.f32.xlu1 %v238_v40 }
  0xd5   :  { %v244_v42 = vsel %vm76_vm2, %v3076_v41, 0.0 }
  0xd6   :  { %v3078_v43 = vpop.eup %3077  ;;  %v311_v63 = vpop.permute.xlu1 %310 }
  0xd7   :  { %v247_v44 = vsel %vm76_vm2, %v3078_v43, 0.0 }
  0xd8   :  { %v3080_v45 = vpop.eup %3079  ;;  %245 = vadd.xlane.f32.xlu1 %v244_v42  ;;  %248 = vadd.xlane.f32.xlu0 %v247_v44 }
  0xd9   :  { %v250_v46 = vsel %vm76_vm2, %v3080_v45, 0.0 }
  0xda   :  { %v3082_v47 = vpop.eup %3081  ;;  %v325_v2 = vpop.permute.xlu1 %324 }
  0xdb   :  { %v253_v48 = vsel %vm76_vm2, %v3082_v47, 0.0 }
  0xdc   :  { %v3084_v49 = vpop.eup %3083  ;;  %251 = vadd.xlane.f32.xlu1 %v250_v46  ;;  %254 = vadd.xlane.f32.xlu0 %v253_v48 }
  0xdd   :  { %v256_v50 = vsel %vm76_vm2, %v3084_v49, 0.0 }
  0xe0   :  { %257 = vadd.xlane.f32.xlu1 %v256_v50 }
  0xf1   :  { %338 = vbcast.lane.b32.xlu1 %v336_v53, 256 }
  0xf2   :  { %331 = vbcast.lane.b32.xlu0 %v329_v54, 256 }
 0x159   :  { %v237_v4 = vpop.xlane.xlu0 %236 }
 0x15a   :  { %3085 = vlog2.f32 %v237_v4 }
 0x15d   :  { %v240_v6 = vpop.xlane.xlu1 %239  ;;  %v243_v9 = vpop.xlane.xlu0 %242 }
 0x15e   :  { %3087 = vlog2.f32 %v240_v6 }
 0x15f   :  { %3089 = vlog2.f32 %v243_v9 }
 0x161   :  { %v246_v58 = vpop.xlane.xlu1 %245  ;;  %v249_v10 = vpop.xlane.xlu0 %248 }
 0x162   :  { %3091 = vlog2.f32 %v246_v58 }
 0x163   :  { %3093 = vlog2.f32 %v249_v10 }
 0x165   :  { %v252_v16 = vpop.xlane.xlu1 %251  ;;  %v255_v17 = vpop.xlane.xlu0 %254 }
 0x166   :  { %3095 = vlog2.f32 %v252_v16 }
 0x167   :  { %v3086_v19 = vpop.eup %3085  ;;  %3097 = vlog2.f32 %v255_v17 }
 0x168   :  { %v260_v21 = vmul.f32 0.6931472, %v3086_v19 }
 0x169   :  { %v258_v23 = vpop.xlane.xlu1 %257  ;;  %v332_v53 = vpop.permute.xlu0 %331 }
 0x16a   :  { %3099 = vlog2.f32 %v258_v23  ;;  %v275_v24 = vadd.f32 %v260_v21, %v3509_v5 }
 0x16b   :  { %v3088_v26 = vpop.eup %3087 }
 0x16c   :  { %v3090_v27 = vpop.eup %3089  ;;  %v262_v29 = vmul.f32 0.6931472, %v3088_v26  ;;  %v348_v30 = vadd.f32 %v290_v61, %v275_v24 }
 0x16d   :  { %v264_v32 = vmul.f32 0.6931472, %v3090_v27 }
 0x16e   :  { %377 = vperm.xlu0 %3059, %v348_v30   ;;  %v276_v33 = vadd.f32 %v262_v29, %v3515_v14 }
 0x16f   :  { %v3092_v34 = vpop.eup %3091  ;;  %v277_v38 = vadd.f32 %v264_v32, %v3512_v8 }
 0x170   :  { %v3094_v35 = vpop.eup %3093  ;;  %v266_v36 = vmul.f32 0.6931472, %v3092_v34  ;;  %v349_v37 = vadd.f32 %v297_v56, %v276_v33 }
 0x171   :  { %v268_v39 = vmul.f32 0.6931472, %v3094_v35  ;;  %v350_v44 = vadd.f32 %v304_v59, %v277_v38 }
 0x172   :  { %380 = vperm.xlu1 %3060, %v349_v37   ;;  %v278_v40 = vadd.f32 %v266_v36, %v3518_v18  ;;  %v339_v18 = vpop.permute.xlu1 %338 }
 0x173   :  { %v3096_v41 = vpop.eup %3095  ;;  %v279_v45 = vadd.f32 %v268_v39, %v3521_v22  ;;  %v401_v22 = vand.u32 127, %v93_v7 }
 0x174   :  { %v3098_v5 = vpop.eup %3097  ;;  %v270_v42 = vmul.f32 0.6931472, %v3096_v41  ;;  %v351_v43 = vadd.f32 %v311_v63, %v278_v40 }
 0x175   :  { %v272_v46 = vmul.f32 0.6931472, %v3098_v5  ;;  %v352_v50 = vadd.f32 %v318_v1, %v279_v45 }
 0x176   :  { %386 = vperm.xlu0 %3059, %v351_v43   ;;  %383 = vperm.xlu1 %3060, %v350_v44   ;;  %v280_v14 = vadd.f32 %v270_v42, %v3525_v25  ;;  %v3565_v25 = vsub.s32 %v401_v22, %v3428_v11 }
 0x177   :  { %v3100_v47 = vpop.eup %3099  ;;  %v281_v8 = vadd.f32 %v272_v46, %v3528_v28 }
 0x178   :  { %v274_v48 = vmul.f32 0.6931472, %v3100_v47  ;;  %v353_v49 = vadd.f32 %v325_v2, %v280_v14 }
 0x179   :  { %v354_v56 = vadd.f32 %v332_v53, %v281_v8 }
 0x17a   :  { %392 = vperm.xlu0 %3059, %v353_v49   ;;  %389 = vperm.xlu1 %3060, %v352_v50   ;;  %v282_v54 = vadd.f32 %v274_v48, %v3531_v31 }
 0x17c   :  { %v355_v59 = vadd.f32 %v339_v18, %v282_v54 }
 0x17e   :  { %398 = vperm.xlu0 %3059, %v355_v59   ;;  %395 = vperm.xlu1 %3060, %v354_v56  }
 0x182   :  { %365 = vperm.xlu1 %3060, %v3380_v55  }
 0x1e9   :  { %v378_v28 = vpop.permute.xlu0 %377 }
 0x1ea   :  { %v405_v1 = vrot.slane %v378_v28, %v3565_v25 }
 0x1ed   :  { %v381_v61 = vpop.permute.xlu1 %380 }
 0x1ee   :  { %v409_v63 = vrot.slane %v381_v61, %v3565_v25 }
 0x1f0   :  { %v435_v6 = vsel %vm434_vm4, %v409_v63, %v405_v1 }
 0x1f1   :  { %v384_v31 = vpop.permute.xlu1 %383  ;;  %v387_v2 = vpop.permute.xlu0 %386 }
 0x1f2   :  { %v413_v4 = vrot.slane %v384_v31, %v3565_v25  ;;  %v417_v9 = vrot.slane %v387_v2, %v3565_v25 }
 0x1f4   :  { %v437_v7 = vsel %vm436_vm5, %v413_v4, %v435_v6 }
 0x1f5   :  { %v390_v11 = vpop.permute.xlu1 %389  ;;  %v393_v58 = vpop.permute.xlu0 %392  ;;  %v439_v16 = vsel %vm438_vm6, %v417_v9, %v437_v7 }
 0x1f6   :  { %v421_v10 = vrot.slane %v390_v11, %v3565_v25  ;;  %v425_v17 = vrot.slane %v393_v58, %v3565_v25  ;;  %v455_v11 = vld [vmem:[#allocation5 + $0x4] sm:$0xf] }
 0x1f7   :  { %v453_v58 = vld [vmem:[#allocation3 + $0x4] sm:$0xf]  ;;  %vm456_vm12 = vcmp.gt.f32.partialorder %v455_v11, 0.5 }
 0x1f8   :  { %v441_v19 = vsel %vm440_vm7, %v421_v10, %v439_v16  ;;  %v459_v16 = vrot.slane %v453_v58, 4 }
 0x1f9   :  { %v396_v21 = vpop.permute.xlu1 %395  ;;  %v399_v23 = vpop.permute.xlu0 %398  ;;  %v443_v27 = vsel %vm442_vm8, %v425_v17, %v441_v19  ;;  %v457_v17 = vsel %vm456_vm12, %v453_v58, -10000.0 }
 0x1fa   :  { %v429_v24 = vrot.slane %v396_v21, %v3565_v25  ;;  %v433_v26 = vrot.slane %v399_v23, %v3565_v25  ;;  %v3620_v19 = vsel %vm54_vm0, %v457_v17, %v459_v16 }
 0x1fb   :  { %v668_v21 = vrot.slane %v3620_v19, %v3480_v57  ;;  %v675_v23 = vrot.slane %v3620_v19, %v3488_v60  ;;  %v710_v58 = vrot.slane %v3620_v19, %v3543_v51 }
 0x1fc   :  { %v445_v29 = vsel %vm444_vm9, %v429_v24, %v443_v27  ;;  %v682_v24 = vrot.slane %v3620_v19, %v3498_v0  ;;  %v696_v27 = vrot.slane %v3620_v19, %v3505_v3 }
 0x1fd   :  { %v366_v30 = vpop.permute.xlu1 %365  ;;  %v447_v32 = vsel %vm446_vm10, %v433_v26, %v445_v29  ;;  %v661_v26 = vrot.slane %v3620_v19, %v3438_v15  ;;  %v689_v29 = vrot.slane %v3620_v19, %v3493_v62 }
 0x1fe   :  { %vm367_vm11 = vcmp.eq.s32.totalorder %v366_v30, 1 }
 0x1ff   :  { %v449_v33 = vsel %vm367_vm11, %v447_v32, %v3433_v13 }
 0x200   :  { %450 = vst.msk [vmem:[#allocation2] sm:$0xff] %vm76_vm2, %v449_v33 }
 0x207   :  { %v3584_v34 = vld [vmem:[#allocation2] sm:$0xff] }
 0x208   :  { %v471_v35 = vrot.slane %v3584_v34, %v3431_v12  ;;  %v464_v36 = vcombine.high %v3584_v34, %v3584_v34 }
 0x20a   :  { %v487_v37 = vrot.slane %v471_v35, %v3431_v12  ;;  %v479_v38 = vcombine.high %v471_v35, %v471_v35  ;;  %v478_v39 = vrot.slane %v464_v36, %v3431_v12 }
 0x20c   :  { %v516_v40 = vrot.slane %v487_v37, %v3438_v15  ;;  %v501_v41 = vrot.slane %v479_v38, %v3431_v12  ;;  %v509_v13 = vcombine.high %v487_v37, %v487_v37  ;;  %v480_v5 = vcombine.high %v478_v39, %v478_v39 }
 0x20d   :  { %v494_v42 = vrot.slane %v478_v39, %v3431_v12 }
 0x20e   :  { %v553_v43 = vadd.f32 %v516_v40, %v3447_v20  ;;  %v520_v44 = vrot.slane %v501_v41, %v3438_v15  ;;  %v524_v45 = vrot.slane %v509_v13, %v3438_v15  ;;  %v508_v46 = vrot.slane %v480_v5, %v3431_v12 }
 0x20f   :  { %v532_v14 = vrot.slane %v494_v42, %v3438_v15  ;;  %v511_v47 = vcombine.high %v501_v41, %v501_v41  ;;  %v510_v61 = vcombine.high %v494_v42, %v494_v42 }
 0x210   :  { %v561_v48 = vsel %vm76_vm2, %v553_v43, -inf  ;;  %v554_v8 = vadd.f32 %v520_v44, %v3447_v20  ;;  %v555_v49 = vadd.f32 %v524_v45, %v3447_v20  ;;  %v536_v50 = vrot.slane %v508_v46, %v3438_v15 }
 0x211   :  { %562 = vmax.xlane.f32.xlu0 %v561_v48  ;;  %v512_v53 = vcombine.high %v508_v46, %v508_v46  ;;  %v557_v22 = vadd.f32 %v532_v14, %v3447_v20  ;;  %v528_v28 = vrot.slane %v511_v47, %v3438_v15  ;;  %v540_v4 = vrot.slane %v510_v61, %v3438_v15 }
 0x212   :  { %v564_v18 = vsel %vm76_vm2, %v554_v8, -inf  ;;  %v558_v54 = vadd.f32 %v536_v50, %v3447_v20  ;;  %v567_v59 = vsel %vm76_vm2, %v555_v49, -inf }
 0x213   :  { %565 = vmax.xlane.f32.xlu1 %v564_v18  ;;  %v544_v56 = vrot.slane %v512_v53, %v3438_v15  ;;  %v573_v31 = vsel %vm76_vm2, %v557_v22, -inf  ;;  %v556_v2 = vadd.f32 %v528_v28, %v3447_v20  ;;  %v559_v7 = vadd.f32 %v540_v4, %v3447_v20 }
 0x214   :  { %v576_v63 = vsel %vm76_vm2, %v558_v54, -inf }
 0x215   :  { %568 = vmax.xlane.f32.xlu0 %v567_v59  ;;  %v560_v1 = vadd.f32 %v544_v56, %v3447_v20  ;;  %v570_v9 = vsel %vm76_vm2, %v556_v2, -inf  ;;  %v579_v10 = vsel %vm76_vm2, %v559_v7, -inf }
 0x217   :  { %577 = vmax.xlane.f32.xlu1 %v576_v63  ;;  %v582_v6 = vsel %vm76_vm2, %v560_v1, -inf }
 0x219   :  { %574 = vmax.xlane.f32.xlu0 %v573_v31 }
 0x21b   :  { %583 = vmax.xlane.f32.xlu1 %v582_v6 }
 0x21d   :  { %571 = vmax.xlane.f32.xlu0 %v570_v9 }
 0x221   :  { %580 = vmax.xlane.f32.xlu0 %v579_v10  ;;  %v703_v10 = vrot.slane %v3620_v19, %v3546_v52 }
 0x22c   :  { %670 = vbcast.lane.b32.xlu1 %v668_v21, 256 }
 0x230   :  { %677 = vbcast.lane.b32.xlu1 %v675_v23, 256 }
 0x234   :  { %684 = vbcast.lane.b32.xlu1 %v682_v24, 256 }
 0x237   :  { %663 = vbcast.lane.b32.xlu0 %v661_v26, 256 }
 0x238   :  { %698 = vbcast.lane.b32.xlu1 %v696_v27, 256 }
 0x23b   :  { %691 = vbcast.lane.b32.xlu0 %v689_v29, 256 }
 0x29a   :  { %v3634_v30 = vpop.xlane.xlu0 %562 }
 0x29b   :  { %v585_v32 = vsub.f32 %v553_v43, %v3634_v30 }
 0x29c   :  { %v3637_v33 = vpop.xlane.xlu1 %565 }
 0x29d   :  { %v593_v35 = vmul.f32 1.442695, %v585_v32  ;;  %v586_v36 = vsub.f32 %v554_v8, %v3637_v33 }
 0x29e   :  { %v3640_v37 = vpop.xlane.xlu0 %568 }
 0x29f   :  { %3101 = vpow2.f32 %v593_v35  ;;  %v595_v38 = vmul.f32 1.442695, %v586_v36  ;;  %v587_v39 = vsub.f32 %v555_v49, %v3640_v37 }
 0x2a0   :  { %v3643_v40 = vpop.xlane.xlu1 %577 }
 0x2a1   :  { %3103 = vpow2.f32 %v595_v38  ;;  %v597_v41 = vmul.f32 1.442695, %v587_v39  ;;  %v590_v42 = vsub.f32 %v558_v54, %v3643_v40 }
 0x2a2   :  { %v3645_v13 = vpop.xlane.xlu0 %574 }
 0x2a3   :  { %3105 = vpow2.f32 %v597_v41  ;;  %v589_v5 = vsub.f32 %v557_v22, %v3645_v13  ;;  %v603_v14 = vmul.f32 1.442695, %v590_v42 }
 0x2a4   :  { %v3649_v44 = vpop.xlane.xlu1 %583 }
 0x2a5   :  { %v601_v43 = vmul.f32 1.442695, %v589_v5  ;;  %v592_v47 = vsub.f32 %v560_v1, %v3649_v44 }
 0x2a6   :  { %v3651_v45 = vpop.xlane.xlu0 %571 }
 0x2a7   :  { %3107 = vpow2.f32 %v601_v43  ;;  %v588_v46 = vsub.f32 %v556_v2, %v3651_v45  ;;  %v607_v53 = vmul.f32 1.442695, %v592_v47 }
 0x2a8   :  { %v671_v16 = vpop.permute.xlu1 %670 }
 0x2a9   :  { %v599_v48 = vmul.f32 1.442695, %v588_v46 }
 0x2aa   :  { %v3655_v8 = vpop.xlane.xlu0 %580 }
 0x2ab   :  { %3109 = vpow2.f32 %v599_v48  ;;  %v591_v49 = vsub.f32 %v559_v7, %v3655_v8 }
 0x2ac   :  { %v3102_v50 = vpop.eup %3101  ;;  %3111 = vpow2.f32 %v603_v14  ;;  %v678_v17 = vpop.permute.xlu1 %677 }
 0x2ad   :  { %v605_v18 = vmul.f32 1.442695, %v591_v49  ;;  %v609_v54 = vsel %vm76_vm2, %v3102_v50, 0.0 }
 0x2ae   :  { %v3104_v56 = vpop.eup %3103  ;;  %610 = vadd.xlane.f32.xlu0 %v609_v54  ;;  %v664_v21 = vpop.permute.xlu0 %663 }
 0x2af   :  { %3113 = vpow2.f32 %v605_v18  ;;  %v612_v59 = vsel %vm76_vm2, %v3104_v56, 0.0 }
 0x2b0   :  { %v3106_v22 = vpop.eup %3105  ;;  %613 = vadd.xlane.f32.xlu1 %v612_v59  ;;  %3115 = vpow2.f32 %v607_v53  ;;  %v685_v23 = vpop.permute.xlu1 %684 }
 0x2b1   :  { %v615_v28 = vsel %vm76_vm2, %v3106_v22, 0.0 }
 0x2b2   :  { %616 = vadd.xlane.f32.xlu0 %v615_v28  ;;  %v692_v24 = vpop.permute.xlu0 %691 }
 0x2b4   :  { %v3108_v61 = vpop.eup %3107  ;;  %v699_v26 = vpop.permute.xlu1 %698 }
 0x2b5   :  { %v621_v63 = vsel %vm76_vm2, %v3108_v61, 0.0 }
 0x2b6   :  { %622 = vadd.xlane.f32.xlu0 %v621_v63 }
 0x2b8   :  { %v3110_v1 = vpop.eup %3109 }
 0x2b9   :  { %v618_v31 = vsel %vm76_vm2, %v3110_v1, 0.0  ;;  %v3112_v2 = vpop.eup %3111 }
 0x2ba   :  { %619 = vadd.xlane.f32.xlu1 %v618_v31  ;;  %v624_v9 = vsel %vm76_vm2, %v3112_v2, 0.0 }
 0x2bc   :  { %v3114_v4 = vpop.eup %3113 }
 0x2bd   :  { %v627_v6 = vsel %vm76_vm2, %v3114_v4, 0.0  ;;  %v3116_v7 = vpop.eup %3115 }
 0x2be   :  { %628 = vadd.xlane.f32.xlu0 %v627_v6  ;;  %625 = vadd.xlane.f32.xlu1 %v624_v9  ;;  %v630_v11 = vsel %vm76_vm2, %v3116_v7, 0.0 }
 0x2c2   :  { %631 = vadd.xlane.f32.xlu1 %v630_v11 }
 0x2d3   :  { %712 = vbcast.lane.b32.xlu1 %v710_v58, 256 }
 0x2d4   :  { %705 = vbcast.lane.b32.xlu0 %v703_v10, 256 }
 0x337   :  { %v611_v27 = vpop.xlane.xlu0 %610 }
 0x338   :  { %3117 = vlog2.f32 %v611_v27 }
 0x339   :  { %v614_v29 = vpop.xlane.xlu1 %613 }
 0x33a   :  { %3119 = vlog2.f32 %v614_v29 }
 0x33b   :  { %v617_v32 = vpop.xlane.xlu0 %616 }
 0x33c   :  { %3121 = vlog2.f32 %v617_v32 }
 0x33f   :  { %v623_v35 = vpop.xlane.xlu0 %622 }
 0x340   :  { %3123 = vlog2.f32 %v623_v35 }
 0x343   :  { %v620_v36 = vpop.xlane.xlu1 %619 }
 0x344   :  { %3125 = vlog2.f32 %v620_v36 }
 0x345   :  { %v3118_v38 = vpop.eup %3117 }
 0x346   :  { %v634_v19 = vmul.f32 0.6931472, %v3118_v38 }
 0x347   :  { %v3120_v39 = vpop.eup %3119  ;;  %v629_v41 = vpop.xlane.xlu0 %628 }
 0x348   :  { %v626_v5 = vpop.xlane.xlu1 %625  ;;  %v636_v42 = vmul.f32 0.6931472, %v3120_v39  ;;  %3127 = vlog2.f32 %v629_v41  ;;  %v649_v43 = vadd.f32 %v634_v19, %v3634_v30  ;;  %v52_v30 = vld [vmem:[%s4401_s2] sm:$0xf] }
 0x349   :  { %v3122_v46 = vpop.eup %3121  ;;  %3129 = vlog2.f32 %v626_v5  ;;  %v53_v61 = vrot.slane %v52_v30, 4 }
 0x34a   :  { %v638_v14 = vmul.f32 0.6931472, %v3122_v46  ;;  %v722_v47 = vadd.f32 %v664_v21, %v649_v43  ;;  %v650_v48 = vadd.f32 %v636_v42, %v3637_v33 }
 0x34b   :  { %v706_v6 = vpop.permute.xlu0 %705  ;;  %v3679_v9 = vsel %vm54_vm0, %v52_v30, %v53_v61 }
 0x34c   :  { %v632_v49 = vpop.xlane.xlu1 %631  ;;  %751 = vperm.xlu0 %3059, %v722_v47   ;;  %v723_v50 = vadd.f32 %v671_v16, %v650_v48  ;;  %v651_v53 = vadd.f32 %v638_v14, %v3640_v37  ;;  %vm3045_vm13 = vcmp.gt.s32.totalorder %v3679_v9, 1  ;;  %vm3046_vm1 = vcmp.gt.s32.totalorder %v3679_v9, 2 }
 0x34d   :  { %3131 = vlog2.f32 %v632_v49  ;;  %v3124_v18 = vpop.eup %3123  ;;  %v737_v21 = vsel %vm3045_vm13, 1, %v3380_v55  ;;  %vm3047_vm12 = vcmp.gt.s32.totalorder %v3679_v9, 3 }
 0x34e   :  { %v642_v54 = vmul.f32 0.6931472, %v3124_v18  ;;  %754 = vperm.xlu1 %3060, %v723_v50   ;;  %v724_v56 = vadd.f32 %v678_v17, %v651_v53 }
 0x350   :  { %757 = vperm.xlu0 %3059, %v724_v56   ;;  %v653_v59 = vadd.f32 %v642_v54, %v3645_v13  ;;  %v713_v16 = vpop.permute.xlu1 %712 }
 0x351   :  { %v3126_v22 = vpop.eup %3125 }
 0x352   :  { %v640_v28 = vmul.f32 0.6931472, %v3126_v22  ;;  %v726_v33 = vadd.f32 %v692_v24, %v653_v59 }
 0x354   :  { %763 = vperm.xlu0 %3059, %v726_v33   ;;  %v652_v63 = vadd.f32 %v640_v28, %v3651_v45 }
 0x355   :  { %v3128_v1 = vpop.eup %3127 }
 0x356   :  { %v3130_v37 = vpop.eup %3129  ;;  %v646_v31 = vmul.f32 0.6931472, %v3128_v1  ;;  %v725_v2 = vadd.f32 %v685_v23, %v652_v63 }
 0x357   :  { %v644_v4 = vmul.f32 0.6931472, %v3130_v37 }
 0x358   :  { %760 = vperm.xlu1 %3060, %v725_v2   ;;  %v655_v13 = vadd.f32 %v646_v31, %v3655_v8 }
 0x359   :  { %v654_v11 = vadd.f32 %v644_v4, %v3643_v40 }
 0x35a   :  { %v3132_v7 = vpop.eup %3131  ;;  %v728_v10 = vadd.f32 %v706_v6, %v655_v13 }
 0x35b   :  { %v648_v58 = vmul.f32 0.6931472, %v3132_v7  ;;  %v727_v45 = vadd.f32 %v699_v26, %v654_v11 }
 0x35c   :  { %769 = vperm.xlu0 %3059, %v728_v10  }
 0x35d   :  { %v656_v17 = vadd.f32 %v648_v58, %v3649_v44  ;;  %766 = vperm.xlu1 %3060, %v727_v45  }
 0x35f   :  { %v729_v23 = vadd.f32 %v713_v16, %v656_v17 }
 0x360   :  { %739 = vperm.xlu0 %3059, %v737_v21  }
 0x361   :  { %772 = vperm.xlu1 %3060, %v729_v23  }
 0x3c7   :  { %v752_v24 = vpop.permute.xlu0 %751 }
 0x3c8   :  { %v777_v29 = vrot.slane %v752_v24, %v3565_v25 }
 0x3c9   :  { %v755_v8 = vpop.permute.xlu1 %754 }
 0x3ca   :  { %v781_v40 = vrot.slane %v755_v8, %v3565_v25 }
 0x3cb   :  { %v758_v27 = vpop.permute.xlu0 %757 }
 0x3cc   :  { %v785_v32 = vrot.slane %v758_v27, %v3565_v25  ;;  %v806_v26 = vsel %vm434_vm4, %v781_v40, %v777_v29 }
 0x3ce   :  { %v807_v38 = vsel %vm436_vm5, %v785_v32, %v806_v26 }
 0x3cf   :  { %v764_v35 = vpop.permute.xlu0 %763 }
 0x3d0   :  { %v793_v41 = vrot.slane %v764_v35, %v3565_v25 }
 0x3d3   :  { %v761_v36 = vpop.permute.xlu1 %760 }
 0x3d4   :  { %v789_v44 = vrot.slane %v761_v36, %v3565_v25 }
 0x3d6   :  { %v808_v19 = vsel %vm438_vm6, %v789_v44, %v807_v38  ;;  %v820_v44 = vld [vmem:[#allocation5 + $0x8] sm:$0xf] }
 0x3d7   :  { %v770_v39 = vpop.permute.xlu0 %769  ;;  %v809_v46 = vsel %vm440_vm7, %v793_v41, %v808_v19  ;;  %v818_v38 = vld [vmem:[#allocation3 + $0x8] sm:$0xf]  ;;  %vm821_vm15 = vcmp.gt.f32.partialorder %v820_v44, 0.5 }
 0x3d8   :  { %v767_v5 = vpop.permute.xlu1 %766  ;;  %v801_v43 = vrot.slane %v770_v39, %v3565_v25  ;;  %v824_v41 = vrot.slane %v818_v38, 4 }
 0x3d9   :  { %v797_v42 = vrot.slane %v767_v5, %v3565_v25  ;;  %v822_v5 = vsel %vm821_vm15, %v818_v38, -10000.0  ;;  %vm3048_vm15 = vcmp.gt.s32.totalorder %v3679_v9, 4 }
 0x3db   :  { %v810_v14 = vsel %vm442_vm8, %v797_v42, %v809_v46  ;;  %v740_v47 = vpop.permute.xlu0 %739 }
 0x3dc   :  { %v773_v48 = vpop.permute.xlu1 %772  ;;  %v811_v50 = vsel %vm444_vm9, %v801_v43, %v810_v14  ;;  %vm741_vm14 = vcmp.eq.s32.totalorder %v740_v47, 1  ;;  %v3739_v43 = vsel %vm54_vm0, %v822_v5, %v824_v41 }
 0x3dd   :  { %v805_v49 = vrot.slane %v773_v48, %v3565_v25  ;;  %v1026_v46 = vrot.slane %v3739_v43, %v3438_v15  ;;  %v1040_v14 = vrot.slane %v3739_v43, %v3488_v60  ;;  %v1054_v47 = vrot.slane %v3739_v43, %v3493_v62 }
 0x3de   :  { %v1033_v48 = vrot.slane %v3739_v43, %v3480_v57  ;;  %v1075_v41 = vrot.slane %v3739_v43, %v3543_v51 }
 0x3df   :  { %v812_v53 = vsel %vm446_vm10, %v805_v49, %v811_v50  ;;  %v1061_v49 = vrot.slane %v3739_v43, %v3505_v3 }
 0x3e0   :  { %v814_v18 = vsel %vm741_vm14, %v812_v53, %v3584_v34 }
 0x3e1   :  { %815 = vst.msk [vmem:[#allocation2] sm:$0xff] %vm76_vm2, %v814_v18 }
 0x3e8   :  { %v3703_v54 = vld [vmem:[#allocation2] sm:$0xff] }
 0x3e9   :  { %v836_v56 = vrot.slane %v3703_v54, %v3431_v12  ;;  %v829_v59 = vcombine.high %v3703_v54, %v3703_v54 }
 0x3eb   :  { %v852_v30 = vrot.slane %v836_v56, %v3431_v12  ;;  %v844_v22 = vcombine.high %v836_v56, %v836_v56  ;;  %v843_v28 = vrot.slane %v829_v59, %v3431_v12 }
 0x3ed   :  { %v881_v33 = vrot.slane %v852_v30, %v3438_v15  ;;  %v866_v61 = vrot.slane %v844_v22, %v3431_v12  ;;  %v859_v34 = vrot.slane %v843_v28, %v3431_v12  ;;  %v874_v63 = vcombine.high %v852_v30, %v852_v30 }
 0x3ee   :  { %v845_v1 = vcombine.high %v843_v28, %v843_v28 }
 0x3ef   :  { %v918_v37 = vadd.f32 %v881_v33, %v3447_v20  ;;  %v885_v31 = vrot.slane %v866_v61, %v3438_v15  ;;  %v897_v2 = vrot.slane %v859_v34, %v3438_v15  ;;  %v889_v4 = vrot.slane %v874_v63, %v3438_v15 }
 0x3f0   :  { %v875_v6 = vcombine.high %v859_v34, %v859_v34  ;;  %v876_v13 = vcombine.high %v866_v61, %v866_v61  ;;  %v873_v21 = vrot.slane %v845_v1, %v3431_v12 }
 0x3f1   :  { %v926_v7 = vsel %vm76_vm2, %v918_v37, -inf  ;;  %v919_v11 = vadd.f32 %v885_v31, %v3447_v20  ;;  %v922_v58 = vadd.f32 %v897_v2, %v3447_v20  ;;  %v920_v16 = vadd.f32 %v889_v4, %v3447_v20 }
 0x3f2   :  { %927 = vmax.xlane.f32.xlu1 %v926_v7  ;;  %v905_v10 = vrot.slane %v875_v6, %v3438_v15  ;;  %v893_v17 = vrot.slane %v876_v13, %v3438_v15  ;;  %v901_v40 = vrot.slane %v873_v21, %v3438_v15  ;;  %v877_v29 = vcombine.high %v873_v21, %v873_v21 }
 0x3f3   :  { %v929_v45 = vsel %vm76_vm2, %v919_v11, -inf  ;;  %v938_v23 = vsel %vm76_vm2, %v922_v58, -inf  ;;  %v932_v8 = vsel %vm76_vm2, %v920_v16, -inf }
 0x3f4   :  { %930 = vmax.xlane.f32.xlu0 %v929_v45  ;;  %v924_v24 = vadd.f32 %v905_v10, %v3447_v20  ;;  %v921_v27 = vadd.f32 %v893_v17, %v3447_v20  ;;  %v923_v35 = vadd.f32 %v901_v40, %v3447_v20  ;;  %v909_v36 = vrot.slane %v877_v29, %v3438_v15 }
 0x3f6   :  { %939 = vmax.xlane.f32.xlu1 %v938_v23  ;;  %v944_v32 = vsel %vm76_vm2, %v924_v24, -inf  ;;  %v935_v26 = vsel %vm76_vm2, %v921_v27, -inf  ;;  %v941_v19 = vsel %vm76_vm2, %v923_v35, -inf  ;;  %v925_v39 = vadd.f32 %v909_v36, %v3447_v20 }
 0x3f7   :  { %v1047_v20 = vrot.slane %v3739_v43, %v3498_v0 }
 0x3f8   :  { %933 = vmax.xlane.f32.xlu0 %v932_v8  ;;  %v947_v42 = vsel %vm76_vm2, %v925_v39, -inf }
 0x3fa   :  { %945 = vmax.xlane.f32.xlu1 %v944_v32 }
 0x3fc   :  { %936 = vmax.xlane.f32.xlu0 %v935_v26 }
 0x400   :  { %942 = vmax.xlane.f32.xlu0 %v941_v19 }
 0x404   :  { %948 = vmax.xlane.f32.xlu0 %v947_v42 }
 0x40b   :  { %1028 = vbcast.lane.b32.xlu1 %v1026_v46, 256 }
 0x40f   :  { %1042 = vbcast.lane.b32.xlu1 %v1040_v14, 256 }
 0x413   :  { %1049 = vbcast.lane.b32.xlu1 %v1047_v20, 256 }
 0x417   :  { %1056 = vbcast.lane.b32.xlu1 %v1054_v47, 256 }
 0x41a   :  { %1035 = vbcast.lane.b32.xlu0 %v1033_v48, 256 }
 0x41e   :  { %1063 = vbcast.lane.b32.xlu0 %v1061_v49, 256 }
 0x47b   :  { %v3753_v50 = vpop.xlane.xlu1 %927 }
 0x47c   :  { %v950_v53 = vsub.f32 %v918_v37, %v3753_v50 }
 0x47d   :  { %v3756_v18 = vpop.xlane.xlu0 %930 }
 0x47e   :  { %v958_v56 = vmul.f32 1.442695, %v950_v53  ;;  %v951_v59 = vsub.f32 %v919_v11, %v3756_v18 }
 0x47f   :  { %v3759_v30 = vpop.xlane.xlu1 %939 }
 0x480   :  { %3133 = vpow2.f32 %v958_v56  ;;  %v960_v22 = vmul.f32 1.442695, %v951_v59  ;;  %v954_v28 = vsub.f32 %v922_v58, %v3759_v30 }
 0x481   :  { %v3762_v33 = vpop.xlane.xlu0 %933 }
 0x482   :  { %3135 = vpow2.f32 %v960_v22  ;;  %v952_v61 = vsub.f32 %v920_v16, %v3762_v33  ;;  %v966_v63 = vmul.f32 1.442695, %v954_v28 }
 0x483   :  { %v3765_v34 = vpop.xlane.xlu1 %945 }
 0x484   :  { %v962_v1 = vmul.f32 1.442695, %v952_v61  ;;  %v956_v37 = vsub.f32 %v924_v24, %v3765_v34 }
 0x485   :  { %v3768_v31 = vpop.xlane.xlu0 %936 }
 0x486   :  { %3137 = vpow2.f32 %v962_v1  ;;  %v953_v2 = vsub.f32 %v921_v27, %v3768_v31  ;;  %v970_v4 = vmul.f32 1.442695, %v956_v37 }
 0x487   :  { %3139 = vpow2.f32 %v966_v63  ;;  %v1029_v5 = vpop.permute.xlu1 %1028 }
 0x488   :  { %v964_v6 = vmul.f32 1.442695, %v953_v2 }
 0x489   :  { %v3771_v13 = vpop.xlane.xlu0 %942 }
 0x48a   :  { %3141 = vpow2.f32 %v964_v6  ;;  %v955_v7 = vsub.f32 %v923_v35, %v3771_v13 }
 0x48b   :  { %3143 = vpow2.f32 %v970_v4  ;;  %v1043_v42 = vpop.permute.xlu1 %1042 }
 0x48c   :  { %v968_v11 = vmul.f32 1.442695, %v955_v7 }
 0x48d   :  { %v3134_v58 = vpop.eup %3133  ;;  %v3774_v10 = vpop.xlane.xlu0 %948 }
 0x48e   :  { %3145 = vpow2.f32 %v968_v11  ;;  %v957_v45 = vsub.f32 %v925_v39, %v3774_v10  ;;  %v974_v16 = vsel %vm76_vm2, %v3134_v58, 0.0  ;;  %v1068_v39 = vrot.slane %v3739_v43, %v3546_v52 }
 0x48f   :  { %v3136_v17 = vpop.eup %3135  ;;  %975 = vadd.xlane.f32.xlu1 %v974_v16  ;;  %v1050_v46 = vpop.permute.xlu1 %1049 }
 0x490   :  { %v972_v21 = vmul.f32 1.442695, %v957_v45  ;;  %v977_v23 = vsel %vm76_vm2, %v3136_v17, 0.0 }
 0x491   :  { %978 = vadd.xlane.f32.xlu0 %v977_v23  ;;  %v1036_v14 = vpop.permute.xlu0 %1035 }
 0x492   :  { %3147 = vpow2.f32 %v972_v21 }
 0x493   :  { %v3138_v24 = vpop.eup %3137  ;;  %v1057_v20 = vpop.permute.xlu1 %1056 }
 0x494   :  { %v980_v8 = vsel %vm76_vm2, %v3138_v24, 0.0  ;;  %v3140_v27 = vpop.eup %3139 }
 0x495   :  { %981 = vadd.xlane.f32.xlu1 %v980_v8  ;;  %v986_v29 = vsel %vm76_vm2, %v3140_v27, 0.0  ;;  %v1064_v47 = vpop.permute.xlu0 %1063 }
 0x497   :  { %v3142_v40 = vpop.eup %3141 }
 0x498   :  { %v983_v32 = vsel %vm76_vm2, %v3142_v40, 0.0  ;;  %v3144_v26 = vpop.eup %3143 }
 0x499   :  { %987 = vadd.xlane.f32.xlu1 %v986_v29  ;;  %984 = vadd.xlane.f32.xlu0 %v983_v32  ;;  %v992_v36 = vsel %vm76_vm2, %v3144_v26, 0.0 }
 0x49b   :  { %v3146_v35 = vpop.eup %3145 }
 0x49c   :  { %v989_v44 = vsel %vm76_vm2, %v3146_v35, 0.0 }
 0x49d   :  { %993 = vadd.xlane.f32.xlu1 %v992_v36  ;;  %990 = vadd.xlane.f32.xlu0 %v989_v44 }
 0x49f   :  { %v3148_v38 = vpop.eup %3147 }
 0x4a0   :  { %v995_v19 = vsel %vm76_vm2, %v3148_v38, 0.0 }
 0x4a1   :  { %996 = vadd.xlane.f32.xlu0 %v995_v19 }
 0x4ae   :  { %1070 = vbcast.lane.b32.xlu1 %v1068_v39, 256 }
 0x4b7   :  { %1077 = vbcast.lane.b32.xlu0 %v1075_v41, 256  ;;  %v1102_v41 = vsel %vm3046_vm1, 1, %v3380_v55 }
 0x518   :  { %v976_v48 = vpop.xlane.xlu1 %975 }
 0x519   :  { %3149 = vlog2.f32 %v976_v48 }
 0x51a   :  { %v979_v49 = vpop.xlane.xlu0 %978 }
 0x51b   :  { %3151 = vlog2.f32 %v979_v49 }
 0x51e   :  { %v982_v53 = vpop.xlane.xlu1 %981 }
 0x51f   :  { %3153 = vlog2.f32 %v982_v53 }
 0x522   :  { %v988_v56 = vpop.xlane.xlu1 %987  ;;  %v985_v59 = vpop.xlane.xlu0 %984 }
 0x523   :  { %3155 = vlog2.f32 %v988_v56 }
 0x524   :  { %3157 = vlog2.f32 %v985_v59 }
 0x526   :  { %v3150_v22 = vpop.eup %3149  ;;  %v994_v28 = vpop.xlane.xlu1 %993 }
 0x527   :  { %v991_v43 = vpop.xlane.xlu0 %990  ;;  %v999_v61 = vmul.f32 0.6931472, %v3150_v22  ;;  %3159 = vlog2.f32 %v994_v28 }
 0x528   :  { %v3152_v63 = vpop.eup %3151  ;;  %3161 = vlog2.f32 %v991_v43 }
 0x529   :  { %v1001_v1 = vmul.f32 0.6931472, %v3152_v63  ;;  %v1014_v37 = vadd.f32 %v999_v61, %v3753_v50 }
 0x52a   :  { %v1071_v35 = vpop.permute.xlu1 %1070 }
 0x52b   :  { %v997_v2 = vpop.xlane.xlu0 %996  ;;  %v1087_v4 = vadd.f32 %v1029_v5, %v1014_v37  ;;  %v1015_v6 = vadd.f32 %v1001_v1, %v3756_v18 }
 0x52c   :  { %3163 = vlog2.f32 %v997_v2  ;;  %v3154_v7 = vpop.eup %3153 }
 0x52d   :  { %v1003_v11 = vmul.f32 0.6931472, %v3154_v7  ;;  %1116 = vperm.xlu1 %3060, %v1087_v4   ;;  %v1088_v58 = vadd.f32 %v1036_v14, %v1015_v6 }
 0x52f   :  { %1119 = vperm.xlu0 %3059, %v1088_v58   ;;  %v1016_v45 = vadd.f32 %v1003_v11, %v3762_v33  ;;  %v1078_v39 = vpop.permute.xlu0 %1077 }
 0x530   :  { %v3156_v16 = vpop.eup %3155 }
 0x531   :  { %v3158_v17 = vpop.eup %3157  ;;  %v1007_v21 = vmul.f32 0.6931472, %v3156_v16  ;;  %v1089_v23 = vadd.f32 %v1043_v42, %v1016_v45 }
 0x532   :  { %v1005_v24 = vmul.f32 0.6931472, %v3158_v17 }
 0x533   :  { %1122 = vperm.xlu1 %3060, %v1089_v23   ;;  %v1018_v50 = vadd.f32 %v1007_v21, %v3759_v30 }
 0x534   :  { %v3160_v8 = vpop.eup %3159  ;;  %v1017_v27 = vadd.f32 %v1005_v24, %v3768_v31 }
 0x535   :  { %v3162_v40 = vpop.eup %3161  ;;  %v1011_v18 = vmul.f32 0.6931472, %v3160_v8  ;;  %v1091_v29 = vadd.f32 %v1057_v20, %v1018_v50 }
 0x536   :  { %v1009_v32 = vmul.f32 0.6931472, %v3162_v40  ;;  %v1090_v26 = vadd.f32 %v1050_v46, %v1017_v27  ;;  %v3830_v40 = vld [vmem:[%s4402_s3] sm:$0xff] }
 0x537   :  { %1128 = vperm.xlu1 %3060, %v1091_v29   ;;  %v1020_v33 = vadd.f32 %v1011_v18, %v3765_v34 }
 0x538   :  { %1125 = vperm.xlu0 %3059, %v1090_v26   ;;  %v1019_v44 = vadd.f32 %v1009_v32, %v3771_v13 }
 0x539   :  { %v3164_v36 = vpop.eup %3163  ;;  %v1093_v19 = vadd.f32 %v1071_v35, %v1020_v33 }
 0x53a   :  { %v1013_v38 = vmul.f32 0.6931472, %v3164_v36  ;;  %v1092_v30 = vadd.f32 %v1064_v47, %v1019_v44 }
 0x53b   :  { %1134 = vperm.xlu1 %3060, %v1093_v19  }
 0x53c   :  { %v1021_v31 = vadd.f32 %v1013_v38, %v3774_v10  ;;  %1131 = vperm.xlu0 %3059, %v1092_v30  }
 0x53e   :  { %v1094_v5 = vadd.f32 %v1078_v39, %v1021_v31 }
 0x53f   :  { %1104 = vperm.xlu1 %3060, %v1102_v41  }
 0x540   :  { %1137 = vperm.xlu0 %3059, %v1094_v5  }
 0x5a8   :  { %v1117_v34 = vpop.permute.xlu1 %1116 }
 0x5a9   :  { %v1142_v20 = vrot.slane %v1117_v34, %v3565_v25 }
 0x5aa   :  { %v1120_v42 = vpop.permute.xlu0 %1119 }
 0x5ab   :  { %v1146_v13 = vrot.slane %v1120_v42, %v3565_v25 }
 0x5ad   :  { %v1171_v49 = vsel %vm434_vm4, %v1146_v13, %v1142_v20 }
 0x5ae   :  { %v1123_v46 = vpop.permute.xlu1 %1122 }
 0x5af   :  { %v1150_v14 = vrot.slane %v1123_v46, %v3565_v25 }
 0x5b1   :  { %v1172_v53 = vsel %vm436_vm5, %v1150_v14, %v1171_v49 }
 0x5b2   :  { %v1129_v47 = vpop.permute.xlu1 %1128 }
 0x5b3   :  { %v1126_v48 = vpop.permute.xlu0 %1125  ;;  %v1158_v56 = vrot.slane %v1129_v47, %v3565_v25 }
 0x5b4   :  { %v1154_v10 = vrot.slane %v1126_v48, %v3565_v25 }
 0x5b6   :  { %v1173_v59 = vsel %vm438_vm6, %v1154_v10, %v1172_v53  ;;  %v1135_v22 = vpop.permute.xlu1 %1134 }
 0x5b7   :  { %v1132_v28 = vpop.permute.xlu0 %1131  ;;  %v1166_v61 = vrot.slane %v1135_v22, %v3565_v25  ;;  %v1174_v63 = vsel %vm440_vm7, %v1158_v56, %v1173_v59  ;;  %v1185_v56 = vld [vmem:[#allocation5 + $0xc] sm:$0xf] }
 0x5b8   :  { %v1162_v43 = vrot.slane %v1132_v28, %v3565_v25  ;;  %v1183_v59 = vld [vmem:[#allocation3 + $0xc] sm:$0xf]  ;;  %vm1186_vm11 = vcmp.gt.f32.partialorder %v1185_v56, 0.5 }
 0x5b9   :  { %v1189_v28 = vrot.slane %v1183_v59, 4 }
 0x5ba   :  { %v1175_v1 = vsel %vm442_vm8, %v1162_v43, %v1174_v63  ;;  %v1105_v37 = vpop.permute.xlu1 %1104  ;;  %v1187_v43 = vsel %vm1186_vm11, %v1183_v59, -10000.0  ;;  %vm3049_vm11 = vcmp.gt.s32.totalorder %v3679_v9, 5 }
 0x5bb   :  { %v1138_v2 = vpop.permute.xlu0 %1137  ;;  %v1176_v6 = vsel %vm444_vm9, %v1166_v61, %v1175_v1  ;;  %vm1106_vm3 = vcmp.eq.s32.totalorder %v1105_v37, 1  ;;  %v3857_v61 = vsel %vm54_vm0, %v1187_v43, %v1189_v28 }
 0x5bc   :  { %v1170_v4 = vrot.slane %v1138_v2, %v3565_v25  ;;  %v1398_v63 = vrot.slane %v3857_v61, %v3480_v57  ;;  %v1405_v1 = vrot.slane %v3857_v61, %v3488_v60  ;;  %v1412_v37 = vrot.slane %v3857_v61, %v3498_v0 }
 0x5bd   :  { %v1391_v2 = vrot.slane %v3857_v61, %v3438_v15  ;;  %v1433_v28 = vrot.slane %v3857_v61, %v3546_v52 }
 0x5be   :  { %v1177_v7 = vsel %vm446_vm10, %v1170_v4, %v1176_v6  ;;  %v1426_v4 = vrot.slane %v3857_v61, %v3505_v3  ;;  %v1419_v6 = vrot.slane %v3857_v61, %v3493_v62 }
 0x5bf   :  { %v1179_v11 = vsel %vm1106_vm3, %v1177_v7, %v3703_v54 }
 0x5c0   :  { %1180 = vst.msk [vmem:[#allocation2] sm:$0xff] %vm76_vm2, %v1179_v11 }
 0x5c7   :  { %v3816_v58 = vld [vmem:[#allocation2] sm:$0xff] }
 0x5c8   :  { %v1201_v45 = vrot.slane %v3816_v58, %v3431_v12  ;;  %v1194_v16 = vcombine.high %v3816_v58, %v3816_v58 }
 0x5ca   :  { %v1217_v17 = vrot.slane %v1201_v45, %v3431_v12  ;;  %v1209_v21 = vcombine.high %v1201_v45, %v1201_v45  ;;  %v1208_v23 = vrot.slane %v1194_v16, %v3431_v12 }
 0x5cc   :  { %v1246_v24 = vrot.slane %v1217_v17, %v3438_v15  ;;  %v1231_v50 = vrot.slane %v1209_v21, %v3431_v12  ;;  %v1239_v54 = vcombine.high %v1217_v17, %v1217_v17  ;;  %v1210_v8 = vcombine.high %v1208_v23, %v1208_v23 }
 0x5cd   :  { %v1224_v27 = vrot.slane %v1208_v23, %v3431_v12 }
 0x5ce   :  { %v1283_v18 = vadd.f32 %v3830_v40, %v1246_v24  ;;  %v1250_v29 = vrot.slane %v1231_v50, %v3438_v15  ;;  %v1254_v32 = vrot.slane %v1239_v54, %v3438_v15  ;;  %v1238_v26 = vrot.slane %v1210_v8, %v3431_v12 }
 0x5cf   :  { %v1262_v35 = vrot.slane %v1224_v27, %v3438_v15  ;;  %v1241_v33 = vcombine.high %v1231_v50, %v1231_v50  ;;  %v1240_v46 = vcombine.high %v1224_v27, %v1224_v27 }
 0x5d0   :  { %v1291_v36 = vsel %vm76_vm2, %v1283_v18, -inf  ;;  %v1284_v44 = vadd.f32 %v3830_v40, %v1250_v29  ;;  %v1285_v38 = vadd.f32 %v3830_v40, %v1254_v32  ;;  %v1266_v19 = vrot.slane %v1238_v26, %v3438_v15 }
 0x5d1   :  { %1292 = vmax.xlane.f32.xlu0 %v1291_v36  ;;  %v1242_v30 = vcombine.high %v1238_v26, %v1238_v26  ;;  %v1287_v34 = vadd.f32 %v3830_v40, %v1262_v35  ;;  %v1258_v42 = vrot.slane %v1241_v33, %v3438_v15  ;;  %v1270_v48 = vrot.slane %v1240_v46, %v3438_v15 }
 0x5d2   :  { %v1294_v39 = vsel %vm76_vm2, %v1284_v44, -inf  ;;  %v1288_v31 = vadd.f32 %v3830_v40, %v1266_v19  ;;  %v1297_v5 = vsel %vm76_vm2, %v1285_v38, -inf }
 0x5d3   :  { %1295 = vmax.xlane.f32.xlu1 %v1294_v39  ;;  %v1274_v41 = vrot.slane %v1242_v30, %v3438_v15  ;;  %v1303_v20 = vsel %vm76_vm2, %v1287_v34, -inf  ;;  %v1286_v47 = vadd.f32 %v3830_v40, %v1258_v42  ;;  %v1289_v53 = vadd.f32 %v3830_v40, %v1270_v48 }
 0x5d4   :  { %v1306_v13 = vsel %vm76_vm2, %v1288_v31, -inf }
 0x5d5   :  { %1298 = vmax.xlane.f32.xlu0 %v1297_v5  ;;  %v1290_v14 = vadd.f32 %v3830_v40, %v1274_v41  ;;  %v1300_v10 = vsel %vm76_vm2, %v1286_v47, -inf  ;;  %v1309_v22 = vsel %vm76_vm2, %v1289_v53, -inf }
 0x5d7   :  { %1307 = vmax.xlane.f32.xlu1 %v1306_v13  ;;  %v1312_v49 = vsel %vm76_vm2, %v1290_v14, -inf }
 0x5d9   :  { %1304 = vmax.xlane.f32.xlu0 %v1303_v20 }
 0x5db   :  { %1313 = vmax.xlane.f32.xlu1 %v1312_v49 }
 0x5dd   :  { %1301 = vmax.xlane.f32.xlu0 %v1300_v10 }
 0x5e1   :  { %1310 = vmax.xlane.f32.xlu0 %v1309_v22  ;;  %v1440_v22 = vrot.slane %v3857_v61, %v3543_v51 }
 0x5ec   :  { %1400 = vbcast.lane.b32.xlu1 %v1398_v63, 256 }
 0x5f0   :  { %1407 = vbcast.lane.b32.xlu1 %v1405_v1, 256 }
 0x5f4   :  { %1414 = vbcast.lane.b32.xlu1 %v1412_v37, 256 }
 0x5f7   :  { %1393 = vbcast.lane.b32.xlu0 %v1391_v2, 256 }
 0x5f8   :  { %1428 = vbcast.lane.b32.xlu1 %v1426_v4, 256 }
 0x5fb   :  { %1421 = vbcast.lane.b32.xlu0 %v1419_v6, 256 }
 0x65a   :  { %v3871_v7 = vpop.xlane.xlu0 %1292 }
 0x65b   :  { %v1315_v11 = vsub.f32 %v1283_v18, %v3871_v7 }
 0x65c   :  { %v3874_v45 = vpop.xlane.xlu1 %1295 }
 0x65d   :  { %v1323_v16 = vmul.f32 1.442695, %v1315_v11  ;;  %v1316_v17 = vsub.f32 %v1284_v44, %v3874_v45 }
 0x65e   :  { %v3877_v21 = vpop.xlane.xlu0 %1298 }
 0x65f   :  { %3165 = vpow2.f32 %v1323_v16  ;;  %v1325_v23 = vmul.f32 1.442695, %v1316_v17  ;;  %v1317_v24 = vsub.f32 %v1285_v38, %v3877_v21 }
 0x660   :  { %v3880_v50 = vpop.xlane.xlu1 %1307 }
 0x661   :  { %3167 = vpow2.f32 %v1325_v23  ;;  %v1327_v54 = vmul.f32 1.442695, %v1317_v24  ;;  %v1320_v18 = vsub.f32 %v1288_v31, %v3880_v50 }
 0x662   :  { %v3882_v8 = vpop.xlane.xlu0 %1304 }
 0x663   :  { %3169 = vpow2.f32 %v1327_v54  ;;  %v1319_v27 = vsub.f32 %v1287_v34, %v3882_v8  ;;  %v1333_v33 = vmul.f32 1.442695, %v1320_v18 }
 0x664   :  { %v3886_v32 = vpop.xlane.xlu1 %1313 }
 0x665   :  { %v1331_v29 = vmul.f32 1.442695, %v1319_v27  ;;  %v1322_v36 = vsub.f32 %v1290_v14, %v3886_v32 }
 0x666   :  { %v3888_v26 = vpop.xlane.xlu0 %1301 }
 0x667   :  { %3171 = vpow2.f32 %v1331_v29  ;;  %v1318_v35 = vsub.f32 %v1286_v47, %v3888_v26  ;;  %v1337_v39 = vmul.f32 1.442695, %v1322_v36 }
 0x668   :  { %v1401_v43 = vpop.permute.xlu1 %1400 }
 0x669   :  { %v1329_v44 = vmul.f32 1.442695, %v1318_v35 }
 0x66a   :  { %v3892_v38 = vpop.xlane.xlu0 %1310 }
 0x66b   :  { %3173 = vpow2.f32 %v1329_v44  ;;  %v1321_v19 = vsub.f32 %v1289_v53, %v3892_v38 }
 0x66c   :  { %v3166_v30 = vpop.eup %3165  ;;  %3175 = vpow2.f32 %v1333_v33  ;;  %v1408_v63 = vpop.permute.xlu1 %1407 }
 0x66d   :  { %v1335_v31 = vmul.f32 1.442695, %v1321_v19  ;;  %v1339_v41 = vsel %vm76_vm2, %v3166_v30, 0.0 }
 0x66e   :  { %v3168_v5 = vpop.eup %3167  ;;  %1340 = vadd.xlane.f32.xlu0 %v1339_v41  ;;  %v1394_v1 = vpop.permute.xlu0 %1393 }
 0x66f   :  { %3177 = vpow2.f32 %v1335_v31  ;;  %v1342_v34 = vsel %vm76_vm2, %v3168_v5, 0.0 }
 0x670   :  { %v3170_v42 = vpop.eup %3169  ;;  %1343 = vadd.xlane.f32.xlu1 %v1342_v34  ;;  %3179 = vpow2.f32 %v1337_v39  ;;  %v1415_v37 = vpop.permute.xlu1 %1414 }
 0x671   :  { %v1345_v46 = vsel %vm76_vm2, %v3170_v42, 0.0 }
 0x672   :  { %1346 = vadd.xlane.f32.xlu0 %v1345_v46  ;;  %v1422_v2 = vpop.permute.xlu0 %1421 }
 0x674   :  { %v3172_v13 = vpop.eup %3171  ;;  %v1429_v4 = vpop.permute.xlu1 %1428 }
 0x675   :  { %v1351_v14 = vsel %vm76_vm2, %v3172_v13, 0.0 }
 0x676   :  { %1352 = vadd.xlane.f32.xlu0 %v1351_v14 }
 0x678   :  { %v3174_v20 = vpop.eup %3173 }
 0x679   :  { %v1348_v47 = vsel %vm76_vm2, %v3174_v20, 0.0  ;;  %v3176_v48 = vpop.eup %3175 }
 0x67a   :  { %1349 = vadd.xlane.f32.xlu1 %v1348_v47  ;;  %v1354_v53 = vsel %vm76_vm2, %v3176_v48, 0.0 }
 0x67c   :  { %v3178_v49 = vpop.eup %3177 }
 0x67d   :  { %v1357_v10 = vsel %vm76_vm2, %v3178_v49, 0.0  ;;  %v3180_v56 = vpop.eup %3179 }
 0x67e   :  { %1358 = vadd.xlane.f32.xlu0 %v1357_v10  ;;  %1355 = vadd.xlane.f32.xlu1 %v1354_v53  ;;  %v1360_v59 = vsel %vm76_vm2, %v3180_v56, 0.0 }
 0x682   :  { %1361 = vadd.xlane.f32.xlu1 %v1360_v59 }
 0x693   :  { %1442 = vbcast.lane.b32.xlu1 %v1440_v22, 256 }
 0x694   :  { %1435 = vbcast.lane.b32.xlu0 %v1433_v28, 256 }
 0x6f7   :  { %v1341_v6 = vpop.xlane.xlu0 %1340 }
 0x6f8   :  { %3181 = vlog2.f32 %v1341_v6 }
 0x6f9   :  { %v1344_v11 = vpop.xlane.xlu1 %1343 }
 0x6fa   :  { %3183 = vlog2.f32 %v1344_v11 }
 0x6fb   :  { %v1347_v16 = vpop.xlane.xlu0 %1346 }
 0x6fc   :  { %3185 = vlog2.f32 %v1347_v16 }
 0x6ff   :  { %v1353_v17 = vpop.xlane.xlu0 %1352 }
 0x700   :  { %3187 = vlog2.f32 %v1353_v17 }
 0x703   :  { %v1350_v23 = vpop.xlane.xlu1 %1349 }
 0x704   :  { %3189 = vlog2.f32 %v1350_v23 }
 0x705   :  { %v3182_v24 = vpop.eup %3181 }
 0x706   :  { %v1364_v61 = vmul.f32 0.6931472, %v3182_v24 }
 0x707   :  { %v3184_v54 = vpop.eup %3183  ;;  %v1359_v27 = vpop.xlane.xlu0 %1358 }
 0x708   :  { %v1356_v18 = vpop.xlane.xlu1 %1355  ;;  %v1379_v29 = vadd.f32 %v1364_v61, %v3871_v7  ;;  %v1366_v35 = vmul.f32 0.6931472, %v3184_v54  ;;  %3191 = vlog2.f32 %v1359_v27 }
 0x709   :  { %v3186_v33 = vpop.eup %3185  ;;  %3193 = vlog2.f32 %v1356_v18 }
 0x70a   :  { %v1380_v36 = vadd.f32 %v1366_v35, %v3874_v45  ;;  %v1368_v44 = vmul.f32 0.6931472, %v3186_v33  ;;  %v1452_v19 = vadd.f32 %v1394_v1, %v1379_v29 }
 0x70b   :  { %v1436_v49 = vpop.permute.xlu0 %1435 }
 0x70c   :  { %v1362_v30 = vpop.xlane.xlu1 %1361  ;;  %v1381_v39 = vadd.f32 %v1368_v44, %v3877_v21  ;;  %1481 = vperm.xlu0 %3059, %v1452_v19   ;;  %v1453_v31 = vadd.f32 %v1401_v43, %v1380_v36  ;;  %v1467_v43 = vsel %vm3047_vm12, 1, %v3380_v55 }
 0x70d   :  { %3195 = vlog2.f32 %v1362_v30  ;;  %v3188_v41 = vpop.eup %3187 }
 0x70e   :  { %v1372_v5 = vmul.f32 0.6931472, %v3188_v41  ;;  %1484 = vperm.xlu1 %3060, %v1453_v31   ;;  %v1454_v34 = vadd.f32 %v1408_v63, %v1381_v39 }
 0x710   :  { %v1383_v7 = vadd.f32 %v1372_v5, %v3882_v8  ;;  %1487 = vperm.xlu0 %3059, %v1454_v34   ;;  %v1443_v28 = vpop.permute.xlu1 %1442 }
 0x711   :  { %v3190_v42 = vpop.eup %3189 }
 0x712   :  { %v1370_v46 = vmul.f32 0.6931472, %v3190_v42  ;;  %v1456_v13 = vadd.f32 %v1422_v2, %v1383_v7 }
 0x714   :  { %v1382_v45 = vadd.f32 %v1370_v46, %v3888_v26  ;;  %1493 = vperm.xlu0 %3059, %v1456_v13  }
 0x715   :  { %v3192_v14 = vpop.eup %3191 }
 0x716   :  { %v3194_v20 = vpop.eup %3193  ;;  %v1376_v47 = vmul.f32 0.6931472, %v3192_v14  ;;  %v1455_v21 = vadd.f32 %v1415_v37, %v1382_v45 }
 0x717   :  { %v1374_v48 = vmul.f32 0.6931472, %v3194_v20 }
 0x718   :  { %1490 = vperm.xlu1 %3060, %v1455_v21   ;;  %v1385_v10 = vadd.f32 %v1376_v47, %v3892_v38 }
 0x719   :  { %v1384_v56 = vadd.f32 %v1374_v48, %v3880_v50 }
 0x71a   :  { %v3196_v53 = vpop.eup %3195  ;;  %v1458_v59 = vadd.f32 %v1436_v49, %v1385_v10 }
 0x71b   :  { %v1378_v8 = vmul.f32 0.6931472, %v3196_v53  ;;  %v1457_v22 = vadd.f32 %v1429_v4, %v1384_v56 }
 0x71c   :  { %1499 = vperm.xlu0 %3059, %v1458_v59  }
 0x71d   :  { %v1386_v26 = vadd.f32 %v1378_v8, %v3886_v32  ;;  %1496 = vperm.xlu1 %3060, %v1457_v22  }
 0x71f   :  { %v1459_v63 = vadd.f32 %v1443_v28, %v1386_v26 }
 0x720   :  { %1469 = vperm.xlu0 %3059, %v1467_v43  }
 0x721   :  { %1502 = vperm.xlu1 %3060, %v1459_v63  }
 0x787   :  { %v1482_v1 = vpop.permute.xlu0 %1481 }
 0x788   :  { %v1507_v2 = vrot.slane %v1482_v1, %v3565_v25 }
 0x789   :  { %v1485_v38 = vpop.permute.xlu1 %1484 }
 0x78a   :  { %v1511_v50 = vrot.slane %v1485_v38, %v3565_v25 }
 0x78b   :  { %v1488_v37 = vpop.permute.xlu0 %1487 }
 0x78c   :  { %v1515_v6 = vrot.slane %v1488_v37, %v3565_v25  ;;  %v1536_v4 = vsel %vm434_vm4, %v1511_v50, %v1507_v2 }
 0x78e   :  { %v1537_v17 = vsel %vm436_vm5, %v1515_v6, %v1536_v4 }
 0x78f   :  { %v1494_v11 = vpop.permute.xlu0 %1493 }
 0x790   :  { %v1523_v61 = vrot.slane %v1494_v11, %v3565_v25 }
 0x793   :  { %v1491_v16 = vpop.permute.xlu1 %1490 }
 0x794   :  { %v1519_v32 = vrot.slane %v1491_v16, %v3565_v25 }
 0x796   :  { %v1538_v23 = vsel %vm438_vm6, %v1519_v32, %v1537_v17  ;;  %v1550_v32 = vld [vmem:[#allocation5 + $0x10] sm:$0xf] }
 0x797   :  { %v1500_v24 = vpop.permute.xlu0 %1499  ;;  %v1539_v29 = vsel %vm440_vm7, %v1523_v61, %v1538_v23  ;;  %v1548_v17 = vld [vmem:[#allocation3 + $0x10] sm:$0xf]  ;;  %vm1551_vm14 = vcmp.gt.f32.partialorder %v1550_v32, 0.5 }
 0x798   :  { %v1497_v54 = vpop.permute.xlu1 %1496  ;;  %v1531_v18 = vrot.slane %v1500_v24, %v3565_v25  ;;  %v1554_v61 = vrot.slane %v1548_v17, 4 }
 0x799   :  { %v1527_v27 = vrot.slane %v1497_v54, %v3565_v25  ;;  %v1552_v54 = vsel %vm1551_vm14, %v1548_v17, -10000.0  ;;  %vm3050_vm14 = vcmp.gt.s32.totalorder %v3679_v9, 6 }
 0x79b   :  { %v1540_v35 = vsel %vm442_vm8, %v1527_v27, %v1539_v29  ;;  %v1470_v33 = vpop.permute.xlu0 %1469 }
 0x79c   :  { %v1503_v36 = vpop.permute.xlu1 %1502  ;;  %v1541_v19 = vsel %vm444_vm9, %v1531_v18, %v1540_v35  ;;  %vm1471_vm13 = vcmp.eq.s32.totalorder %v1470_v33, 1  ;;  %v3970_v18 = vsel %vm54_vm0, %v1552_v54, %v1554_v61 }
 0x79d   :  { %v1535_v44 = vrot.slane %v1503_v36, %v3565_v25  ;;  %v1756_v29 = vrot.slane %v3970_v18, %v3438_v15  ;;  %v1770_v35 = vrot.slane %v3970_v18, %v3488_v60  ;;  %v1777_v33 = vrot.slane %v3970_v18, %v3498_v0 }
 0x79e   :  { %v1784_v36 = vrot.slane %v3970_v18, %v3493_v62  ;;  %v1798_v61 = vrot.slane %v3970_v18, %v3546_v52  ;;  %v1805_v54 = vrot.slane %v3970_v18, %v3543_v51 }
 0x79f   :  { %v1542_v30 = vsel %vm446_vm10, %v1535_v44, %v1541_v19  ;;  %v1763_v44 = vrot.slane %v3970_v18, %v3480_v57  ;;  %v1791_v19 = vrot.slane %v3970_v18, %v3505_v3 }
 0x7a0   :  { %v1544_v39 = vsel %vm1471_vm13, %v1542_v30, %v3816_v58 }
 0x7a1   :  { %1545 = vst.msk [vmem:[#allocation2] sm:$0xff] %vm76_vm2, %v1544_v39 }
 0x7a8   :  { %v3934_v31 = vld [vmem:[#allocation2] sm:$0xff] }
 0x7a9   :  { %v1566_v41 = vrot.slane %v3934_v31, %v3431_v12  ;;  %v1559_v5 = vcombine.high %v3934_v31, %v3934_v31 }
 0x7ab   :  { %v1582_v34 = vrot.slane %v1566_v41, %v3431_v12  ;;  %v1574_v7 = vcombine.high %v1566_v41, %v1566_v41  ;;  %v1573_v42 = vrot.slane %v1559_v5, %v3431_v12 }
 0x7ad   :  { %v1611_v46 = vrot.slane %v1582_v34, %v3438_v15  ;;  %v1596_v13 = vrot.slane %v1574_v7, %v3431_v12  ;;  %v1589_v58 = vrot.slane %v1573_v42, %v3431_v12  ;;  %v1604_v45 = vcombine.high %v1582_v34, %v1582_v34 }
 0x7ae   :  { %v1575_v14 = vcombine.high %v1573_v42, %v1573_v42 }
 0x7af   :  { %v1648_v20 = vadd.f32 %v3830_v40, %v1611_v46  ;;  %v1615_v47 = vrot.slane %v1596_v13, %v3438_v15  ;;  %v1627_v21 = vrot.slane %v1589_v58, %v3438_v15  ;;  %v1619_v48 = vrot.slane %v1604_v45, %v3438_v15 }
 0x7b0   :  { %v1605_v49 = vcombine.high %v1589_v58, %v1589_v58  ;;  %v1606_v10 = vcombine.high %v1596_v13, %v1596_v13  ;;  %v1603_v43 = vrot.slane %v1575_v14, %v3431_v12 }
 0x7b1   :  { %v1656_v53 = vsel %vm76_vm2, %v1648_v20, -inf  ;;  %v1649_v56 = vadd.f32 %v3830_v40, %v1615_v47  ;;  %v1652_v8 = vadd.f32 %v3830_v40, %v1627_v21  ;;  %v1650_v28 = vadd.f32 %v3830_v40, %v1619_v48 }
 0x7b2   :  { %1657 = vmax.xlane.f32.xlu1 %v1656_v53  ;;  %v1635_v59 = vrot.slane %v1605_v49, %v3438_v15  ;;  %v1623_v26 = vrot.slane %v1606_v10, %v3438_v15  ;;  %v1631_v50 = vrot.slane %v1603_v43, %v3438_v15  ;;  %v1607_v2 = vcombine.high %v1603_v43, %v1603_v43 }
 0x7b3   :  { %v1659_v22 = vsel %vm76_vm2, %v1649_v56, -inf  ;;  %v1668_v63 = vsel %vm76_vm2, %v1652_v8, -inf  ;;  %v1662_v38 = vsel %vm76_vm2, %v1650_v28, -inf }
 0x7b4   :  { %1660 = vmax.xlane.f32.xlu0 %v1659_v22  ;;  %v1654_v1 = vadd.f32 %v3830_v40, %v1635_v59  ;;  %v1651_v37 = vadd.f32 %v3830_v40, %v1623_v26  ;;  %v1653_v11 = vadd.f32 %v3830_v40, %v1631_v50  ;;  %v1639_v16 = vrot.slane %v1607_v2, %v3438_v15 }
 0x7b6   :  { %1669 = vmax.xlane.f32.xlu1 %v1668_v63  ;;  %v1674_v6 = vsel %vm76_vm2, %v1654_v1, -inf  ;;  %v1665_v4 = vsel %vm76_vm2, %v1651_v37, -inf  ;;  %v1671_v23 = vsel %vm76_vm2, %v1653_v11, -inf  ;;  %v1655_v24 = vadd.f32 %v3830_v40, %v1639_v16 }
 0x7b8   :  { %1663 = vmax.xlane.f32.xlu0 %v1662_v38  ;;  %v1677_v27 = vsel %vm76_vm2, %v1655_v24, -inf }
 0x7ba   :  { %1675 = vmax.xlane.f32.xlu1 %v1674_v6 }
 0x7bc   :  { %1666 = vmax.xlane.f32.xlu0 %v1665_v4 }
 0x7c0   :  { %1672 = vmax.xlane.f32.xlu0 %v1671_v23 }
 0x7c4   :  { %1678 = vmax.xlane.f32.xlu0 %v1677_v27 }
 0x7cb   :  { %1758 = vbcast.lane.b32.xlu1 %v1756_v29, 256 }
 0x7cf   :  { %1772 = vbcast.lane.b32.xlu1 %v1770_v35, 256 }
 0x7d3   :  { %1779 = vbcast.lane.b32.xlu1 %v1777_v33, 256 }
 0x7d7   :  { %1786 = vbcast.lane.b32.xlu1 %v1784_v36, 256 }
 0x7da   :  { %1765 = vbcast.lane.b32.xlu0 %v1763_v44, 256 }
 0x7de   :  { %1793 = vbcast.lane.b32.xlu0 %v1791_v19, 256 }
 0x83b   :  { %v3984_v30 = vpop.xlane.xlu1 %1657 }
 0x83c   :  { %v1680_v39 = vsub.f32 %v1648_v20, %v3984_v30 }
 0x83d   :  { %v3987_v41 = vpop.xlane.xlu0 %1660 }
 0x83e   :  { %v1688_v5 = vmul.f32 1.442695, %v1680_v39  ;;  %v1681_v34 = vsub.f32 %v1649_v56, %v3987_v41 }
 0x83f   :  { %v3990_v7 = vpop.xlane.xlu1 %1669 }
 0x840   :  { %3197 = vpow2.f32 %v1688_v5  ;;  %v1690_v42 = vmul.f32 1.442695, %v1681_v34  ;;  %v1684_v46 = vsub.f32 %v1652_v8, %v3990_v7 }
 0x841   :  { %v3993_v13 = vpop.xlane.xlu0 %1663 }
 0x842   :  { %3199 = vpow2.f32 %v1690_v42  ;;  %v1682_v58 = vsub.f32 %v1650_v28, %v3993_v13  ;;  %v1696_v14 = vmul.f32 1.442695, %v1684_v46 }
 0x843   :  { %v3996_v45 = vpop.xlane.xlu1 %1675 }
 0x844   :  { %v1692_v20 = vmul.f32 1.442695, %v1682_v58  ;;  %v1686_v47 = vsub.f32 %v1654_v1, %v3996_v45 }
 0x845   :  { %v3999_v21 = vpop.xlane.xlu0 %1666 }
 0x846   :  { %3201 = vpow2.f32 %v1692_v20  ;;  %v1683_v48 = vsub.f32 %v1651_v37, %v3999_v21  ;;  %v1700_v49 = vmul.f32 1.442695, %v1686_v47 }
 0x847   :  { %3203 = vpow2.f32 %v1696_v14  ;;  %v1759_v27 = vpop.permute.xlu1 %1758 }
 0x848   :  { %v1694_v10 = vmul.f32 1.442695, %v1683_v48 }
 0x849   :  { %v4002_v53 = vpop.xlane.xlu0 %1672 }
 0x84a   :  { %3205 = vpow2.f32 %v1694_v10  ;;  %v1685_v56 = vsub.f32 %v1653_v11, %v4002_v53 }
 0x84b   :  { %3207 = vpow2.f32 %v1700_v49  ;;  %v1773_v29 = vpop.permute.xlu1 %1772 }
 0x84c   :  { %v1698_v8 = vmul.f32 1.442695, %v1685_v56 }
 0x84d   :  { %v3198_v59 = vpop.eup %3197  ;;  %v4005_v22 = vpop.xlane.xlu0 %1678 }
 0x84e   :  { %3209 = vpow2.f32 %v1698_v8  ;;  %v1687_v28 = vsub.f32 %v1655_v24, %v4005_v22  ;;  %v1704_v26 = vsel %vm76_vm2, %v3198_v59, 0.0 }
 0x84f   :  { %v3200_v43 = vpop.eup %3199  ;;  %1705 = vadd.xlane.f32.xlu1 %v1704_v26  ;;  %v1780_v35 = vpop.permute.xlu1 %1779 }
 0x850   :  { %v1702_v63 = vmul.f32 1.442695, %v1687_v28  ;;  %v1707_v1 = vsel %vm76_vm2, %v3200_v43, 0.0 }
 0x851   :  { %1708 = vadd.xlane.f32.xlu0 %v1707_v1  ;;  %v1766_v33 = vpop.permute.xlu0 %1765 }
 0x852   :  { %3211 = vpow2.f32 %v1702_v63 }
 0x853   :  { %v3202_v38 = vpop.eup %3201  ;;  %v1787_v36 = vpop.permute.xlu1 %1786 }
 0x854   :  { %v1710_v37 = vsel %vm76_vm2, %v3202_v38, 0.0  ;;  %v3204_v50 = vpop.eup %3203 }
 0x855   :  { %1711 = vadd.xlane.f32.xlu1 %v1710_v37  ;;  %v1716_v6 = vsel %vm76_vm2, %v3204_v50, 0.0  ;;  %v1794_v44 = vpop.permute.xlu0 %1793 }
 0x857   :  { %v3206_v2 = vpop.eup %3205 }
 0x858   :  { %v1713_v4 = vsel %vm76_vm2, %v3206_v2, 0.0  ;;  %v3208_v11 = vpop.eup %3207 }
 0x859   :  { %1717 = vadd.xlane.f32.xlu1 %v1716_v6  ;;  %1714 = vadd.xlane.f32.xlu0 %v1713_v4  ;;  %v1722_v32 = vsel %vm76_vm2, %v3208_v11, 0.0 }
 0x85b   :  { %v3210_v16 = vpop.eup %3209 }
 0x85c   :  { %v1719_v17 = vsel %vm76_vm2, %v3210_v16, 0.0 }
 0x85d   :  { %1723 = vadd.xlane.f32.xlu1 %v1722_v32  ;;  %1720 = vadd.xlane.f32.xlu0 %v1719_v17 }
 0x85f   :  { %v3212_v23 = vpop.eup %3211 }
 0x860   :  { %v1725_v24 = vsel %vm76_vm2, %v3212_v23, 0.0 }
 0x861   :  { %1726 = vadd.xlane.f32.xlu0 %v1725_v24 }
 0x86e   :  { %1800 = vbcast.lane.b32.xlu1 %v1798_v61, 256 }
 0x877   :  { %1807 = vbcast.lane.b32.xlu0 %v1805_v54, 256 }
 0x8d8   :  { %v1706_v19 = vpop.xlane.xlu1 %1705 }
 0x8d9   :  { %3213 = vlog2.f32 %v1706_v19 }
 0x8da   :  { %v1709_v39 = vpop.xlane.xlu0 %1708 }
 0x8db   :  { %3215 = vlog2.f32 %v1709_v39 }
 0x8de   :  { %v1712_v5 = vpop.xlane.xlu1 %1711 }
 0x8df   :  { %3217 = vlog2.f32 %v1712_v5 }
 0x8e2   :  { %v1718_v34 = vpop.xlane.xlu1 %1717  ;;  %v1715_v42 = vpop.xlane.xlu0 %1714 }
 0x8e3   :  { %3219 = vlog2.f32 %v1718_v34 }
 0x8e4   :  { %3221 = vlog2.f32 %v1715_v42 }
 0x8e6   :  { %v3214_v46 = vpop.eup %3213  ;;  %v1724_v58 = vpop.xlane.xlu1 %1723 }
 0x8e7   :  { %v1721_v18 = vpop.xlane.xlu0 %1720  ;;  %v1729_v14 = vmul.f32 0.6931472, %v3214_v46  ;;  %3223 = vlog2.f32 %v1724_v58 }
 0x8e8   :  { %v3216_v20 = vpop.eup %3215  ;;  %3225 = vlog2.f32 %v1721_v18 }
 0x8e9   :  { %v1744_v47 = vadd.f32 %v1729_v14, %v3984_v30  ;;  %v1731_v48 = vmul.f32 0.6931472, %v3216_v20 }
 0x8ea   :  { %v1801_v32 = vpop.permute.xlu1 %1800 }
 0x8eb   :  { %v1727_v49 = vpop.xlane.xlu0 %1726  ;;  %v1745_v10 = vadd.f32 %v1731_v48, %v3987_v41  ;;  %v1817_v56 = vadd.f32 %v1759_v27, %v1744_v47  ;;  %v1832_v27 = vsel %vm3048_vm15, 1, %v3380_v55 }
 0x8ec   :  { %3227 = vlog2.f32 %v1727_v49  ;;  %v3218_v8 = vpop.eup %3217 }
 0x8ed   :  { %v1733_v59 = vmul.f32 0.6931472, %v3218_v8  ;;  %1846 = vperm.xlu1 %3060, %v1817_v56   ;;  %v1818_v28 = vadd.f32 %v1766_v33, %v1745_v10 }
 0x8ef   :  { %v1746_v26 = vadd.f32 %v1733_v59, %v3993_v13  ;;  %1849 = vperm.xlu0 %3059, %v1818_v28   ;;  %v1808_v54 = vpop.permute.xlu0 %1807 }
 0x8f0   :  { %v3220_v43 = vpop.eup %3219 }
 0x8f1   :  { %v3222_v63 = vpop.eup %3221  ;;  %v1737_v1 = vmul.f32 0.6931472, %v3220_v43  ;;  %v1819_v38 = vadd.f32 %v1773_v29, %v1746_v26 }
 0x8f2   :  { %v1735_v37 = vmul.f32 0.6931472, %v3222_v63 }
 0x8f3   :  { %v1748_v30 = vadd.f32 %v1737_v1, %v3990_v7  ;;  %1852 = vperm.xlu1 %3060, %v1819_v38  }
 0x8f4   :  { %v3224_v50 = vpop.eup %3223  ;;  %v1747_v41 = vadd.f32 %v1735_v37, %v3999_v21 }
 0x8f5   :  { %v3226_v2 = vpop.eup %3225  ;;  %v1741_v6 = vmul.f32 0.6931472, %v3224_v50  ;;  %v1821_v4 = vadd.f32 %v1787_v36, %v1748_v30 }
 0x8f6   :  { %v1739_v11 = vmul.f32 0.6931472, %v3226_v2  ;;  %v1820_v16 = vadd.f32 %v1780_v35, %v1747_v41 }
 0x8f7   :  { %1858 = vperm.xlu1 %3060, %v1821_v4   ;;  %v1750_v13 = vadd.f32 %v1741_v6, %v3996_v45 }
 0x8f8   :  { %v1749_v23 = vadd.f32 %v1739_v11, %v4002_v53  ;;  %1855 = vperm.xlu0 %3059, %v1820_v16  }
 0x8f9   :  { %v3228_v17 = vpop.eup %3227  ;;  %v1823_v61 = vadd.f32 %v1801_v32, %v1750_v13 }
 0x8fa   :  { %v1743_v24 = vmul.f32 0.6931472, %v3228_v17  ;;  %v1822_v7 = vadd.f32 %v1794_v44, %v1749_v23 }
 0x8fb   :  { %1864 = vperm.xlu1 %3060, %v1823_v61  }
 0x8fc   :  { %v1751_v21 = vadd.f32 %v1743_v24, %v4005_v22  ;;  %1861 = vperm.xlu0 %3059, %v1822_v7  }
 0x8fe   :  { %v1824_v29 = vadd.f32 %v1808_v54, %v1751_v21 }
 0x8ff   :  { %1834 = vperm.xlu1 %3060, %v1832_v27  }
 0x900   :  { %1867 = vperm.xlu0 %3059, %v1824_v29  }
 0x968   :  { %v1847_v45 = vpop.permute.xlu1 %1846 }
 0x969   :  { %v1872_v19 = vrot.slane %v1847_v45, %v3565_v25 }
 0x96a   :  { %v1850_v35 = vpop.permute.xlu0 %1849 }
 0x96b   :  { %v1876_v53 = vrot.slane %v1850_v35, %v3565_v25 }
 0x96d   :  { %v1901_v5 = vsel %vm434_vm4, %v1876_v53, %v1872_v19 }
 0x96e   :  { %v1853_v33 = vpop.permute.xlu1 %1852 }
 0x96f   :  { %v1880_v36 = vrot.slane %v1853_v33, %v3565_v25 }
 0x971   :  { %v1902_v34 = vsel %vm436_vm5, %v1880_v36, %v1901_v5 }
 0x972   :  { %v1859_v44 = vpop.permute.xlu1 %1858 }
 0x973   :  { %v1856_v39 = vpop.permute.xlu0 %1855  ;;  %v1888_v42 = vrot.slane %v1859_v44, %v3565_v25 }
 0x974   :  { %v1884_v22 = vrot.slane %v1856_v39, %v3565_v25 }
 0x976   :  { %v1903_v46 = vsel %vm438_vm6, %v1884_v22, %v1902_v34  ;;  %v1865_v58 = vpop.permute.xlu1 %1864 }
 0x977   :  { %v1862_v18 = vpop.permute.xlu0 %1861  ;;  %v1896_v20 = vrot.slane %v1865_v58, %v3565_v25  ;;  %v1904_v47 = vsel %vm440_vm7, %v1888_v42, %v1903_v46  ;;  %v1915_v42 = vld [vmem:[#allocation5 + $0x14] sm:$0xf] }
 0x978   :  { %v1892_v14 = vrot.slane %v1862_v18, %v3565_v25  ;;  %v1913_v46 = vld [vmem:[#allocation3 + $0x14] sm:$0xf]  ;;  %vm1916_vm3 = vcmp.gt.f32.partialorder %v1915_v42, 0.5 }
 0x979   :  { %v1919_v18 = vrot.slane %v1913_v46, 4 }
 0x97a   :  { %v1905_v48 = vsel %vm442_vm8, %v1892_v14, %v1904_v47  ;;  %v1835_v49 = vpop.permute.xlu1 %1834  ;;  %v1917_v14 = vsel %vm1916_vm3, %v1913_v46, -10000.0 }
 0x97b   :  { %v1868_v10 = vpop.permute.xlu0 %1867  ;;  %v1906_v8 = vsel %vm444_vm9, %v1896_v20, %v1905_v48  ;;  %vm1836_vm1 = vcmp.eq.s32.totalorder %v1835_v49, 1  ;;  %v4083_v20 = vsel %vm54_vm0, %v1917_v14, %v1919_v18 }
 0x97c   :  { %v1900_v56 = vrot.slane %v1868_v10, %v3565_v25  ;;  %v2128_v47 = vrot.slane %v4083_v20, %v3480_v57  ;;  %v2135_v48 = vrot.slane %v4083_v20, %v3488_v60  ;;  %v2121_v49 = vrot.slane %v4083_v20, %v3438_v15 }
 0x97d   :  { %v2156_v10 = vrot.slane %v4083_v20, %v3505_v3  ;;  %v2170_v46 = vrot.slane %v4083_v20, %v3543_v51 }
 0x97e   :  { %v1907_v59 = vsel %vm446_vm10, %v1900_v56, %v1906_v8  ;;  %v2149_v56 = vrot.slane %v4083_v20, %v3493_v62 }
 0x97f   :  { %v1909_v28 = vsel %vm1836_vm1, %v1907_v59, %v3934_v31 }
 0x980   :  { %1910 = vst.msk [vmem:[#allocation2] sm:$0xff] %vm76_vm2, %v1909_v28 }
 0x987   :  { %v4047_v26 = vld [vmem:[#allocation2] sm:$0xff] }
 0x988   :  { %v1931_v43 = vrot.slane %v4047_v26, %v3431_v12  ;;  %v1924_v63 = vcombine.high %v4047_v26, %v4047_v26 }
 0x98a   :  { %v1947_v1 = vrot.slane %v1931_v43, %v3431_v12  ;;  %v1939_v38 = vcombine.high %v1931_v43, %v1931_v43  ;;  %v1938_v37 = vrot.slane %v1924_v63, %v3431_v12 }
 0x98c   :  { %v1976_v30 = vrot.slane %v1947_v1, %v3438_v15  ;;  %v1961_v50 = vrot.slane %v1939_v38, %v3431_v12  ;;  %v1969_v31 = vcombine.high %v1947_v1, %v1947_v1  ;;  %v1940_v41 = vcombine.high %v1938_v37, %v1938_v37 }
 0x98d   :  { %v1954_v2 = vrot.slane %v1938_v37, %v3431_v12 }
 0x98e   :  { %v2013_v6 = vadd.f32 %v3830_v40, %v1976_v30  ;;  %v1980_v4 = vrot.slane %v1961_v50, %v3438_v15  ;;  %v1984_v11 = vrot.slane %v1969_v31, %v3438_v15  ;;  %v1968_v16 = vrot.slane %v1940_v41, %v3431_v12 }
 0x98f   :  { %v1992_v32 = vrot.slane %v1954_v2, %v3438_v15  ;;  %v1971_v13 = vcombine.high %v1961_v50, %v1961_v50  ;;  %v1970_v33 = vcombine.high %v1954_v2, %v1954_v2 }
 0x990   :  { %v2021_v17 = vsel %vm76_vm2, %v2013_v6, -inf  ;;  %v2014_v23 = vadd.f32 %v3830_v40, %v1980_v4  ;;  %v2015_v24 = vadd.f32 %v3830_v40, %v1984_v11  ;;  %v1996_v61 = vrot.slane %v1968_v16, %v3438_v15 }
 0x991   :  { %2022 = vmax.xlane.f32.xlu0 %v2021_v17  ;;  %v1972_v7 = vcombine.high %v1968_v16, %v1968_v16  ;;  %v2017_v45 = vadd.f32 %v3830_v40, %v1992_v32  ;;  %v1988_v35 = vrot.slane %v1971_v13, %v3438_v15  ;;  %v2000_v39 = vrot.slane %v1970_v33, %v3438_v15 }
 0x992   :  { %v2024_v54 = vsel %vm76_vm2, %v2014_v23, -inf  ;;  %v2018_v21 = vadd.f32 %v3830_v40, %v1996_v61  ;;  %v2027_v29 = vsel %vm76_vm2, %v2015_v24, -inf }
 0x993   :  { %2025 = vmax.xlane.f32.xlu1 %v2024_v54  ;;  %v2004_v27 = vrot.slane %v1972_v7, %v3438_v15  ;;  %v2033_v19 = vsel %vm76_vm2, %v2017_v45, -inf  ;;  %v2016_v44 = vadd.f32 %v3830_v40, %v1988_v35  ;;  %v2019_v34 = vadd.f32 %v3830_v40, %v2000_v39 }
 0x994   :  { %v2036_v53 = vsel %vm76_vm2, %v2018_v21, -inf }
 0x995   :  { %2028 = vmax.xlane.f32.xlu0 %v2027_v29  ;;  %v2020_v36 = vadd.f32 %v3830_v40, %v2004_v27  ;;  %v2030_v22 = vsel %vm76_vm2, %v2016_v44, -inf  ;;  %v2039_v58 = vsel %vm76_vm2, %v2019_v34, -inf  ;;  %v2142_v40 = vrot.slane %v4083_v20, %v3498_v0 }
 0x997   :  { %2037 = vmax.xlane.f32.xlu1 %v2036_v53  ;;  %v2042_v5 = vsel %vm76_vm2, %v2020_v36, -inf }
 0x999   :  { %2034 = vmax.xlane.f32.xlu0 %v2033_v19 }
 0x99b   :  { %2043 = vmax.xlane.f32.xlu1 %v2042_v5 }
 0x99d   :  { %2031 = vmax.xlane.f32.xlu0 %v2030_v22 }
 0x9a1   :  { %2040 = vmax.xlane.f32.xlu0 %v2039_v58  ;;  %v2163_v58 = vrot.slane %v4083_v20, %v3546_v52 }
 0x9ac   :  { %2130 = vbcast.lane.b32.xlu1 %v2128_v47, 256 }
 0x9b0   :  { %2137 = vbcast.lane.b32.xlu1 %v2135_v48, 256 }
 0x9b4   :  { %2144 = vbcast.lane.b32.xlu1 %v2142_v40, 256 }
 0x9b7   :  { %2123 = vbcast.lane.b32.xlu0 %v2121_v49, 256 }
 0x9b8   :  { %2158 = vbcast.lane.b32.xlu1 %v2156_v10, 256 }
 0x9bb   :  { %2151 = vbcast.lane.b32.xlu0 %v2149_v56, 256 }
 0xa1a   :  { %v4097_v8 = vpop.xlane.xlu0 %2022 }
 0xa1b   :  { %v2045_v59 = vsub.f32 %v2013_v6, %v4097_v8 }
 0xa1c   :  { %v4100_v28 = vpop.xlane.xlu1 %2025 }
 0xa1d   :  { %v2053_v43 = vmul.f32 1.442695, %v2045_v59  ;;  %v2046_v63 = vsub.f32 %v2014_v23, %v4100_v28 }
 0xa1e   :  { %v4103_v1 = vpop.xlane.xlu0 %2028 }
 0xa1f   :  { %3229 = vpow2.f32 %v2053_v43  ;;  %v2055_v38 = vmul.f32 1.442695, %v2046_v63  ;;  %v2047_v37 = vsub.f32 %v2015_v24, %v4103_v1 }
 0xa20   :  { %v4106_v30 = vpop.xlane.xlu1 %2037 }
 0xa21   :  { %3231 = vpow2.f32 %v2055_v38  ;;  %v2057_v50 = vmul.f32 1.442695, %v2047_v37  ;;  %v2050_v2 = vsub.f32 %v2018_v21, %v4106_v30 }
 0xa22   :  { %v4108_v31 = vpop.xlane.xlu0 %2034 }
 0xa23   :  { %3233 = vpow2.f32 %v2057_v50  ;;  %v2049_v41 = vsub.f32 %v2017_v45, %v4108_v31  ;;  %v2063_v32 = vmul.f32 1.442695, %v2050_v2 }
 0xa24   :  { %v4112_v4 = vpop.xlane.xlu1 %2043 }
 0xa25   :  { %v2061_v6 = vmul.f32 1.442695, %v2049_v41  ;;  %v2052_v13 = vsub.f32 %v2020_v36, %v4112_v4 }
 0xa26   :  { %v4114_v11 = vpop.xlane.xlu0 %2031 }
 0xa27   :  { %3235 = vpow2.f32 %v2061_v6  ;;  %v2048_v16 = vsub.f32 %v2016_v44, %v4114_v11  ;;  %v2067_v7 = vmul.f32 1.442695, %v2052_v13 }
 0xa28   :  { %v2131_v18 = vpop.permute.xlu1 %2130 }
 0xa29   :  { %v2059_v17 = vmul.f32 1.442695, %v2048_v16 }
 0xa2a   :  { %v4118_v23 = vpop.xlane.xlu0 %2040 }
 0xa2b   :  { %3237 = vpow2.f32 %v2059_v17  ;;  %v2051_v24 = vsub.f32 %v2019_v34, %v4118_v23 }
 0xa2c   :  { %v3230_v61 = vpop.eup %3229  ;;  %3239 = vpow2.f32 %v2063_v32  ;;  %v2138_v14 = vpop.permute.xlu1 %2137 }
 0xa2d   :  { %v2065_v54 = vmul.f32 1.442695, %v2051_v24  ;;  %v2069_v21 = vsel %vm76_vm2, %v3230_v61, 0.0 }
 0xa2e   :  { %v3232_v27 = vpop.eup %3231  ;;  %2070 = vadd.xlane.f32.xlu0 %v2069_v21  ;;  %v2124_v47 = vpop.permute.xlu0 %2123 }
 0xa2f   :  { %3241 = vpow2.f32 %v2065_v54  ;;  %v2072_v29 = vsel %vm76_vm2, %v3232_v27, 0.0 }
 0xa30   :  { %v3234_v45 = vpop.eup %3233  ;;  %2073 = vadd.xlane.f32.xlu1 %v2072_v29  ;;  %3243 = vpow2.f32 %v2067_v7  ;;  %v2145_v48 = vpop.permute.xlu1 %2144 }
 0xa31   :  { %v2075_v35 = vsel %vm76_vm2, %v3234_v45, 0.0 }
 0xa32   :  { %2076 = vadd.xlane.f32.xlu0 %v2075_v35  ;;  %v2152_v40 = vpop.permute.xlu0 %2151 }
 0xa34   :  { %v3236_v33 = vpop.eup %3235  ;;  %v2159_v49 = vpop.permute.xlu1 %2158 }
 0xa35   :  { %v2081_v53 = vsel %vm76_vm2, %v3236_v33, 0.0 }
 0xa36   :  { %2082 = vadd.xlane.f32.xlu0 %v2081_v53 }
 0xa38   :  { %v3238_v36 = vpop.eup %3237 }
 0xa39   :  { %v2078_v19 = vsel %vm76_vm2, %v3238_v36, 0.0  ;;  %v3240_v44 = vpop.eup %3239 }
 0xa3a   :  { %2079 = vadd.xlane.f32.xlu1 %v2078_v19  ;;  %v2084_v22 = vsel %vm76_vm2, %v3240_v44, 0.0 }
 0xa3c   :  { %v3242_v39 = vpop.eup %3241 }
 0xa3d   :  { %v2087_v5 = vsel %vm76_vm2, %v3242_v39, 0.0  ;;  %v3244_v34 = vpop.eup %3243 }
 0xa3e   :  { %2088 = vadd.xlane.f32.xlu0 %v2087_v5  ;;  %2085 = vadd.xlane.f32.xlu1 %v2084_v22  ;;  %v2090_v42 = vsel %vm76_vm2, %v3244_v34, 0.0 }
 0xa42   :  { %2091 = vadd.xlane.f32.xlu1 %v2090_v42 }
 0xa53   :  { %2172 = vbcast.lane.b32.xlu1 %v2170_v46, 256 }
 0xa54   :  { %2165 = vbcast.lane.b32.xlu0 %v2163_v58, 256  ;;  %v2197_v58 = vsel %vm3049_vm11, 1, %v3380_v55 }
 0xab7   :  { %v2071_v10 = vpop.xlane.xlu0 %2070 }
 0xab8   :  { %3245 = vlog2.f32 %v2071_v10 }
 0xab9   :  { %v2074_v56 = vpop.xlane.xlu1 %2073 }
 0xaba   :  { %3247 = vlog2.f32 %v2074_v56 }
 0xabb   :  { %v2077_v59 = vpop.xlane.xlu0 %2076 }
 0xabc   :  { %3249 = vlog2.f32 %v2077_v59 }
 0xabf   :  { %v2083_v43 = vpop.xlane.xlu0 %2082 }
 0xac0   :  { %3251 = vlog2.f32 %v2083_v43 }
 0xac3   :  { %v2080_v63 = vpop.xlane.xlu1 %2079 }
 0xac4   :  { %3253 = vlog2.f32 %v2080_v63 }
 0xac5   :  { %v3246_v38 = vpop.eup %3245 }
 0xac6   :  { %v2094_v20 = vmul.f32 0.6931472, %v3246_v38 }
 0xac7   :  { %v3248_v37 = vpop.eup %3247  ;;  %v2089_v50 = vpop.xlane.xlu0 %2088 }
 0xac8   :  { %v2086_v41 = vpop.xlane.xlu1 %2085  ;;  %v2109_v2 = vadd.f32 %v2094_v20, %v4097_v8  ;;  %v2096_v6 = vmul.f32 0.6931472, %v3248_v37  ;;  %3255 = vlog2.f32 %v2089_v50 }
 0xac9   :  { %v3250_v16 = vpop.eup %3249  ;;  %3257 = vlog2.f32 %v2086_v41 }
 0xaca   :  { %v2110_v32 = vadd.f32 %v2096_v6, %v4100_v28  ;;  %v2098_v13 = vmul.f32 0.6931472, %v3250_v16  ;;  %v2182_v17 = vadd.f32 %v2124_v47, %v2109_v2 }
 0xacb   :  { %v2166_v44 = vpop.permute.xlu0 %2165 }
 0xacc   :  { %v2092_v24 = vpop.xlane.xlu1 %2091  ;;  %v2111_v61 = vadd.f32 %v2098_v13, %v4103_v1  ;;  %2211 = vperm.xlu0 %3059, %v2182_v17   ;;  %v2183_v7 = vadd.f32 %v2131_v18, %v2110_v32 }
 0xacd   :  { %3259 = vlog2.f32 %v2092_v24  ;;  %v3252_v54 = vpop.eup %3251 }
 0xace   :  { %v2102_v21 = vmul.f32 0.6931472, %v3252_v54  ;;  %2214 = vperm.xlu1 %3060, %v2183_v7   ;;  %v2184_v27 = vadd.f32 %v2138_v14, %v2111_v61 }
 0xad0   :  { %v2113_v8 = vadd.f32 %v2102_v21, %v4108_v31  ;;  %2217 = vperm.xlu0 %3059, %v2184_v27   ;;  %v2173_v46 = vpop.permute.xlu1 %2172 }
 0xad1   :  { %v3254_v29 = vpop.eup %3253 }
 0xad2   :  { %v2100_v45 = vmul.f32 0.6931472, %v3254_v29  ;;  %v2186_v35 = vadd.f32 %v2152_v40, %v2113_v8 }
 0xad4   :  { %v2112_v28 = vadd.f32 %v2100_v45, %v4114_v11  ;;  %2223 = vperm.xlu0 %3059, %v2186_v35  }
 0xad5   :  { %v3256_v33 = vpop.eup %3255 }
 0xad6   :  { %v3258_v53 = vpop.eup %3257  ;;  %v2106_v36 = vmul.f32 0.6931472, %v3256_v33  ;;  %v2185_v1 = vadd.f32 %v2145_v48, %v2112_v28  ;;  %v4174_v33 = vld [vmem:[%s4402_s3] sm:$0xff] }
 0xad7   :  { %v2104_v19 = vmul.f32 0.6931472, %v3258_v53 }
 0xad8   :  { %2220 = vperm.xlu1 %3060, %v2185_v1   ;;  %v2115_v39 = vadd.f32 %v2106_v36, %v4118_v23 }
 0xad9   :  { %v2114_v22 = vadd.f32 %v2104_v19, %v4106_v30 }
 0xada   :  { %v3260_v5 = vpop.eup %3259  ;;  %v2188_v34 = vadd.f32 %v2166_v44, %v2115_v39 }
 0xadb   :  { %v2108_v31 = vmul.f32 0.6931472, %v3260_v5  ;;  %v2187_v42 = vadd.f32 %v2159_v49, %v2114_v22 }
 0xadc   :  { %2229 = vperm.xlu0 %3059, %v2188_v34  }
 0xadd   :  { %v2116_v11 = vadd.f32 %v2108_v31, %v4112_v4  ;;  %2226 = vperm.xlu1 %3060, %v2187_v42  }
 0xadf   :  { %v2189_v18 = vadd.f32 %v2173_v46, %v2116_v11 }
 0xae0   :  { %2199 = vperm.xlu0 %3059, %v2197_v58  }
 0xae1   :  { %2232 = vperm.xlu1 %3060, %v2189_v18  }
 0xb47   :  { %v2212_v14 = vpop.permute.xlu0 %2211 }
 0xb48   :  { %v2237_v48 = vrot.slane %v2212_v14, %v3565_v25 }
 0xb49   :  { %v2215_v23 = vpop.permute.xlu1 %2214 }
 0xb4a   :  { %v2241_v30 = vrot.slane %v2215_v23, %v3565_v25 }
 0xb4b   :  { %v2218_v47 = vpop.permute.xlu0 %2217 }
 0xb4c   :  { %v2245_v40 = vrot.slane %v2218_v47, %v3565_v25  ;;  %v2266_v49 = vsel %vm434_vm4, %v2241_v30, %v2237_v48 }
 0xb4e   :  { %v2267_v59 = vsel %vm436_vm5, %v2245_v40, %v2266_v49 }
 0xb4f   :  { %v2224_v10 = vpop.permute.xlu0 %2223 }
 0xb50   :  { %v2253_v38 = vrot.slane %v2224_v10, %v3565_v25 }
 0xb53   :  { %v2221_v56 = vpop.permute.xlu1 %2220 }
 0xb54   :  { %v2249_v4 = vrot.slane %v2221_v56, %v3565_v25 }
 0xb56   :  { %v2268_v43 = vsel %vm438_vm6, %v2249_v4, %v2267_v59  ;;  %v2280_v4 = vld [vmem:[#allocation5 + $0x18] sm:$0xf] }
 0xb57   :  { %v2230_v63 = vpop.permute.xlu0 %2229  ;;  %v2269_v41 = vsel %vm440_vm7, %v2253_v38, %v2268_v43  ;;  %v2278_v59 = vld [vmem:[#allocation3 + $0x18] sm:$0xf]  ;;  %vm2281_vm13 = vcmp.gt.f32.partialorder %v2280_v4, 0.5 }
 0xb58   :  { %v2227_v20 = vpop.permute.xlu1 %2226  ;;  %v2261_v50 = vrot.slane %v2230_v63, %v3565_v25  ;;  %v2284_v38 = vrot.slane %v2278_v59, 4 }
 0xb59   :  { %v2257_v37 = vrot.slane %v2227_v20, %v3565_v25  ;;  %v2282_v20 = vsel %vm2281_vm13, %v2278_v59, -10000.0 }
 0xb5b   :  { %v2270_v2 = vsel %vm442_vm8, %v2257_v37, %v2269_v41  ;;  %v2200_v6 = vpop.permute.xlu0 %2199 }
 0xb5c   :  { %v2233_v16 = vpop.permute.xlu1 %2232  ;;  %v2271_v13 = vsel %vm444_vm9, %v2261_v50, %v2270_v2  ;;  %vm2201_vm12 = vcmp.eq.s32.totalorder %v2200_v6, 1  ;;  %v4201_v50 = vsel %vm54_vm0, %v2282_v20, %v2284_v38 }
 0xb5d   :  { %v2265_v32 = vrot.slane %v2233_v16, %v3565_v25  ;;  %v2486_v41 = vrot.slane %v4201_v50, %v3438_v15  ;;  %v2500_v2 = vrot.slane %v4201_v50, %v3488_v60  ;;  %v2507_v6 = vrot.slane %v4201_v50, %v3498_v0 }
 0xb5e   :  { %v2514_v16 = vrot.slane %v4201_v50, %v3493_v62  ;;  %v2528_v38 = vrot.slane %v4201_v50, %v3546_v52  ;;  %v2535_v20 = vrot.slane %v4201_v50, %v3543_v51 }
 0xb5f   :  { %v2272_v17 = vsel %vm446_vm10, %v2265_v32, %v2271_v13  ;;  %v2493_v32 = vrot.slane %v4201_v50, %v3480_v57  ;;  %v2521_v13 = vrot.slane %v4201_v50, %v3505_v3 }
 0xb60   :  { %v2274_v24 = vsel %vm2201_vm12, %v2272_v17, %v4047_v26 }
 0xb61   :  { %2275 = vst.msk [vmem:[#allocation2] sm:$0xff] %vm76_vm2, %v2274_v24 }
 0xb68   :  { %v4160_v61 = vld [vmem:[#allocation2] sm:$0xff] }
 0xb69   :  { %v2296_v7 = vrot.slane %v4160_v61, %v3431_v12  ;;  %v2289_v54 = vcombine.high %v4160_v61, %v4160_v61 }
 0xb6b   :  { %v2312_v21 = vrot.slane %v2296_v7, %v3431_v12  ;;  %v2304_v27 = vcombine.high %v2296_v7, %v2296_v7  ;;  %v2303_v8 = vrot.slane %v2289_v54, %v3431_v12 }
 0xb6d   :  { %v2341_v29 = vrot.slane %v2312_v21, %v3438_v15  ;;  %v2326_v45 = vrot.slane %v2304_v27, %v3431_v12  ;;  %v2319_v26 = vrot.slane %v2303_v8, %v3431_v12  ;;  %v2334_v35 = vcombine.high %v2312_v21, %v2312_v21 }
 0xb6e   :  { %v2305_v28 = vcombine.high %v2303_v8, %v2303_v8 }
 0xb6f   :  { %v2378_v53 = vadd.f32 %v4174_v33, %v2341_v29  ;;  %v2345_v36 = vrot.slane %v2326_v45, %v3438_v15  ;;  %v2357_v1 = vrot.slane %v2319_v26, %v3438_v15  ;;  %v2349_v19 = vrot.slane %v2334_v35, %v3438_v15 }
 0xb70   :  { %v2335_v44 = vcombine.high %v2319_v26, %v2319_v26  ;;  %v2336_v39 = vcombine.high %v2326_v45, %v2326_v45  ;;  %v2333_v58 = vrot.slane %v2305_v28, %v3431_v12 }
 0xb71   :  { %v2386_v5 = vsel %vm76_vm2, %v2378_v53, -inf  ;;  %v2379_v22 = vadd.f32 %v4174_v33, %v2345_v36  ;;  %v2382_v31 = vadd.f32 %v4174_v33, %v2357_v1  ;;  %v2380_v46 = vadd.f32 %v4174_v33, %v2349_v19 }
 0xb72   :  { %2387 = vmax.xlane.f32.xlu1 %v2386_v5  ;;  %v2365_v34 = vrot.slane %v2335_v44, %v3438_v15  ;;  %v2353_v11 = vrot.slane %v2336_v39, %v3438_v15  ;;  %v2361_v30 = vrot.slane %v2333_v58, %v3438_v15  ;;  %v2337_v48 = vcombine.high %v2333_v58, %v2333_v58 }
 0xb73   :  { %v2389_v42 = vsel %vm76_vm2, %v2379_v22, -inf  ;;  %v2398_v18 = vsel %vm76_vm2, %v2382_v31, -inf  ;;  %v2392_v23 = vsel %vm76_vm2, %v2380_v46, -inf }
 0xb74   :  { %2390 = vmax.xlane.f32.xlu0 %v2389_v42  ;;  %v2384_v14 = vadd.f32 %v4174_v33, %v2365_v34  ;;  %v2381_v47 = vadd.f32 %v4174_v33, %v2353_v11  ;;  %v2383_v10 = vadd.f32 %v4174_v33, %v2361_v30  ;;  %v2369_v56 = vrot.slane %v2337_v48, %v3438_v15 }
 0xb76   :  { %2399 = vmax.xlane.f32.xlu1 %v2398_v18  ;;  %v2404_v40 = vsel %vm76_vm2, %v2384_v14, -inf  ;;  %v2395_v49 = vsel %vm76_vm2, %v2381_v47, -inf  ;;  %v2401_v43 = vsel %vm76_vm2, %v2383_v10, -inf  ;;  %v2385_v63 = vadd.f32 %v4174_v33, %v2369_v56 }
 0xb78   :  { %2393 = vmax.xlane.f32.xlu0 %v2392_v23  ;;  %v2407_v37 = vsel %vm76_vm2, %v2385_v63, -inf }
 0xb7a   :  { %2405 = vmax.xlane.f32.xlu1 %v2404_v40 }
 0xb7c   :  { %2396 = vmax.xlane.f32.xlu0 %v2395_v49 }
 0xb80   :  { %2402 = vmax.xlane.f32.xlu0 %v2401_v43 }
 0xb84   :  { %2408 = vmax.xlane.f32.xlu0 %v2407_v37 }
 0xb8b   :  { %2488 = vbcast.lane.b32.xlu1 %v2486_v41, 256 }
 0xb8f   :  { %2502 = vbcast.lane.b32.xlu1 %v2500_v2, 256 }
 0xb93   :  { %2509 = vbcast.lane.b32.xlu1 %v2507_v6, 256 }
 0xb97   :  { %2516 = vbcast.lane.b32.xlu1 %v2514_v16, 256 }
 0xb9a   :  { %2495 = vbcast.lane.b32.xlu0 %v2493_v32, 256 }
 0xb9e   :  { %2523 = vbcast.lane.b32.xlu0 %v2521_v13, 256 }
 0xbfb   :  { %v4215_v17 = vpop.xlane.xlu1 %2387 }
 0xbfc   :  { %v2410_v24 = vsub.f32 %v2378_v53, %v4215_v17 }
 0xbfd   :  { %v4218_v7 = vpop.xlane.xlu0 %2390 }
 0xbfe   :  { %v2418_v54 = vmul.f32 1.442695, %v2410_v24  ;;  %v2411_v21 = vsub.f32 %v2379_v22, %v4218_v7 }
 0xbff   :  { %v4221_v27 = vpop.xlane.xlu1 %2399 }
 0xc00   :  { %3261 = vpow2.f32 %v2418_v54  ;;  %v2420_v8 = vmul.f32 1.442695, %v2411_v21  ;;  %v2414_v29 = vsub.f32 %v2382_v31, %v4221_v27 }
 0xc01   :  { %v4224_v45 = vpop.xlane.xlu0 %2393 }
 0xc02   :  { %3263 = vpow2.f32 %v2420_v8  ;;  %v2412_v26 = vsub.f32 %v2380_v46, %v4224_v45  ;;  %v2426_v28 = vmul.f32 1.442695, %v2414_v29 }
 0xc03   :  { %v4227_v35 = vpop.xlane.xlu1 %2405 }
 0xc04   :  { %v2422_v53 = vmul.f32 1.442695, %v2412_v26  ;;  %v2416_v36 = vsub.f32 %v2384_v14, %v4227_v35 }
 0xc05   :  { %v4230_v1 = vpop.xlane.xlu0 %2396 }
 0xc06   :  { %3265 = vpow2.f32 %v2422_v53  ;;  %v2413_v19 = vsub.f32 %v2381_v47, %v4230_v1  ;;  %v2430_v44 = vmul.f32 1.442695, %v2416_v36 }
 0xc07   :  { %3267 = vpow2.f32 %v2426_v28  ;;  %v2489_v37 = vpop.permute.xlu1 %2488 }
 0xc08   :  { %v2424_v39 = vmul.f32 1.442695, %v2413_v19 }
 0xc09   :  { %v4233_v5 = vpop.xlane.xlu0 %2402 }
 0xc0a   :  { %3269 = vpow2.f32 %v2424_v39  ;;  %v2415_v22 = vsub.f32 %v2383_v10, %v4233_v5 }
 0xc0b   :  { %3271 = vpow2.f32 %v2430_v44  ;;  %v2503_v41 = vpop.permute.xlu1 %2502 }
 0xc0c   :  { %v2428_v31 = vmul.f32 1.442695, %v2415_v22 }
 0xc0d   :  { %v3262_v34 = vpop.eup %3261  ;;  %v4236_v42 = vpop.xlane.xlu0 %2408 }
 0xc0e   :  { %3273 = vpow2.f32 %v2428_v31  ;;  %v2417_v46 = vsub.f32 %v2385_v63, %v4236_v42  ;;  %v2434_v11 = vsel %vm76_vm2, %v3262_v34, 0.0 }
 0xc0f   :  { %v3264_v58 = vpop.eup %3263  ;;  %2435 = vadd.xlane.f32.xlu1 %v2434_v11  ;;  %v2510_v2 = vpop.permute.xlu1 %2509 }
 0xc10   :  { %v2432_v18 = vmul.f32 1.442695, %v2417_v46  ;;  %v2437_v14 = vsel %vm76_vm2, %v3264_v58, 0.0 }
 0xc11   :  { %2438 = vadd.xlane.f32.xlu0 %v2437_v14  ;;  %v2496_v6 = vpop.permute.xlu0 %2495 }
 0xc12   :  { %3275 = vpow2.f32 %v2432_v18 }
 0xc13   :  { %v3266_v23 = vpop.eup %3265  ;;  %v2517_v16 = vpop.permute.xlu1 %2516 }
 0xc14   :  { %v2440_v47 = vsel %vm76_vm2, %v3266_v23, 0.0  ;;  %v3268_v30 = vpop.eup %3267 }
 0xc15   :  { %2441 = vadd.xlane.f32.xlu1 %v2440_v47  ;;  %v2446_v40 = vsel %vm76_vm2, %v3268_v30, 0.0  ;;  %v2524_v32 = vpop.permute.xlu0 %2523 }
 0xc17   :  { %v3270_v48 = vpop.eup %3269 }
 0xc18   :  { %v2443_v49 = vsel %vm76_vm2, %v3270_v48, 0.0  ;;  %v3272_v10 = vpop.eup %3271 }
 0xc19   :  { %2447 = vadd.xlane.f32.xlu1 %v2446_v40  ;;  %2444 = vadd.xlane.f32.xlu0 %v2443_v49  ;;  %v2452_v4 = vsel %vm76_vm2, %v3272_v10, 0.0 }
 0xc1b   :  { %v3274_v56 = vpop.eup %3273 }
 0xc1c   :  { %v2449_v59 = vsel %vm76_vm2, %v3274_v56, 0.0 }
 0xc1d   :  { %2453 = vadd.xlane.f32.xlu1 %v2452_v4  ;;  %2450 = vadd.xlane.f32.xlu0 %v2449_v59 }
 0xc1f   :  { %v3276_v43 = vpop.eup %3275 }
 0xc20   :  { %v2455_v63 = vsel %vm76_vm2, %v3276_v43, 0.0 }
 0xc21   :  { %2456 = vadd.xlane.f32.xlu0 %v2455_v63 }
 0xc2e   :  { %2530 = vbcast.lane.b32.xlu1 %v2528_v38, 256 }
 0xc37   :  { %2537 = vbcast.lane.b32.xlu0 %v2535_v20, 256 }
 0xc98   :  { %v2436_v13 = vpop.xlane.xlu1 %2435 }
 0xc99   :  { %3277 = vlog2.f32 %v2436_v13 }
 0xc9a   :  { %v2439_v24 = vpop.xlane.xlu0 %2438 }
 0xc9b   :  { %3279 = vlog2.f32 %v2439_v24 }
 0xc9e   :  { %v2442_v54 = vpop.xlane.xlu1 %2441 }
 0xc9f   :  { %3281 = vlog2.f32 %v2442_v54 }
 0xca2   :  { %v2448_v21 = vpop.xlane.xlu1 %2447  ;;  %v2445_v8 = vpop.xlane.xlu0 %2444 }
 0xca3   :  { %3283 = vlog2.f32 %v2448_v21 }
 0xca4   :  { %3285 = vlog2.f32 %v2445_v8 }
 0xca6   :  { %v3278_v29 = vpop.eup %3277  ;;  %v2454_v26 = vpop.xlane.xlu1 %2453 }
 0xca7   :  { %v2451_v50 = vpop.xlane.xlu0 %2450  ;;  %v2459_v28 = vmul.f32 0.6931472, %v3278_v29  ;;  %3287 = vlog2.f32 %v2454_v26 }
 0xca8   :  { %v3280_v53 = vpop.eup %3279  ;;  %3289 = vlog2.f32 %v2451_v50 }
 0xca9   :  { %v2474_v36 = vadd.f32 %v2459_v28, %v4215_v17  ;;  %v2461_v19 = vmul.f32 0.6931472, %v3280_v53 }
 0xcaa   :  { %v2531_v4 = vpop.permute.xlu1 %2530 }
 0xcab   :  { %v2457_v44 = vpop.xlane.xlu0 %2456  ;;  %v2475_v39 = vadd.f32 %v2461_v19, %v4218_v7  ;;  %v2547_v22 = vadd.f32 %v2489_v37, %v2474_v36  ;;  %v2562_v37 = vsel %vm3050_vm14, 1, %v3380_v55 }
 0xcac   :  { %3291 = vlog2.f32 %v2457_v44  ;;  %v3282_v31 = vpop.eup %3281 }
 0xcad   :  { %v2463_v34 = vmul.f32 0.6931472, %v3282_v31  ;;  %2576 = vperm.xlu1 %3060, %v2547_v22   ;;  %v2548_v46 = vadd.f32 %v2496_v6, %v2475_v39 }
 0xcaf   :  { %v2476_v11 = vadd.f32 %v2463_v34, %v4224_v45  ;;  %2579 = vperm.xlu0 %3059, %v2548_v46   ;;  %v2538_v20 = vpop.permute.xlu0 %2537 }
 0xcb0   :  { %v3284_v58 = vpop.eup %3283 }
 0xcb1   :  { %v3286_v18 = vpop.eup %3285  ;;  %v2467_v14 = vmul.f32 0.6931472, %v3284_v58  ;;  %v2549_v23 = vadd.f32 %v2503_v41, %v2476_v11 }
 0xcb2   :  { %v2465_v47 = vmul.f32 0.6931472, %v3286_v18 }
 0xcb3   :  { %v2478_v17 = vadd.f32 %v2467_v14, %v4221_v27  ;;  %2582 = vperm.xlu1 %3060, %v2549_v23  }
 0xcb4   :  { %v3288_v30 = vpop.eup %3287  ;;  %v2477_v7 = vadd.f32 %v2465_v47, %v4230_v1 }
 0xcb5   :  { %v3290_v48 = vpop.eup %3289  ;;  %v2471_v40 = vmul.f32 0.6931472, %v3288_v30  ;;  %v2551_v49 = vadd.f32 %v2517_v16, %v2478_v17 }
 0xcb6   :  { %v2469_v10 = vmul.f32 0.6931472, %v3290_v48  ;;  %v2550_v56 = vadd.f32 %v2510_v2, %v2477_v7 }
 0xcb7   :  { %2588 = vperm.xlu1 %3060, %v2551_v49   ;;  %v2480_v45 = vadd.f32 %v2471_v40, %v4227_v35 }
 0xcb8   :  { %v2479_v43 = vadd.f32 %v2469_v10, %v4233_v5  ;;  %2585 = vperm.xlu0 %3059, %v2550_v56  }
 0xcb9   :  { %v3292_v59 = vpop.eup %3291  ;;  %v2553_v38 = vadd.f32 %v2531_v4, %v2480_v45 }
 0xcba   :  { %v2473_v63 = vmul.f32 0.6931472, %v3292_v59  ;;  %v2552_v27 = vadd.f32 %v2524_v32, %v2479_v43 }
 0xcbb   :  { %2594 = vperm.xlu1 %3060, %v2553_v38  }
 0xcbc   :  { %v2481_v1 = vadd.f32 %v2473_v63, %v4236_v42  ;;  %2591 = vperm.xlu0 %3059, %v2552_v27  }
 0xcbe   :  { %v2554_v41 = vadd.f32 %v2538_v20, %v2481_v1 }
 0xcbf   :  { %2564 = vperm.xlu1 %3060, %v2562_v37  }
 0xcc0   :  { %2597 = vperm.xlu0 %3059, %v2554_v41  }
 0xd28   :  { %v2577_v35 = vpop.permute.xlu1 %2576 }
 0xd29   :  { %v2602_v13 = vrot.slane %v2577_v35, %v3565_v25 }
 0xd2a   :  { %v2580_v2 = vpop.permute.xlu0 %2579 }
 0xd2b   :  { %v2606_v5 = vrot.slane %v2580_v2, %v3565_v25 }
 0xd2d   :  { %v2631_v54 = vsel %vm434_vm4, %v2606_v5, %v2602_v13 }
 0xd2e   :  { %v2583_v6 = vpop.permute.xlu1 %2582 }
 0xd2f   :  { %v2610_v16 = vrot.slane %v2583_v6, %v3565_v25 }
 0xd31   :  { %v2632_v21 = vsel %vm436_vm5, %v2610_v16, %v2631_v54 }
 0xd32   :  { %v2589_v32 = vpop.permute.xlu1 %2588 }
 0xd33   :  { %v2586_v24 = vpop.permute.xlu0 %2585  ;;  %v2618_v8 = vrot.slane %v2589_v32, %v3565_v25 }
 0xd34   :  { %v2614_v42 = vrot.slane %v2586_v24, %v3565_v25 }
 0xd36   :  { %v2633_v29 = vsel %vm438_vm6, %v2614_v42, %v2632_v21  ;;  %v2595_v26 = vpop.permute.xlu1 %2594  ;;  %v2645_v21 = vld [vmem:[#allocation5 + $0x1c] sm:$0xf] }
 0xd37   :  { %v2592_v50 = vpop.permute.xlu0 %2591  ;;  %v2626_v53 = vrot.slane %v2595_v26, %v3565_v25  ;;  %v2634_v36 = vsel %vm440_vm7, %v2618_v8, %v2633_v29  ;;  %v2643_v8 = vld [vmem:[#allocation3 + $0x1c] sm:$0xf]  ;;  %vm2646_vm1 = vcmp.gt.f32.partialorder %v2645_v21, 0.5 }
 0xd38   :  { %v2622_v28 = vrot.slane %v2592_v50, %v3565_v25  ;;  %v2649_v26 = vrot.slane %v2643_v8, 4  ;;  %v2647_v50 = vsel %vm2646_vm1, %v2643_v8, -10000.0 }
 0xd3a   :  { %v2635_v19 = vsel %vm442_vm8, %v2622_v28, %v2634_v36  ;;  %v2565_v44 = vpop.permute.xlu1 %2564  ;;  %v4314_v28 = vsel %vm54_vm0, %v2647_v50, %v2649_v26  ;;  %vm3051_vm0 = vcmp.gt.s32.totalorder %v3679_v9, 7 }
 0xd3b   :  { %v2598_v39 = vpop.permute.xlu0 %2597  ;;  %v2636_v31 = vsel %vm444_vm9, %v2626_v53, %v2635_v19  ;;  %vm2566_vm15 = vcmp.eq.s32.totalorder %v2565_v44, 1  ;;  %v2858_v53 = vrot.slane %v4314_v28, %v3480_v57  ;;  %v2865_v36 = vrot.slane %v4314_v28, %v3488_v60 }
 0xd3c   :  { %v2630_v22 = vrot.slane %v2598_v39, %v3565_v25  ;;  %v2851_v19 = vrot.slane %v4314_v28, %v3438_v15  ;;  %v2886_v44 = vrot.slane %v4314_v28, %v3505_v3  ;;  %v2879_v39 = vrot.slane %v4314_v28, %v3493_v62 }
 0xd3e   :  { %v2637_v34 = vsel %vm446_vm10, %v2630_v22, %v2636_v31 }
 0xd3f   :  { %v2639_v46 = vsel %vm2566_vm15, %v2637_v34, %v4160_v61 }
 0xd40   :  { %2640 = vst.msk [vmem:[#allocation2] sm:$0xff] %vm76_vm2, %v2639_v46 }
 0xd47   :  { %v4278_v11 = vld [vmem:[#allocation2] sm:$0xff] }
 0xd48   :  { %v2661_v58 = vrot.slane %v4278_v11, %v3431_v12  ;;  %v2654_v18 = vcombine.high %v4278_v11, %v4278_v11 }
 0xd4a   :  { %v2677_v14 = vrot.slane %v2661_v58, %v3431_v12  ;;  %v2669_v23 = vcombine.high %v2661_v58, %v2661_v58  ;;  %v2668_v47 = vrot.slane %v2654_v18, %v3431_v12 }
 0xd4c   :  { %v2706_v17 = vrot.slane %v2677_v14, %v3438_v15  ;;  %v2691_v30 = vrot.slane %v2669_v23, %v3431_v12  ;;  %v2699_v61 = vcombine.high %v2677_v14, %v2677_v14  ;;  %v2670_v7 = vcombine.high %v2668_v47, %v2668_v47 }
 0xd4d   :  { %v2684_v48 = vrot.slane %v2668_v47, %v3431_v12 }
 0xd4e   :  { %v2743_v40 = vadd.f32 %v4174_v33, %v2706_v17  ;;  %v2710_v49 = vrot.slane %v2691_v30, %v3438_v15  ;;  %v2714_v10 = vrot.slane %v2699_v61, %v3438_v15  ;;  %v2698_v56 = vrot.slane %v2670_v7, %v3431_v12 }
 0xd4f   :  { %v2722_v4 = vrot.slane %v2684_v48, %v3438_v15  ;;  %v2701_v45 = vcombine.high %v2691_v30, %v2691_v30  ;;  %v2700_v2 = vcombine.high %v2684_v48, %v2684_v48 }
 0xd50   :  { %v2751_v59 = vsel %vm76_vm2, %v2743_v40, -inf  ;;  %v2744_v43 = vadd.f32 %v4174_v33, %v2710_v49  ;;  %v2745_v63 = vadd.f32 %v4174_v33, %v2714_v10  ;;  %v2726_v38 = vrot.slane %v2698_v56, %v3438_v15 }
 0xd51   :  { %2752 = vmax.xlane.f32.xlu0 %v2751_v59  ;;  %v2702_v27 = vcombine.high %v2698_v56, %v2698_v56  ;;  %v2747_v41 = vadd.f32 %v4174_v33, %v2722_v4  ;;  %v2718_v35 = vrot.slane %v2701_v45, %v3438_v15  ;;  %v2730_v32 = vrot.slane %v2700_v2, %v3438_v15 }
 0xd52   :  { %v2754_v20 = vsel %vm76_vm2, %v2744_v43, -inf  ;;  %v2748_v1 = vadd.f32 %v4174_v33, %v2726_v38  ;;  %v2757_v37 = vsel %vm76_vm2, %v2745_v63, -inf }
 0xd53   :  { %2755 = vmax.xlane.f32.xlu1 %v2754_v20  ;;  %v2734_v12 = vrot.slane %v2702_v27, %v3438_v15  ;;  %v2763_v16 = vsel %vm76_vm2, %v2747_v41, -inf  ;;  %v2746_v13 = vadd.f32 %v4174_v33, %v2718_v35  ;;  %v2749_v42 = vadd.f32 %v4174_v33, %v2730_v32 }
 0xd54   :  { %v2766_v6 = vsel %vm76_vm2, %v2748_v1, -inf }
 0xd55   :  { %2758 = vmax.xlane.f32.xlu0 %v2757_v37  ;;  %v2750_v5 = vadd.f32 %v4174_v33, %v2734_v12  ;;  %v2760_v54 = vsel %vm76_vm2, %v2746_v13, -inf  ;;  %v2769_v29 = vsel %vm76_vm2, %v2749_v42, -inf  ;;  %v2872_v33 = vrot.slane %v4314_v28, %v3498_v0 }
 0xd57   :  { %2767 = vmax.xlane.f32.xlu1 %v2766_v6  ;;  %v2772_v24 = vsel %vm76_vm2, %v2750_v5, -inf }
 0xd59   :  { %2764 = vmax.xlane.f32.xlu0 %v2763_v16  ;;  %v2900_v16 = vrot.slane %v4314_v28, %v3543_v51 }
 0xd5b   :  { %2773 = vmax.xlane.f32.xlu1 %v2772_v24 }
 0xd5d   :  { %2761 = vmax.xlane.f32.xlu0 %v2760_v54 }
 0xd61   :  { %2770 = vmax.xlane.f32.xlu0 %v2769_v29 }
 0xd6c   :  { %2860 = vbcast.lane.b32.xlu1 %v2858_v53, 256 }
 0xd70   :  { %2867 = vbcast.lane.b32.xlu1 %v2865_v36, 256 }
 0xd74   :  { %2874 = vbcast.lane.b32.xlu1 %v2872_v33, 256 }
 0xd77   :  { %2853 = vbcast.lane.b32.xlu0 %v2851_v19, 256 }
 0xd78   :  { %2888 = vbcast.lane.b32.xlu1 %v2886_v44, 256 }
 0xd7b   :  { %2881 = vbcast.lane.b32.xlu0 %v2879_v39, 256 }
 0xdda   :  { %v4328_v57 = vpop.xlane.xlu0 %2752 }
 0xddb   :  { %v2775_v60 = vsub.f32 %v2743_v40, %v4328_v57 }
 0xddc   :  { %v4331_v22 = vpop.xlane.xlu1 %2755 }
 0xddd   :  { %v2783_v0 = vmul.f32 1.442695, %v2775_v60  ;;  %v2776_v31 = vsub.f32 %v2744_v43, %v4331_v22 }
 0xdde   :  { %v4334_v15 = vpop.xlane.xlu0 %2758 }
 0xddf   :  { %3293 = vpow2.f32 %v2783_v0  ;;  %v2785_v34 = vmul.f32 1.442695, %v2776_v31  ;;  %v2777_v3 = vsub.f32 %v2745_v63, %v4334_v15 }
 0xde0   :  { %v4337_v46 = vpop.xlane.xlu1 %2767 }
 0xde1   :  { %3295 = vpow2.f32 %v2785_v34  ;;  %v2787_v62 = vmul.f32 1.442695, %v2777_v3  ;;  %v2780_v14 = vsub.f32 %v2748_v1, %v4337_v46 }
 0xde2   :  { %v4339_v58 = vpop.xlane.xlu0 %2764 }
 0xde3   :  { %3297 = vpow2.f32 %v2787_v62  ;;  %v2779_v18 = vsub.f32 %v2747_v41, %v4339_v58  ;;  %v2793_v61 = vmul.f32 1.442695, %v2780_v14 }
 0xde4   :  { %v4343_v47 = vpop.xlane.xlu1 %2773 }
 0xde5   :  { %v2791_v23 = vmul.f32 1.442695, %v2779_v18  ;;  %v2782_v7 = vsub.f32 %v2750_v5, %v4343_v47 }
 0xde6   :  { %v4345_v17 = vpop.xlane.xlu0 %2761 }
 0xde7   :  { %3299 = vpow2.f32 %v2791_v23  ;;  %v2778_v30 = vsub.f32 %v2746_v13, %v4345_v17  ;;  %v2797_v56 = vmul.f32 1.442695, %v2782_v7  ;;  %v2893_v13 = vrot.slane %v4314_v28, %v3546_v52 }
 0xde8   :  { %v2861_v32 = vpop.permute.xlu1 %2860 }
 0xde9   :  { %v2789_v48 = vmul.f32 1.442695, %v2778_v30 }
 0xdea   :  { %v4349_v40 = vpop.xlane.xlu0 %2770 }
 0xdeb   :  { %3301 = vpow2.f32 %v2789_v48  ;;  %v2781_v49 = vsub.f32 %v2749_v42, %v4349_v40 }
 0xdec   :  { %v3294_v10 = vpop.eup %3293  ;;  %3303 = vpow2.f32 %v2793_v61  ;;  %v2868_v24 = vpop.permute.xlu1 %2867 }
 0xded   :  { %v2795_v4 = vmul.f32 1.442695, %v2781_v49  ;;  %v2799_v45 = vsel %vm76_vm2, %v3294_v10, 0.0 }
 0xdee   :  { %v3296_v59 = vpop.eup %3295  ;;  %2800 = vadd.xlane.f32.xlu0 %v2799_v45  ;;  %v2854_v54 = vpop.permute.xlu0 %2853 }
 0xdef   :  { %3305 = vpow2.f32 %v2795_v4  ;;  %v2802_v43 = vsel %vm76_vm2, %v3296_v59, 0.0 }
 0xdf0   :  { %v3298_v63 = vpop.eup %3297  ;;  %2803 = vadd.xlane.f32.xlu1 %v2802_v43  ;;  %3307 = vpow2.f32 %v2797_v56  ;;  %v2875_v42 = vpop.permute.xlu1 %2874 }
 0xdf1   :  { %v2805_v38 = vsel %vm76_vm2, %v3298_v63, 0.0 }
 0xdf2   :  { %2806 = vadd.xlane.f32.xlu0 %v2805_v38  ;;  %v2882_v21 = vpop.permute.xlu0 %2881 }
 0xdf4   :  { %v3300_v27 = vpop.eup %3299  ;;  %v2889_v8 = vpop.permute.xlu1 %2888 }
 0xdf5   :  { %v2811_v20 = vsel %vm76_vm2, %v3300_v27, 0.0 }
 0xdf6   :  { %2812 = vadd.xlane.f32.xlu0 %v2811_v20 }
 0xdf8   :  { %v3302_v1 = vpop.eup %3301 }
 0xdf9   :  { %v2808_v12 = vsel %vm76_vm2, %v3302_v1, 0.0  ;;  %v3304_v37 = vpop.eup %3303  ;;  %v2927_v1 = vsel %vm3051_vm0, 1, %v3380_v55 }
 0xdfa   :  { %2809 = vadd.xlane.f32.xlu1 %v2808_v12  ;;  %v2814_v2 = vsel %vm76_vm2, %v3304_v37, 0.0 }
 0xdfc   :  { %v3306_v41 = vpop.eup %3305 }
 0xdfd   :  { %v2817_v35 = vsel %vm76_vm2, %v3306_v41, 0.0  ;;  %v3308_v6 = vpop.eup %3307 }
 0xdfe   :  { %2818 = vadd.xlane.f32.xlu0 %v2817_v35  ;;  %2815 = vadd.xlane.f32.xlu1 %v2814_v2  ;;  %v2820_v5 = vsel %vm76_vm2, %v3308_v6, 0.0 }
 0xe02   :  { %2821 = vadd.xlane.f32.xlu1 %v2820_v5 }
 0xe13   :  { %2902 = vbcast.lane.b32.xlu1 %v2900_v16, 256 }
 0xe14   :  { %2895 = vbcast.lane.b32.xlu0 %v2893_v13, 256 }
 0xe77   :  { %v2801_v29 = vpop.xlane.xlu0 %2800 }
 0xe78   :  { %3309 = vlog2.f32 %v2801_v29 }
 0xe79   :  { %v2804_v26 = vpop.xlane.xlu1 %2803 }
 0xe7a   :  { %3311 = vlog2.f32 %v2804_v26 }
 0xe7b   :  { %v2807_v50 = vpop.xlane.xlu0 %2806 }
 0xe7c   :  { %3313 = vlog2.f32 %v2807_v50 }
 0xe7f   :  { %v2813_v53 = vpop.xlane.xlu0 %2812 }
 0xe80   :  { %3315 = vlog2.f32 %v2813_v53 }
 0xe83   :  { %v2810_v51 = vpop.xlane.xlu1 %2809 }
 0xe84   :  { %3317 = vlog2.f32 %v2810_v51 }
 0xe85   :  { %v3310_v36 = vpop.eup %3309 }
 0xe86   :  { %v2824_v52 = vmul.f32 0.6931472, %v3310_v36 }
 0xe87   :  { %v3312_v28 = vpop.eup %3311  ;;  %v2819_v33 = vpop.xlane.xlu0 %2818 }
 0xe88   :  { %v2816_v19 = vpop.xlane.xlu1 %2815  ;;  %v2839_v44 = vadd.f32 %v2824_v52, %v4328_v57  ;;  %v2826_v39 = vmul.f32 0.6931472, %v3312_v28  ;;  %3319 = vlog2.f32 %v2819_v33  ;;  %v3052_v52 = vld [vmem:[%s4404_s5] ss:$0 sm:$0xff] }
 0xe89   :  { %v3314_v60 = vpop.eup %3313  ;;  %3321 = vlog2.f32 %v2816_v19 }
 0xe8a   :  { %v2840_v0 = vadd.f32 %v2826_v39, %v4331_v22  ;;  %v2828_v31 = vmul.f32 0.6931472, %v3314_v60  ;;  %v2912_v34 = vadd.f32 %v2854_v54, %v2839_v44 }
 0xe8b   :  { %v2896_v45 = vpop.permute.xlu0 %2895 }
 0xe8c   :  { %v2822_v3 = vpop.xlane.xlu1 %2821  ;;  %v2841_v62 = vadd.f32 %v2828_v31, %v4334_v15  ;;  %2941 = vperm.xlu0 %3059, %v2912_v34   ;;  %v2913_v18 = vadd.f32 %v2861_v32, %v2840_v0 }
 0xe8d   :  { %3323 = vlog2.f32 %v2822_v3  ;;  %v3316_v14 = vpop.eup %3315 }
 0xe8e   :  { %v2832_v23 = vmul.f32 0.6931472, %v3316_v14  ;;  %2944 = vperm.xlu1 %3060, %v2913_v18   ;;  %v2914_v30 = vadd.f32 %v2868_v24, %v2841_v62 }
 0xe90   :  { %v2843_v57 = vadd.f32 %v2832_v23, %v4339_v58  ;;  %2947 = vperm.xlu0 %3059, %v2914_v30   ;;  %v2903_v20 = vpop.permute.xlu1 %2902 }
 0xe91   :  { %v3318_v61 = vpop.eup %3317 }
 0xe92   :  { %v2830_v7 = vmul.f32 0.6931472, %v3318_v61  ;;  %v2916_v48 = vadd.f32 %v2882_v21, %v2843_v57 }
 0xe94   :  { %v2842_v22 = vadd.f32 %v2830_v7, %v4345_v17  ;;  %2953 = vperm.xlu0 %3059, %v2916_v48  }
 0xe95   :  { %v3320_v49 = vpop.eup %3319 }
 0xe96   :  { %v3322_v10 = vpop.eup %3321  ;;  %v2836_v56 = vmul.f32 0.6931472, %v3320_v49  ;;  %v2915_v15 = vadd.f32 %v2875_v42, %v2842_v22 }
 0xe97   :  { %v2834_v4 = vmul.f32 0.6931472, %v3322_v10 }
 0xe98   :  { %2950 = vperm.xlu1 %3060, %v2915_v15   ;;  %v2845_v59 = vadd.f32 %v2836_v56, %v4349_v40 }
 0xe99   :  { %v2844_v63 = vadd.f32 %v2834_v4, %v4337_v46 }
 0xe9a   :  { %v3324_v43 = vpop.eup %3323  ;;  %v2918_v38 = vadd.f32 %v2896_v45, %v2845_v59 }
 0xe9b   :  { %v2838_v58 = vmul.f32 0.6931472, %v3324_v43  ;;  %v2917_v27 = vadd.f32 %v2889_v8, %v2844_v63 }
 0xe9c   :  { %2959 = vperm.xlu0 %3059, %v2918_v38  }
 0xe9d   :  { %v2846_v17 = vadd.f32 %v2838_v58, %v4343_v47  ;;  %2956 = vperm.xlu1 %3060, %v2917_v27  }
 0xe9f   :  { %v2919_v12 = vadd.f32 %v2903_v20, %v2846_v17 }
 0xea0   :  { %2929 = vperm.xlu0 %3059, %v2927_v1  }
 0xea1   :  { %2962 = vperm.xlu1 %3060, %v2919_v12  }
 0xf07   :  { %v2942_v37 = vpop.permute.xlu0 %2941 }
 0xf08   :  { %v2967_v35 = vrot.slane %v2942_v37, %v3565_v25 }
 0xf09   :  { %v2945_v40 = vpop.permute.xlu1 %2944 }
 0xf0a   :  { %v2971_v46 = vrot.slane %v2945_v40, %v3565_v25 }
 0xf0b   :  { %v2948_v41 = vpop.permute.xlu0 %2947 }
 0xf0c   :  { %v2975_v9 = vrot.slane %v2948_v41, %v3565_v25  ;;  %v2996_v2 = vsel %vm434_vm4, %v2971_v46, %v2967_v35 }
 0xf0e   :  { %v2997_v55 = vsel %vm436_vm5, %v2975_v9, %v2996_v2  ;;  %vm3035_vm5 = vcmask 3072  }
 0xf0f   :  { %v2954_v6 = vpop.permute.xlu0 %2953 }
 0xf10   :  { %v2983_v32 = vrot.slane %v2954_v6, %v3565_v25 }
 0xf13   :  { %v2951_v5 = vpop.permute.xlu1 %2950 }
 0xf14   :  { %v2979_v47 = vrot.slane %v2951_v5, %v3565_v25 }
 0xf16   :  { %v2998_v16 = vsel %vm438_vm6, %v2979_v47, %v2997_v55 }
 0xf17   :  { %v2960_v13 = vpop.permute.xlu0 %2959  ;;  %v2999_v21 = vsel %vm440_vm7, %v2983_v32, %v2998_v16 }
 0xf18   :  { %v2957_v24 = vpop.permute.xlu1 %2956  ;;  %v2991_v42 = vrot.slane %v2960_v13, %v3565_v25 }
 0xf19   :  { %v2987_v54 = vrot.slane %v2957_v24, %v3565_v25 }
 0xf1b   :  { %v3000_v8 = vsel %vm442_vm8, %v2987_v54, %v2999_v21  ;;  %v2930_v29 = vpop.permute.xlu0 %2929 }
 0xf1c   :  { %v2963_v26 = vpop.permute.xlu1 %2962  ;;  %v3001_v53 = vsel %vm444_vm9, %v2991_v42, %v3000_v8  ;;  %vm2931_vm4 = vcmp.eq.s32.totalorder %v2930_v29, 1 }
 0xf1d   :  { %v2995_v50 = vrot.slane %v2963_v26, %v3565_v25 }
 0xf1f   :  { %v3002_v51 = vsel %vm446_vm10, %v2995_v50, %v3001_v53 }
 0xf20   :  { %v3004_v36 = vsel %vm2931_vm4, %v3002_v51, %v4278_v11 }
 0xf21   :  { %3005 = vst.msk [vmem:[#allocation2] sm:$0xff] %vm76_vm2, %v3004_v36 }
 0xf28   :  { %v3009_v28 = vld [vmem:[#allocation2] sm:$0xff] }
 0xf29   :  { %v3017_v33 = vadd.f32 %v3052_v52, %v3009_v28 }
 0xf2b   :  { %v3018_v19 = vsel %vm76_vm2, %v3017_v33, -inf }
 0xf2c   :  { %3019 = vmax.xlane.f32.xlu1 %v3018_v19 }
 0xfb5   :  { %v3020_v44 = vpop.xlane.xlu1 %3019 }
 0xfb6   :  { %v3021_v25 = vsub.f32 %v3017_v33, %v3020_v44 }
 0xfb8   :  { %v3022_v39 = vmul.f32 1.442695, %v3021_v25 }
 0xfba   :  { %3325 = vpow2.f32 %v3022_v39 }
 0xfc7   :  { %v3326_v60 = vpop.eup %3325 }
 0xfc8   :  { %v3024_v0 = vsel %vm76_vm2, %v3326_v60, 0.0 }
 0xfc9   :  { %3025 = vadd.xlane.f32.xlu0 %v3024_v0 }
0x1052   :  { %v3026_v11 = vpop.xlane.xlu0 %3025 }
0x1053   :  { %3327 = vlog2.f32 %v3026_v11 }
0x1060   :  { %v3328_v31 = vpop.eup %3327 }
0x1061   :  { %v3028_v34 = vmul.f32 0.6931472, %v3328_v31 }
0x1063   :  { %v3029_v3 = vadd.f32 %v3028_v34, %v3020_v44 }
0x1065   :  { %v3031_v62 = vrot.slane %v3029_v3, 4 }
0x1067   :  { %v3033_v18 = vsub.f32 %v3029_v3, %v3031_v62 }
0x1069   :  { %v3034_v14 = vsub.f32 0.0, %v3033_v18 }
0x106b   :  { %3036 = vst.msk [vmem:[%s4405_s6] sm:$0xf] %vm3035_vm5, %v3034_v14 }
0x106c   :  { %3041 = vsyncpa [#allocation4], 1 }
0x106d   :  { %3042 = vsyncpa [#allocation6], 1 }

</bundles_post_ra>
